<compile_context>
chip_gen: v7x
topology: tpu7x:2x2x1
jax: 0.10.0
libtpu: 0.0.40
codegen_flags: <defaults>
</compile_context>

<pallas_src>
import jax
import jax.numpy as jnp
import numpy as np
from jax import lax
from jax.experimental import pallas as pl
from jax.experimental.pallas import tpu as pltpu

H = 11              # vision spatial size
NSP = H * H         # 121 flattened spatial positions
OW = H - 5 + 1      # 7  (valid 5x5 conv output width)
NOUT3 = OW * OW     # 49
TB = 8              # batch tile per grid step (sweep 2/4/8/16 for your batch size)


# --------------------------------------------------------------------------- #
# Kernel: whole forward for a TB-sample tile = 6 matmuls + bias + ReLU.
# --------------------------------------------------------------------------- #
def _brain_kernel(food_ref, x_ref, t1_ref, t2_ref, t3_ref,
                  bias_ref, fcw_ref, fcb_ref, q_ref):
    f32 = jnp.float32
    x = x_ref[...]                                    # (TB, 484)  channel-major maps
    food = food_ref[...]                              # (TB, 1)

    # conv1 (3x3 same, 4->6) as one Toeplitz matmul.
    h1 = jnp.maximum(
        jnp.dot(x, t1_ref[...], preferred_element_type=f32) + bias_ref[0:1, :],
        0.0)                                          # (TB, 726)
    # conv2 (3x3 same, 6->4)
    h2 = jnp.maximum(
        jnp.dot(h1, t2_ref[...], preferred_element_type=f32)
        + bias_ref[1:2, 0:4 * NSP],
        0.0)                                          # (TB, 484)
    # conv3 (5x5 valid, 4->1) straight to the 49 valid outputs.
    h3 = jnp.maximum(
        jnp.dot(h2, t3_ref[...], preferred_element_type=f32)
        + bias_ref[2:3, 0:NOUT3],
        0.0)                                          # (TB, 49)

    fcw = fcw_ref[...]                                # (68, 9) packed FC weights
    wf1s = fcw[0:49, :]                               # (49, 9)  f1 spatial weights
    wf1f = fcw[49:50, :]                              # (1, 9)   f1 food column
    wf2p = fcw[50:59, :]                              # (9, 9)   f2^T padded (col 8 = 0)
    wf3p = fcw[59:68, :]                              # (9, 9)   f3^T padded (cols 5:9, row 8 = 0)
    bf1 = fcb_ref[0:1, :]                             # (1, 9)
    bf2 = fcb_ref[1:2, :]                             # (1, 9)  col 8 = 0
    bf3 = fcb_ref[2:3, :]                             # (1, 9)  cols 5:9 = 0

    h4 = jnp.maximum(
        jnp.dot(h3, wf1s, preferred_element_type=f32) + food * wf1f + bf1, 0.0)  # (TB, 9)
    h5 = jnp.maximum(
        jnp.dot(h4, wf2p, preferred_element_type=f32) + bf2, 0.0)                # (TB, 9), col 8 == 0
    q = jnp.dot(h5, wf3p, preferred_element_type=f32) + bf3                      # (TB, 9), cols 5:9 == 0
    q_ref[...] = q[:, 0:5]                            # (TB, 5)


# --------------------------------------------------------------------------- #
# pallas_call wrapper (batch-tiled grid)
# --------------------------------------------------------------------------- #
def _pallas_forward(food_b, x_b, pk):
    bp = x_b.shape[0]                                 # padded batch (multiple of TB)

    def rep(shape):
        return pl.BlockSpec(shape, lambda i: (0,) * len(shape))

    in_specs = [
        pl.BlockSpec((TB, 1), lambda i: (i, 0)),          # food
        pl.BlockSpec((TB, 4 * NSP), lambda i: (i, 0)),    # vision (flattened, channel-major)
        rep((4 * NSP, 6 * NSP)),                          # conv1 Toeplitz
        rep((6 * NSP, 4 * NSP)),                          # conv2 Toeplitz
        rep((4 * NSP, NOUT3)),                            # conv3 Toeplitz
        rep((3, 6 * NSP)),                                # conv biases (packed)
        rep((68, 9)),                                     # FC weights (packed)
        rep((3, 9)),                                      # FC biases (packed)
    ]
    return pl.pallas_call(
        _brain_kernel,
        grid=(bp // TB,),
        in_specs=in_specs,
        out_specs=pl.BlockSpec((TB, 5), lambda i: (i, 0)),
        out_shape=jax.ShapeDtypeStruct((bp, 5), jnp.float32),
        compiler_params=pltpu.CompilerParams(
            dimension_semantics=("parallel",)),           # batch tiles shard across TCs (v7x)
    )(food_b, x_b,
      pk["t1"], pk["t2"], pk["t3"], pk["bias"], pk["fcw"], pk["fcb"])


@jax.jit
def brain_progression_forward(food, vision, packed):
    """Single-state forward: food scalar, vision (4,11,11) -> (5,) qualities."""
    v = vision.astype(jnp.float32).reshape(1, 4 * NSP)
    f = jnp.asarray(food, jnp.float32).reshape(1, 1)
    v = jnp.pad(v, ((0, TB - 1), (0, 0)))
    f = jnp.pad(f, ((0, TB - 1), (0, 0)))
    return _pallas_forward(f, v, packed)[0]


@jax.jit
def brain_progression_forward_batch(food, vision, packed):
    """Batched forward: food (B,), vision (B,4,11,11) -> (B,5)."""
    b = vision.shape[0]
    bp = ((b + TB - 1) // TB) * TB
    v = vision.astype(jnp.float32).reshape(b, 4 * NSP)
    f = food.astype(jnp.float32).reshape(b, 1)
    v = jnp.pad(v, ((0, bp - b), (0, 0)))
    f = jnp.pad(f, ((0, bp - b), (0, 0)))
    return _pallas_forward(f, v, packed)[:b]


# --------------------------------------------------------------------------- #
# One-time parameter packing (Toeplitz conv matrices + packed FC slabs).
# Hoisted completely out of the per-call hot path.
# --------------------------------------------------------------------------- #
def pack_params(p):
    def toeplitz_same3(w):
        # w: (O, C, 3, 3) -> (C*121, O*121), 'same' padding=1.
        w = np.asarray(w, np.float32)
        o, c, _, _ = w.shape
        t = np.zeros((c * NSP, o * NSP), np.float32)
        for co in range(o):
            for ci in range(c):
                for oy in range(H):
                    for ox in range(H):
                        col = co * NSP + oy * H + ox
                        for ky in range(3):
                            for kx in range(3):
                                iy, ix = oy + ky - 1, ox + kx - 1
                                if 0 <= iy < H and 0 <= ix < H:
                                    t[ci * NSP + iy * H + ix, col] += w[co, ci, ky, kx]
        return t

    def toeplitz_valid5(w):
        # w: (1, C, 5, 5) -> (C*121, 49), valid conv.
        w = np.asarray(w, np.float32)
        c = w.shape[1]
        t = np.zeros((c * NSP, NOUT3), np.float32)
        for ci in range(c):
            for oy in range(OW):
                for ox in range(OW):
                    col = oy * OW + ox
                    for ky in range(5):
                        for kx in range(5):
                            iy, ix = oy + ky, ox + kx
                            t[ci * NSP + iy * H + ix, col] += w[0, ci, ky, kx]
        return t

    b1 = np.asarray(p["b1"], np.float32)
    b2 = np.asarray(p["b2"], np.float32)
    b3 = np.asarray(p["b3"], np.float32)
    bias = np.zeros((3, 6 * NSP), np.float32)
    bias[0, :] = np.repeat(b1, NSP)            # conv1 bias per output lane
    bias[1, :4 * NSP] = np.repeat(b2, NSP)     # conv2 bias
    bias[2, :NOUT3] = np.repeat(b3, NOUT3)     # conv3 bias

    wf1 = np.asarray(p["wf1"], np.float32)     # (9, 50)
    wf2 = np.asarray(p["wf2"], np.float32)     # (8, 9)
    wf3 = np.asarray(p["wf3"], np.float32)     # (5, 8)
    fcw = np.zeros((68, 9), np.float32)
    fcw[0:49, :] = wf1[:, 1:].T                # f1 spatial weights (49, 9)
    fcw[49, :] = wf1[:, 0]                     # f1 food column
    fcw[50:59, 0:8] = wf2.T                    # f2^T padded to (9, 9)
    fcw[59:67, 0:5] = wf3.T                    # f3^T padded to (9, 9); row 67 stays 0

    fcb = np.zeros((3, 9), np.float32)
    fcb[0, :] = np.asarray(p["bf1"], np.float32)
    fcb[1, :8] = np.asarray(p["bf2"], np.float32)
    fcb[2, :5] = np.asarray(p["bf3"], np.float32)

    return {
        "t1": jnp.asarray(toeplitz_same3(p["w1"])),
        "t2": jnp.asarray(toeplitz_same3(p["w2"])),
        "t3": jnp.asarray(toeplitz_valid5(p["w3"])),
        "bias": jnp.asarray(bias),
        "fcw": jnp.asarray(fcw),
        "fcb": jnp.asarray(fcb),
    }


def init_params(key):
    """Deterministic PyTorch-style U(-1/sqrt(fan_in), 1/sqrt(fan_in)) init."""
    def u(k, shape, fan_in):
        bound = 1.0 / float(np.sqrt(fan_in))
        return jax.random.uniform(k, shape, jnp.float32, -bound, bound)
    ks = jax.random.split(key, 12)
    return {
        "w1": u(ks[0], (6, 4, 3, 3), 4 * 9),  "b1": u(ks[1], (6,), 4 * 9),
        "w2": u(ks[2], (4, 6, 3, 3), 6 * 9),  "b2": u(ks[3], (4,), 6 * 9),
        "w3": u(ks[4], (1, 4, 5, 5), 4 * 25), "b3": u(ks[5], (1,), 4 * 25),
        "wf1": u(ks[6], (9, 50), 50),         "bf1": u(ks[7], (9,), 50),
        "wf2": u(ks[8], (8, 9), 9),           "bf2": u(ks[9], (8,), 9),
        "wf3": u(ks[10], (5, 8), 8),          "bf3": u(ks[11], (5,), 8),
    }


def forward_ref(food, vision, p):
    """Plain-JAX reference reproducing the PyTorch forward."""
    x = vision[None].astype(jnp.float32)
    h = jax.nn.relu(lax.conv_general_dilated(x, p["w1"], (1, 1), ((1, 1), (1, 1)))
                    + p["b1"][None, :, None, None])
    h = jax.nn.relu(lax.conv_general_dilated(h, p["w2"], (1, 1), ((1, 1), (1, 1)))
                    + p["b2"][None, :, None, None])
    h = jax.nn.relu(lax.conv_general_dilated(h, p["w3"], (1, 1), ((0, 0), (0, 0)))
                    + p["b3"][None, :, None, None])
    h = h.reshape(-1)
    h = jnp.concatenate([jnp.asarray(food, jnp.float32).reshape(1), h])
    h = jax.nn.relu(p["wf1"] @ h + p["bf1"])
    h = jax.nn.relu(p["wf2"] @ h + p["bf2"])
    return p["wf3"] @ h + p["bf3"]


if __name__ == "__main__":
    key = jax.random.PRNGKey(0)
    kp, kv, kb = jax.random.split(key, 3)
    params = init_params(kp)
    packed = pack_params(params)           # packed once, reused every call

    # --- single state (module semantics: s = (food, vision)) ---
    vision = jax.random.normal(kv, (4, H, H), jnp.float32)
    food = jnp.float32(3.0)
    q = jax.block_until_ready(brain_progression_forward(food, vision, packed))
    q_expected = forward_ref(food, vision, params)
    assert q.shape == (5,)
    np.testing.assert_allclose(np.asarray(q), np.asarray(q_expected),
                               rtol=1e-4, atol=1e-4)

    # --- small batch through the same kernel (one pallas_call, tiled grid) ---
    B = 4
    visions = jax.random.normal(kb, (B, 4, H, H), jnp.float32)
    foods = jnp.arange(B, dtype=jnp.float32)
    qb = jax.block_until_ready(
        brain_progression_forward_batch(foods, visions, packed))
    qb_expected = jnp.stack(
        [forward_ref(foods[i], visions[i], params) for i in range(B)])
    np.testing.assert_allclose(np.asarray(qb), np.asarray(qb_expected),
                               rtol=1e-4, atol=1e-4)

    print("KERNEL_OK")
</pallas_src>

<mosaic_0001>
module attributes {stable_mosaic.version = 11 : i64} {
  func.func @_brain_kernel(%arg0: i32, %arg1: memref<8x1xf32, #tpu.memory_space<vmem>>, %arg2: memref<8x484xf32, #tpu.memory_space<vmem>>, %arg3: memref<484x726xf32, #tpu.memory_space<vmem>>, %arg4: memref<726x484xf32, #tpu.memory_space<vmem>>, %arg5: memref<484x49xf32, #tpu.memory_space<vmem>>, %arg6: memref<3x726xf32, #tpu.memory_space<vmem>>, %arg7: memref<68x9xf32, #tpu.memory_space<vmem>>, %arg8: memref<3x9xf32, #tpu.memory_space<vmem>>, %arg9: memref<8x5xf32, #tpu.memory_space<vmem>>) attributes {dimension_semantics = [#tpu.dimension_semantics<parallel>], iteration_bounds = array<i64: 1>, scalar_prefetch = 0 : i64, scratch_operands = 0 : i64, tpu.core_type = #tpu.core_type<tc>, window_params = [{transform_indices = @transform_0, window_bounds = array<i64: 8, 1>}, {transform_indices = @transform_1, window_bounds = array<i64: 8, 484>}, {pipeline_mode = #tpu.pipeline_mode<synchronous>, transform_indices = @transform_2, window_bounds = array<i64: 484, 726>}, {pipeline_mode = #tpu.pipeline_mode<synchronous>, transform_indices = @transform_3, window_bounds = array<i64: 726, 484>}, {pipeline_mode = #tpu.pipeline_mode<synchronous>, transform_indices = @transform_4, window_bounds = array<i64: 484, 49>}, {pipeline_mode = #tpu.pipeline_mode<synchronous>, transform_indices = @transform_5, window_bounds = array<i64: 3, 726>}, {pipeline_mode = #tpu.pipeline_mode<synchronous>, transform_indices = @transform_6, window_bounds = array<i64: 68, 9>}, {pipeline_mode = #tpu.pipeline_mode<synchronous>, transform_indices = @transform_7, window_bounds = array<i64: 3, 9>}, {transform_indices = @transform_8, window_bounds = array<i64: 8, 5>}]} {
    %c0 = arith.constant 0 : index
    %c0_0 = arith.constant 0 : index
    %0 = vector.load %arg2[%c0, %c0_0] : memref<8x484xf32, #tpu.memory_space<vmem>>, vector<8x484xf32>
    %c0_1 = arith.constant 0 : index
    %c0_2 = arith.constant 0 : index
    %1 = vector.load %arg1[%c0_1, %c0_2] : memref<8x1xf32, #tpu.memory_space<vmem>>, vector<8x1xf32>
    %c0_3 = arith.constant 0 : index
    %c0_4 = arith.constant 0 : index
    %2 = vector.load %arg3[%c0_3, %c0_4] : memref<484x726xf32, #tpu.memory_space<vmem>>, vector<484x726xf32>
    %cst = arith.constant dense<0.000000e+00> : vector<8x726xf32>
    %3 = tpu.matmul %0, %2, %cst {dimension_numbers = #tpu.dot_dimension_numbers<[1], [0], [0], [1], [0, 0, 1, 1], [], []>} : vector<8x484xf32>, vector<484x726xf32>, vector<8x726xf32> -> vector<8x726xf32>
    %c0_5 = arith.constant 0 : index
    %c0_6 = arith.constant 0 : index
    %4 = vector.load %arg6[%c0_5, %c0_6] : memref<3x726xf32, #tpu.memory_space<vmem>>, vector<1x726xf32>
    %5 = vector.broadcast %4 : vector<1x726xf32> to vector<8x726xf32>
    %6 = arith.addf %3, %5 : vector<8x726xf32>
    %cst_7 = arith.constant 0.000000e+00 : f32
    %7 = vector.broadcast %cst_7 : f32 to vector<8x726xf32>
    %8 = arith.maximumf %6, %7 : vector<8x726xf32>
    %c0_8 = arith.constant 0 : index
    %c0_9 = arith.constant 0 : index
    %9 = vector.load %arg4[%c0_8, %c0_9] : memref<726x484xf32, #tpu.memory_space<vmem>>, vector<726x484xf32>
    %cst_10 = arith.constant dense<0.000000e+00> : vector<8x484xf32>
    %10 = tpu.matmul %8, %9, %cst_10 {dimension_numbers = #tpu.dot_dimension_numbers<[1], [0], [0], [1], [0, 0, 1, 1], [], []>} : vector<8x726xf32>, vector<726x484xf32>, vector<8x484xf32> -> vector<8x484xf32>
    %c1 = arith.constant 1 : index
    %c0_11 = arith.constant 0 : index
    %11 = vector.load %arg6[%c1, %c0_11] : memref<3x726xf32, #tpu.memory_space<vmem>>, vector<1x484xf32>
    %12 = vector.broadcast %11 : vector<1x484xf32> to vector<8x484xf32>
    %13 = arith.addf %10, %12 : vector<8x484xf32>
    %cst_12 = arith.constant 0.000000e+00 : f32
    %14 = vector.broadcast %cst_12 : f32 to vector<8x484xf32>
    %15 = arith.maximumf %13, %14 : vector<8x484xf32>
    %c0_13 = arith.constant 0 : index
    %c0_14 = arith.constant 0 : index
    %16 = vector.load %arg5[%c0_13, %c0_14] : memref<484x49xf32, #tpu.memory_space<vmem>>, vector<484x49xf32>
    %cst_15 = arith.constant dense<0.000000e+00> : vector<8x49xf32>
    %17 = tpu.matmul %15, %16, %cst_15 {dimension_numbers = #tpu.dot_dimension_numbers<[1], [0], [0], [1], [0, 0, 1, 1], [], []>} : vector<8x484xf32>, vector<484x49xf32>, vector<8x49xf32> -> vector<8x49xf32>
    %c2 = arith.constant 2 : index
    %c0_16 = arith.constant 0 : index
    %18 = vector.load %arg6[%c2, %c0_16] : memref<3x726xf32, #tpu.memory_space<vmem>>, vector<1x49xf32>
    %19 = vector.broadcast %18 : vector<1x49xf32> to vector<8x49xf32>
    %20 = arith.addf %17, %19 : vector<8x49xf32>
    %cst_17 = arith.constant 0.000000e+00 : f32
    %21 = vector.broadcast %cst_17 : f32 to vector<8x49xf32>
    %22 = arith.maximumf %20, %21 : vector<8x49xf32>
    %c0_18 = arith.constant 0 : index
    %c0_19 = arith.constant 0 : index
    %23 = vector.load %arg7[%c0_18, %c0_19] : memref<68x9xf32, #tpu.memory_space<vmem>>, vector<68x9xf32>
    %24 = vector.extract_strided_slice %23 {offsets = [0, 0], sizes = [49, 9], strides = [1, 1]} : vector<68x9xf32> to vector<49x9xf32>
    %25 = vector.extract_strided_slice %23 {offsets = [49, 0], sizes = [1, 9], strides = [1, 1]} : vector<68x9xf32> to vector<1x9xf32>
    %26 = vector.extract_strided_slice %23 {offsets = [50, 0], sizes = [9, 9], strides = [1, 1]} : vector<68x9xf32> to vector<9x9xf32>
    %27 = vector.extract_strided_slice %23 {offsets = [59, 0], sizes = [9, 9], strides = [1, 1]} : vector<68x9xf32> to vector<9x9xf32>
    %c0_20 = arith.constant 0 : index
    %c0_21 = arith.constant 0 : index
    %28 = vector.load %arg8[%c0_20, %c0_21] : memref<3x9xf32, #tpu.memory_space<vmem>>, vector<1x9xf32>
    %c1_22 = arith.constant 1 : index
    %c0_23 = arith.constant 0 : index
    %29 = vector.load %arg8[%c1_22, %c0_23] : memref<3x9xf32, #tpu.memory_space<vmem>>, vector<1x9xf32>
    %c2_24 = arith.constant 2 : index
    %c0_25 = arith.constant 0 : index
    %30 = vector.load %arg8[%c2_24, %c0_25] : memref<3x9xf32, #tpu.memory_space<vmem>>, vector<1x9xf32>
    %cst_26 = arith.constant dense<0.000000e+00> : vector<8x9xf32>
    %31 = tpu.matmul %22, %24, %cst_26 {dimension_numbers = #tpu.dot_dimension_numbers<[1], [0], [0], [1], [0, 0, 1, 1], [], []>} : vector<8x49xf32>, vector<49x9xf32>, vector<8x9xf32> -> vector<8x9xf32>
    %32 = vector.broadcast %1 : vector<8x1xf32> to vector<8x9xf32>
    %33 = vector.broadcast %25 : vector<1x9xf32> to vector<8x9xf32>
    %34 = arith.mulf %32, %33 : vector<8x9xf32>
    %35 = arith.addf %31, %34 : vector<8x9xf32>
    %36 = vector.broadcast %28 : vector<1x9xf32> to vector<8x9xf32>
    %37 = arith.addf %35, %36 : vector<8x9xf32>
    %cst_27 = arith.constant 0.000000e+00 : f32
    %38 = vector.broadcast %cst_27 : f32 to vector<8x9xf32>
    %39 = arith.maximumf %37, %38 : vector<8x9xf32>
    %cst_28 = arith.constant dense<0.000000e+00> : vector<8x9xf32>
    %40 = tpu.matmul %39, %26, %cst_28 {dimension_numbers = #tpu.dot_dimension_numbers<[1], [0], [0], [1], [0, 0, 1, 1], [], []>} : vector<8x9xf32>, vector<9x9xf32>, vector<8x9xf32> -> vector<8x9xf32>
    %41 = vector.broadcast %29 : vector<1x9xf32> to vector<8x9xf32>
    %42 = arith.addf %40, %41 : vector<8x9xf32>
    %cst_29 = arith.constant 0.000000e+00 : f32
    %43 = vector.broadcast %cst_29 : f32 to vector<8x9xf32>
    %44 = arith.maximumf %42, %43 : vector<8x9xf32>
    %cst_30 = arith.constant dense<0.000000e+00> : vector<8x9xf32>
    %45 = tpu.matmul %44, %27, %cst_30 {dimension_numbers = #tpu.dot_dimension_numbers<[1], [0], [0], [1], [0, 0, 1, 1], [], []>} : vector<8x9xf32>, vector<9x9xf32>, vector<8x9xf32> -> vector<8x9xf32>
    %46 = vector.broadcast %30 : vector<1x9xf32> to vector<8x9xf32>
    %47 = arith.addf %45, %46 : vector<8x9xf32>
    %48 = vector.extract_strided_slice %47 {offsets = [0, 0], sizes = [8, 5], strides = [1, 1]} : vector<8x9xf32> to vector<8x5xf32>
    %c0_31 = arith.constant 0 : index
    %c0_32 = arith.constant 0 : index
    %49 = vector.load %arg9[%c0_31, %c0_32] : memref<8x5xf32, #tpu.memory_space<vmem>>, vector<8x5xf32>
    tpu.vector_store %arg9[%c0_31, %c0_32], %48 {strides = array<i32>} : memref<8x5xf32, #tpu.memory_space<vmem>>, vector<8x5xf32>,
    return
  }
  func.func @transform_0(%arg0: i32) -> (i32, i32) {
    %c0_i32 = arith.constant 0 : i32
    %c0_i32_0 = arith.constant 0 : i32
    return %arg0, %c0_i32 : i32, i32
  }
  func.func @transform_1(%arg0: i32) -> (i32, i32) {
    %c0_i32 = arith.constant 0 : i32
    %c0_i32_0 = arith.constant 0 : i32
    return %arg0, %c0_i32 : i32, i32
  }
  func.func @transform_2(%arg0: i32) -> (i32, i32) {
    %c0_i32 = arith.constant 0 : i32
    %c0_i32_0 = arith.constant 0 : i32
    %c0_i32_1 = arith.constant 0 : i32
    return %c0_i32, %c0_i32_0 : i32, i32
  }
  func.func @transform_3(%arg0: i32) -> (i32, i32) {
    %c0_i32 = arith.constant 0 : i32
    %c0_i32_0 = arith.constant 0 : i32
    %c0_i32_1 = arith.constant 0 : i32
    return %c0_i32, %c0_i32_0 : i32, i32
  }
  func.func @transform_4(%arg0: i32) -> (i32, i32) {
    %c0_i32 = arith.constant 0 : i32
    %c0_i32_0 = arith.constant 0 : i32
    %c0_i32_1 = arith.constant 0 : i32
    return %c0_i32, %c0_i32_0 : i32, i32
  }
  func.func @transform_5(%arg0: i32) -> (i32, i32) {
    %c0_i32 = arith.constant 0 : i32
    %c0_i32_0 = arith.constant 0 : i32
    %c0_i32_1 = arith.constant 0 : i32
    return %c0_i32, %c0_i32_0 : i32, i32
  }
  func.func @transform_6(%arg0: i32) -> (i32, i32) {
    %c0_i32 = arith.constant 0 : i32
    %c0_i32_0 = arith.constant 0 : i32
    %c0_i32_1 = arith.constant 0 : i32
    return %c0_i32, %c0_i32_0 : i32, i32
  }
  func.func @transform_7(%arg0: i32) -> (i32, i32) {
    %c0_i32 = arith.constant 0 : i32
    %c0_i32_0 = arith.constant 0 : i32
    %c0_i32_1 = arith.constant 0 : i32
    return %c0_i32, %c0_i32_0 : i32, i32
  }
  func.func @transform_8(%arg0: i32) -> (i32, i32) {
    %c0_i32 = arith.constant 0 : i32
    %c0_i32_0 = arith.constant 0 : i32
    return %arg0, %c0_i32 : i32, i32
  }
}

</mosaic_0001>

<bundles_post_ra>
// kernel: brain_progression_forward.1
= control target key start
LH: loop header
LB: loop body
LE: loop exit
PB: predicated region body
PF: predicated region fallthrough
CT: control target
= control target key end

     0   :  { %vm432_vm0 = vcmask 818176   ;;  %vm436_vm1 = vcmask 1043456   ;;  %vm1278_vm2 = vcmask 1045504   ;;  %vm1274_vm3 = vcmask 703488   ;;  %s5772_s2 = inlined_call_operand.vmem [shape: f32[484,726], index: 2, kind: input, shape index: {}]   ;;  %s5773_s1 = inlined_call_operand.vmem [shape: f32[8,484], index: 1, kind: input, shape index: {}]   ;;  %s5774_s3 = inlined_call_operand.vmem [shape: f32[726,484], index: 3, kind: input, shape index: {}]   ;;  %s5775_s5 = inlined_call_operand.vmem [shape: f32[3,726], index: 5, kind: input, shape index: {}]   ;;  %s5776_s4 = inlined_call_operand.vmem [shape: f32[484,49], index: 4, kind: input, shape index: {}]   ;;  %s5777_s6 = inlined_call_operand.vmem [shape: f32[68,9], index: 6, kind: input, shape index: {}]   ;;  %s5778_s0 = inlined_call_operand.vmem [shape: f32[8,1], index: 0, kind: input, shape index: {}]   ;;  %s5779_s7 = inlined_call_operand.vmem [shape: f32[3,9], index: 7, kind: input, shape index: {}]   ;;  %s5780_s8 = inlined_call_operand.vmem [shape: f32[8,5], index: 8, kind: output, shape index: {}]  }
   0x1   :  { %v35_v0 = vld [vmem:[%s5772_s2 + $0x8] sm:$0xff]  ;;  %v41_v1 = vld [vmem:[%s5772_s2 + $0x38] sm:$0xff]  ;;  %v34_v2 = vld [vmem:[%s5772_s2] sm:$0xff]  ;;  %vm1960_vm4 = vcmask 1040384   ;;  %vm3168_vm5 = vmmov 0   ;;  %vm1956_vm6 = vcmask 400384  }
   0x2   :  { %v2325_v3 = vpack.c.bf16 %v41_v1, %v35_v0  ;;  %v40_v4 = vld [vmem:[%s5772_s2 + $0x30] sm:$0xff]  ;;  %v47_v5 = vld [vmem:[%s5772_s2 + $0x68] sm:$0xff]  ;;  %v53_v6 = vld [vmem:[%s5772_s2 + $0x98] sm:$0xff]  ;;  %vm3170_vm7 = vmmov 1   ;;  %vm2049_vm9 = vcmask 72704   ;;  %vm2131_vm10 = vcmask 1044480  }
   0x3   :  { %v2327_v7 = vpack.c.bf16 %v40_v4, %v34_v2  ;;  %v2329_v8 = vpack.c.bf16 %v53_v6, %v47_v5  ;;  %v46_v9 = vld [vmem:[%s5772_s2 + $0x60] sm:$0xff]  ;;  %v52_v10 = vld [vmem:[%s5772_s2 + $0x90] sm:$0xff]  ;;  %v59_v11 = vld [vmem:[%s5772_s2 + $0xc8] sm:$0xff]  ;;  %vm2211_vm11 = vcmask 39936  }
   0x4   :  { %2326 = vmatprep.subr.bf16.mxu0 %v2325_v3  ;;  %v65_v12 = vld [vmem:[%s5772_s2 + $0xf8] sm:$0xff]  ;;  %v2331_v13 = vpack.c.bf16 %v52_v10, %v46_v9  ;;  %v58_v14 = vld [vmem:[%s5772_s2 + $0xc0] sm:$0xff]  ;;  %v43_v16 = vld [vmem:[%s5772_s2 + $0x48] sm:$0xff] }
   0x5   :  { %2328 = vmatpush1.bf16.msra.mxu0 %v2327_v7  ;;  %v37_v15 = vld [vmem:[%s5772_s2 + $0x18] sm:$0xff]  ;;  %v2333_v17 = vpack.c.bf16 %v65_v12, %v59_v11  ;;  %v64_v18 = vld [vmem:[%s5772_s2 + $0xf0] sm:$0xff]  ;;  %v42_v21 = vld [vmem:[%s5772_s2 + $0x40] sm:$0xff] }
   0x6   :  { %2330 = vmatprep.subr.bf16.mxu0 %v2329_v8  ;;  %v2445_v19 = vpack.c.bf16 %v43_v16, %v37_v15  ;;  %v36_v20 = vld [vmem:[%s5772_s2 + $0x10] sm:$0xff]  ;;  %v71_v22 = vld [vmem:[%s5772_s2 + $0x128] sm:$0xff]  ;;  %v77_v23 = vld [vmem:[%s5772_s2 + $0x158] sm:$0xff]  ;;  %v2335_v27 = vpack.c.bf16 %v64_v18, %v58_v14 }
   0x7   :  { %v2447_v24 = vpack.c.bf16 %v42_v21, %v36_v20  ;;  %v49_v25 = vld [vmem:[%s5772_s2 + $0x78] sm:$0xff]  ;;  %v55_v26 = vld [vmem:[%s5772_s2 + $0xa8] sm:$0xff]  ;;  %v70_v28 = vld [vmem:[%s5772_s2 + $0x120] sm:$0xff]  ;;  %v2337_v32 = vpack.c.bf16 %v77_v23, %v71_v22 }
   0x8   :  { %2446 = vmatprep.subr.bf16.mxu1 %v2445_v19  ;;  %v2449_v29 = vpack.c.bf16 %v55_v26, %v49_v25  ;;  %v48_v30 = vld [vmem:[%s5772_s2 + $0x70] sm:$0xff]  ;;  %v54_v31 = vld [vmem:[%s5772_s2 + $0xa0] sm:$0xff]  ;;  %v61_v35 = vld [vmem:[%s5772_s2 + $0xd8] sm:$0xff] }
   0x9   :  { %2332 = vmatpush1.bf16.msra.mxu0 %v2331_v13  ;;  %2448 = vmatpush1.bf16.msra.mxu1 %v2447_v24  ;;  %v76_v33 = vld [vmem:[%s5772_s2 + $0x150] sm:$0xff]  ;;  %v2451_v34 = vpack.c.bf16 %v54_v31, %v48_v30  ;;  %v67_v36 = vld [vmem:[%s5772_s2 + $0x108] sm:$0xff]  ;;  %v89_v38 = vld [vmem:[%s5772_s2 + $0x1b8] sm:$0xff] }
   0xa   :  { %2334 = vmatprep.subr.bf16.mxu0 %v2333_v17  ;;  %2450 = vmatprep.subr.bf16.mxu1 %v2449_v29  ;;  %v83_v37 = vld [vmem:[%s5772_s2 + $0x188] sm:$0xff]  ;;  %v2453_v39 = vpack.c.bf16 %v67_v36, %v61_v35  ;;  %v60_v40 = vld [vmem:[%s5772_s2 + $0xd0] sm:$0xff]  ;;  %v66_v41 = vld [vmem:[%s5772_s2 + $0x100] sm:$0xff]  ;;  %v2339_v42 = vpack.c.bf16 %v76_v33, %v70_v28 }
   0xb   :  { %v82_v43 = vld [vmem:[%s5772_s2 + $0x180] sm:$0xff]  ;;  %v2455_v44 = vpack.c.bf16 %v66_v41, %v60_v40  ;;  %v73_v45 = vld [vmem:[%s5772_s2 + $0x138] sm:$0xff]  ;;  %v79_v46 = vld [vmem:[%s5772_s2 + $0x168] sm:$0xff]  ;;  %v2341_v47 = vpack.c.bf16 %v89_v38, %v83_v37 }
   0xc   :  { %v88_v48 = vld [vmem:[%s5772_s2 + $0x1b0] sm:$0xff]  ;;  %v2457_v49 = vpack.c.bf16 %v79_v46, %v73_v45  ;;  %v78_v51 = vld [vmem:[%s5772_s2 + $0x160] sm:$0xff]  ;;  %v95_v52 = vld [vmem:[%s5772_s2 + $0x1e8] sm:$0xff] }
   0xd   :  { %2336 = vmatpush1.bf16.msra.mxu0 %v2335_v27  ;;  %2452 = vmatpush1.bf16.msra.mxu1 %v2451_v34  ;;  %v72_v50 = vld [vmem:[%s5772_s2 + $0x130] sm:$0xff]  ;;  %v101_v53 = vld [vmem:[%s5772_s2 + $0x218] sm:$0xff]  ;;  %v91_v55 = vld [vmem:[%s5772_s2 + $0x1c8] sm:$0xff]  ;;  %v2343_v56 = vpack.c.bf16 %v88_v48, %v82_v43 }
   0xe   :  { %2338 = vmatprep.subr.bf16.mxu0 %v2337_v32  ;;  %2454 = vmatprep.subr.bf16.mxu1 %v2453_v39  ;;  %v85_v54 = vld [vmem:[%s5772_s2 + $0x198] sm:$0xff]  ;;  %v94_v57 = vld [vmem:[%s5772_s2 + $0x1e0] sm:$0xff]  ;;  %v100_v58 = vld [vmem:[%s5772_s2 + $0x210] sm:$0xff]  ;;  %v2459_v59 = vpack.c.bf16 %v78_v51, %v72_v50  ;;  %v2345_v60 = vpack.c.bf16 %v101_v53, %v95_v52 }
   0xf   :  { %v107_v61 = vld [vmem:[%s5772_s2 + $0x248] sm:$0xff]  ;;  %v2461_v62 = vpack.c.bf16 %v91_v55, %v85_v54  ;;  %v84_v63 = vld [vmem:[%s5772_s2 + $0x190] sm:$0xff]  ;;  %v90_v0 = vld [vmem:[%s5772_s2 + $0x1c0] sm:$0xff]  ;;  %v2347_v4 = vpack.c.bf16 %v100_v58, %v94_v57 }
  0x10   :  { %v113_v1 = vld [vmem:[%s5772_s2 + $0x278] sm:$0xff]  ;;  %v103_v3 = vld [vmem:[%s5772_s2 + $0x228] sm:$0xff]  ;;  %v106_v5 = vld [vmem:[%s5772_s2 + $0x240] sm:$0xff]  ;;  %v2463_v7 = vpack.c.bf16 %v90_v0, %v84_v63 }
  0x11   :  { %2340 = vmatpush1.bf16.msra.mxu0 %v2339_v42  ;;  %2456 = vmatpush1.bf16.msra.mxu1 %v2455_v44  ;;  %v97_v2 = vld [vmem:[%s5772_s2 + $0x1f8] sm:$0xff]  ;;  %v112_v6 = vld [vmem:[%s5772_s2 + $0x270] sm:$0xff]  ;;  %v2349_v8 = vpack.c.bf16 %v113_v1, %v107_v61  ;;  %v119_v9 = vld [vmem:[%s5772_s2 + $0x2a8] sm:$0xff] }
  0x12   :  { %2342 = vmatprep.subr.bf16.mxu0 %v2341_v47  ;;  %2458 = vmatprep.subr.bf16.mxu1 %v2457_v49  ;;  %v2465_v10 = vpack.c.bf16 %v103_v3, %v97_v2  ;;  %v96_v11 = vld [vmem:[%s5772_s2 + $0x1f0] sm:$0xff]  ;;  %v102_v12 = vld [vmem:[%s5772_s2 + $0x220] sm:$0xff]  ;;  %v125_v13 = vld [vmem:[%s5772_s2 + $0x2d8] sm:$0xff]  ;;  %v2351_v16 = vpack.c.bf16 %v112_v6, %v106_v5 }
  0x13   :  { %v109_v14 = vld [vmem:[%s5772_s2 + $0x258] sm:$0xff]  ;;  %v115_v15 = vld [vmem:[%s5772_s2 + $0x288] sm:$0xff]  ;;  %v118_v17 = vld [vmem:[%s5772_s2 + $0x2a0] sm:$0xff]  ;;  %v2467_v19 = vpack.c.bf16 %v102_v12, %v96_v11  ;;  %v2353_v20 = vpack.c.bf16 %v125_v13, %v119_v9 }
  0x14   :  { %v124_v18 = vld [vmem:[%s5772_s2 + $0x2d0] sm:$0xff]  ;;  %v131_v21 = vld [vmem:[%s5772_s2 + $0x308] sm:$0xff]  ;;  %v2469_v22 = vpack.c.bf16 %v115_v15, %v109_v14  ;;  %v114_v24 = vld [vmem:[%s5772_s2 + $0x280] sm:$0xff] }
  0x15   :  { %2344 = vmatpush1.bf16.msra.mxu0 %v2343_v56  ;;  %2460 = vmatpush1.bf16.msra.mxu1 %v2459_v59  ;;  %v108_v23 = vld [vmem:[%s5772_s2 + $0x250] sm:$0xff]  ;;  %v137_v25 = vld [vmem:[%s5772_s2 + $0x338] sm:$0xff]  ;;  %v127_v27 = vld [vmem:[%s5772_s2 + $0x2e8] sm:$0xff]  ;;  %v2355_v28 = vpack.c.bf16 %v124_v18, %v118_v17 }
  0x16   :  { %2346 = vmatprep.subr.bf16.mxu0 %v2345_v60  ;;  %2462 = vmatprep.subr.bf16.mxu1 %v2461_v62  ;;  %v121_v26 = vld [vmem:[%s5772_s2 + $0x2b8] sm:$0xff]  ;;  %v130_v29 = vld [vmem:[%s5772_s2 + $0x300] sm:$0xff]  ;;  %v136_v30 = vld [vmem:[%s5772_s2 + $0x330] sm:$0xff]  ;;  %v2471_v31 = vpack.c.bf16 %v114_v24, %v108_v23  ;;  %v2357_v32 = vpack.c.bf16 %v137_v25, %v131_v21 }
  0x17   :  { %v143_v33 = vld [vmem:[%s5772_s2 + $0x368] sm:$0xff]  ;;  %v2473_v34 = vpack.c.bf16 %v127_v27, %v121_v26  ;;  %v120_v35 = vld [vmem:[%s5772_s2 + $0x2b0] sm:$0xff]  ;;  %v126_v36 = vld [vmem:[%s5772_s2 + $0x2e0] sm:$0xff]  ;;  %v2359_v40 = vpack.c.bf16 %v136_v30, %v130_v29 }
  0x18   :  { %v149_v37 = vld [vmem:[%s5772_s2 + $0x398] sm:$0xff]  ;;  %v139_v39 = vld [vmem:[%s5772_s2 + $0x348] sm:$0xff]  ;;  %v142_v41 = vld [vmem:[%s5772_s2 + $0x360] sm:$0xff]  ;;  %v2475_v43 = vpack.c.bf16 %v126_v36, %v120_v35 }
  0x19   :  { %2348 = vmatpush1.bf16.msra.mxu0 %v2347_v4  ;;  %2464 = vmatpush1.bf16.msra.mxu1 %v2463_v7  ;;  %v133_v38 = vld [vmem:[%s5772_s2 + $0x318] sm:$0xff]  ;;  %v148_v42 = vld [vmem:[%s5772_s2 + $0x390] sm:$0xff]  ;;  %v2361_v44 = vpack.c.bf16 %v149_v37, %v143_v33  ;;  %v155_v45 = vld [vmem:[%s5772_s2 + $0x3c8] sm:$0xff] }
  0x1a   :  { %2350 = vmatprep.subr.bf16.mxu0 %v2349_v8  ;;  %2466 = vmatprep.subr.bf16.mxu1 %v2465_v10  ;;  %v2477_v46 = vpack.c.bf16 %v139_v39, %v133_v38  ;;  %v132_v47 = vld [vmem:[%s5772_s2 + $0x310] sm:$0xff]  ;;  %v138_v48 = vld [vmem:[%s5772_s2 + $0x340] sm:$0xff]  ;;  %v161_v49 = vld [vmem:[%s5772_s2 + $0x3f8] sm:$0xff]  ;;  %v2363_v52 = vpack.c.bf16 %v148_v42, %v142_v41 }
  0x1b   :  { %v145_v50 = vld [vmem:[%s5772_s2 + $0x378] sm:$0xff]  ;;  %v151_v51 = vld [vmem:[%s5772_s2 + $0x3a8] sm:$0xff]  ;;  %v154_v53 = vld [vmem:[%s5772_s2 + $0x3c0] sm:$0xff]  ;;  %v2479_v55 = vpack.c.bf16 %v138_v48, %v132_v47  ;;  %v2365_v56 = vpack.c.bf16 %v161_v49, %v155_v45 }
  0x1c   :  { %v160_v54 = vld [vmem:[%s5772_s2 + $0x3f0] sm:$0xff]  ;;  %v167_v57 = vld [vmem:[%s5772_s2 + $0x428] sm:$0xff]  ;;  %v2481_v58 = vpack.c.bf16 %v151_v51, %v145_v50  ;;  %v150_v60 = vld [vmem:[%s5772_s2 + $0x3a0] sm:$0xff] }
  0x1d   :  { %2352 = vmatpush1.bf16.msra.mxu0 %v2351_v16  ;;  %2468 = vmatpush1.bf16.msra.mxu1 %v2467_v19  ;;  %v144_v59 = vld [vmem:[%s5772_s2 + $0x370] sm:$0xff]  ;;  %v173_v61 = vld [vmem:[%s5772_s2 + $0x458] sm:$0xff]  ;;  %v163_v63 = vld [vmem:[%s5772_s2 + $0x408] sm:$0xff]  ;;  %v2367_v1 = vpack.c.bf16 %v160_v54, %v154_v53 }
  0x1e   :  { %2354 = vmatprep.subr.bf16.mxu0 %v2353_v20  ;;  %2470 = vmatprep.subr.bf16.mxu1 %v2469_v22  ;;  %v157_v62 = vld [vmem:[%s5772_s2 + $0x3d8] sm:$0xff]  ;;  %v3483_v0 = vld [vmem:[%s5773_s1 + $0x8] sm:$0xff]  ;;  %v166_v2 = vld [vmem:[%s5772_s2 + $0x420] sm:$0xff]  ;;  %v2483_v4 = vpack.c.bf16 %v150_v60, %v144_v59  ;;  %v2369_v5 = vpack.c.bf16 %v173_v61, %v167_v57 }
  0x1f   :  { %v172_v3 = vld [vmem:[%s5772_s2 + $0x450] sm:$0xff]  ;;  %v179_v6 = vld [vmem:[%s5772_s2 + $0x488] sm:$0xff]  ;;  %v2485_v7 = vpack.c.bf16 %v163_v63, %v157_v62  ;;  %v162_v9 = vld [vmem:[%s5772_s2 + $0x400] sm:$0xff]  ;;  %519 = vmatprep.mubr.f32.mxu0 %v3483_v0  ;;  %661 = vmatprep.mubr.f32.mxu1 %v3483_v0 }
  0x20   :  { %v156_v8 = vld [vmem:[%s5772_s2 + $0x3d0] sm:$0xff]  ;;  %v185_v10 = vld [vmem:[%s5772_s2 + $0x4b8] sm:$0xff]  ;;  %v175_v12 = vld [vmem:[%s5772_s2 + $0x468] sm:$0xff]  ;;  %v2371_v13 = vpack.c.bf16 %v172_v3, %v166_v2 }
  0x21   :  { %2356 = vmatpush1.bf16.msra.mxu0 %v2355_v28  ;;  %2472 = vmatpush1.bf16.msra.mxu1 %v2471_v31  ;;  %v169_v11 = vld [vmem:[%s5772_s2 + $0x438] sm:$0xff]  ;;  %v178_v14 = vld [vmem:[%s5772_s2 + $0x480] sm:$0xff]  ;;  %v184_v15 = vld [vmem:[%s5772_s2 + $0x4b0] sm:$0xff]  ;;  %v2487_v16 = vpack.c.bf16 %v162_v9, %v156_v8  ;;  %v2373_v17 = vpack.c.bf16 %v185_v10, %v179_v6 }
  0x22   :  { %2358 = vmatprep.subr.bf16.mxu0 %v2357_v32  ;;  %2474 = vmatprep.subr.bf16.mxu1 %v2473_v34  ;;  %v191_v18 = vld [vmem:[%s5772_s2 + $0x4e8] sm:$0xff]  ;;  %v2489_v19 = vpack.c.bf16 %v175_v12, %v169_v11  ;;  %v168_v20 = vld [vmem:[%s5772_s2 + $0x430] sm:$0xff]  ;;  %v174_v21 = vld [vmem:[%s5772_s2 + $0x460] sm:$0xff]  ;;  %v2375_v25 = vpack.c.bf16 %v184_v15, %v178_v14 }
  0x23   :  { %v197_v22 = vld [vmem:[%s5772_s2 + $0x518] sm:$0xff]  ;;  %v187_v24 = vld [vmem:[%s5772_s2 + $0x4c8] sm:$0xff]  ;;  %v190_v26 = vld [vmem:[%s5772_s2 + $0x4e0] sm:$0xff]  ;;  %v2491_v28 = vpack.c.bf16 %v174_v21, %v168_v20 }
  0x24   :  { %v181_v23 = vld [vmem:[%s5772_s2 + $0x498] sm:$0xff]  ;;  %v196_v27 = vld [vmem:[%s5772_s2 + $0x510] sm:$0xff]  ;;  %v2377_v29 = vpack.c.bf16 %v197_v22, %v191_v18  ;;  %v203_v30 = vld [vmem:[%s5772_s2 + $0x548] sm:$0xff] }
  0x25   :  { %2360 = vmatpush1.bf16.msra.mxu0 %v2359_v40  ;;  %2476 = vmatpush1.bf16.msra.mxu1 %v2475_v43  ;;  %v2493_v31 = vpack.c.bf16 %v187_v24, %v181_v23  ;;  %v180_v32 = vld [vmem:[%s5772_s2 + $0x490] sm:$0xff]  ;;  %v186_v33 = vld [vmem:[%s5772_s2 + $0x4c0] sm:$0xff]  ;;  %v209_v34 = vld [vmem:[%s5772_s2 + $0x578] sm:$0xff]  ;;  %v2379_v37 = vpack.c.bf16 %v196_v27, %v190_v26 }
  0x26   :  { %2362 = vmatprep.subr.bf16.mxu0 %v2361_v44  ;;  %2478 = vmatprep.subr.bf16.mxu1 %v2477_v46  ;;  %v193_v35 = vld [vmem:[%s5772_s2 + $0x4f8] sm:$0xff]  ;;  %v199_v36 = vld [vmem:[%s5772_s2 + $0x528] sm:$0xff]  ;;  %v202_v38 = vld [vmem:[%s5772_s2 + $0x540] sm:$0xff]  ;;  %v2495_v40 = vpack.c.bf16 %v186_v33, %v180_v32  ;;  %v2381_v41 = vpack.c.bf16 %v209_v34, %v203_v30 }
  0x27   :  { %v208_v39 = vld [vmem:[%s5772_s2 + $0x570] sm:$0xff]  ;;  %v215_v42 = vld [vmem:[%s5772_s2 + $0x5a8] sm:$0xff]  ;;  %v2497_v43 = vpack.c.bf16 %v199_v36, %v193_v35  ;;  %v198_v45 = vld [vmem:[%s5772_s2 + $0x520] sm:$0xff] }
  0x28   :  { %v192_v44 = vld [vmem:[%s5772_s2 + $0x4f0] sm:$0xff]  ;;  %v221_v46 = vld [vmem:[%s5772_s2 + $0x5d8] sm:$0xff]  ;;  %v211_v48 = vld [vmem:[%s5772_s2 + $0x588] sm:$0xff]  ;;  %v2383_v49 = vpack.c.bf16 %v208_v39, %v202_v38 }
  0x29   :  { %2364 = vmatpush1.bf16.msra.mxu0 %v2363_v52  ;;  %2480 = vmatpush1.bf16.msra.mxu1 %v2479_v55  ;;  %v205_v47 = vld [vmem:[%s5772_s2 + $0x558] sm:$0xff]  ;;  %v214_v50 = vld [vmem:[%s5772_s2 + $0x5a0] sm:$0xff]  ;;  %v220_v51 = vld [vmem:[%s5772_s2 + $0x5d0] sm:$0xff]  ;;  %v2499_v52 = vpack.c.bf16 %v198_v45, %v192_v44  ;;  %v2385_v53 = vpack.c.bf16 %v221_v46, %v215_v42 }
  0x2a   :  { %2366 = vmatprep.subr.bf16.mxu0 %v2365_v56  ;;  %2482 = vmatprep.subr.bf16.mxu1 %v2481_v58  ;;  %v227_v54 = vld [vmem:[%s5772_s2 + $0x608] sm:$0xff]  ;;  %v2501_v55 = vpack.c.bf16 %v211_v48, %v205_v47  ;;  %v204_v56 = vld [vmem:[%s5772_s2 + $0x550] sm:$0xff]  ;;  %v210_v57 = vld [vmem:[%s5772_s2 + $0x580] sm:$0xff]  ;;  %v2387_v61 = vpack.c.bf16 %v220_v51, %v214_v50 }
  0x2b   :  { %v233_v58 = vld [vmem:[%s5772_s2 + $0x638] sm:$0xff]  ;;  %v223_v60 = vld [vmem:[%s5772_s2 + $0x5e8] sm:$0xff]  ;;  %v226_v62 = vld [vmem:[%s5772_s2 + $0x600] sm:$0xff] }
  0x2c   :  { %v217_v59 = vld [vmem:[%s5772_s2 + $0x5b8] sm:$0xff]  ;;  %v232_v63 = vld [vmem:[%s5772_s2 + $0x630] sm:$0xff]  ;;  %v2389_v2 = vpack.c.bf16 %v233_v58, %v227_v54  ;;  %v239_v3 = vld [vmem:[%s5772_s2 + $0x668] sm:$0xff] }
  0x2d   :  { %2368 = vmatpush1.bf16.msra.mxu0 %v2367_v1  ;;  %2484 = vmatpush1.bf16.msra.mxu1 %v2483_v4  ;;  %v2503_v1 = vpack.c.bf16 %v210_v57, %v204_v56  ;;  %v2505_v4 = vpack.c.bf16 %v223_v60, %v217_v59  ;;  %v222_v6 = vld [vmem:[%s5772_s2 + $0x5e0] sm:$0xff]  ;;  %v229_v8 = vld [vmem:[%s5772_s2 + $0x618] sm:$0xff]  ;;  %v235_v9 = vld [vmem:[%s5772_s2 + $0x648] sm:$0xff]  ;;  %v2391_v11 = vpack.c.bf16 %v232_v63, %v226_v62 }
  0x2e   :  { %2370 = vmatprep.subr.bf16.mxu0 %v2369_v5  ;;  %2486 = vmatprep.subr.bf16.mxu1 %v2485_v7  ;;  %v216_v5 = vld [vmem:[%s5772_s2 + $0x5b0] sm:$0xff]  ;;  %v245_v7 = vld [vmem:[%s5772_s2 + $0x698] sm:$0xff]  ;;  %v3634_v10 = vld [vmem:[%s5773_s1] sm:$0xff] }
  0x2f   :  { %v238_v12 = vld [vmem:[%s5772_s2 + $0x660] sm:$0xff]  ;;  %v2507_v14 = vpack.c.bf16 %v222_v6, %v216_v5  ;;  %v2393_v15 = vpack.c.bf16 %v245_v7, %v239_v3  ;;  %v228_v18 = vld [vmem:[%s5772_s2 + $0x610] sm:$0xff]  ;;  %v257_v20 = vld [vmem:[%s5772_s2 + $0x6f8] sm:$0xff] }
  0x30   :  { %v241_v21 = vld [vmem:[%s5772_s2 + $0x678] sm:$0xff]  ;;  %v247_v22 = vld [vmem:[%s5772_s2 + $0x6a8] sm:$0xff]  ;;  %v250_v24 = vld [vmem:[%s5772_s2 + $0x6c0] sm:$0xff] }
  0x31   :  { %2372 = vmatpush1.bf16.msra.mxu0 %v2371_v13  ;;  %2488 = vmatpush1.bf16.msra.mxu1 %v2487_v16  ;;  %v244_v13 = vld [vmem:[%s5772_s2 + $0x690] sm:$0xff]  ;;  %v251_v16 = vld [vmem:[%s5772_s2 + $0x6c8] sm:$0xff]  ;;  %v269_v32 = vld [vmem:[%s5772_s2 + $0x758] sm:$0xff] }
  0x32   :  { %2374 = vmatprep.subr.bf16.mxu0 %v2373_v17  ;;  %2490 = vmatprep.subr.bf16.mxu1 %v2489_v19  ;;  %v2509_v17 = vpack.c.bf16 %v235_v9, %v229_v8  ;;  %v234_v19 = vld [vmem:[%s5772_s2 + $0x640] sm:$0xff]  ;;  %v2395_v23 = vpack.c.bf16 %v244_v13, %v238_v12  ;;  %v2397_v27 = vpack.c.bf16 %v257_v20, %v251_v16  ;;  %v240_v30 = vld [vmem:[%s5772_s2 + $0x670] sm:$0xff]  ;;  %v253_v33 = vld [vmem:[%s5772_s2 + $0x6d8] sm:$0xff] }
  0x33   :  { %v2511_v26 = vpack.c.bf16 %v234_v19, %v228_v18  ;;  %v259_v34 = vld [vmem:[%s5772_s2 + $0x708] sm:$0xff]  ;;  %v262_v36 = vld [vmem:[%s5772_s2 + $0x720] sm:$0xff]  ;;  %v252_v42 = vld [vmem:[%s5772_s2 + $0x6d0] sm:$0xff] }
  0x34   :  { %v281_v44 = vld [vmem:[%s5772_s2 + $0x7b8] sm:$0xff]  ;;  %v271_v46 = vld [vmem:[%s5772_s2 + $0x768] sm:$0xff]  ;;  %v274_v48 = vld [vmem:[%s5772_s2 + $0x780] sm:$0xff] }
  0x35   :  { %2376 = vmatpush1.bf16.msra.mxu0 %v2375_v25  ;;  %2492 = vmatpush1.bf16.msra.mxu1 %v2491_v28  ;;  %v256_v25 = vld [vmem:[%s5772_s2 + $0x6f0] sm:$0xff]  ;;  %v263_v28 = vld [vmem:[%s5772_s2 + $0x728] sm:$0xff]  ;;  %v265_v45 = vld [vmem:[%s5772_s2 + $0x738] sm:$0xff] }
  0x36   :  { %2378 = vmatprep.subr.bf16.mxu0 %v2377_v29  ;;  %2494 = vmatprep.subr.bf16.mxu1 %v2493_v31  ;;  %v2513_v29 = vpack.c.bf16 %v247_v22, %v241_v21  ;;  %v246_v31 = vld [vmem:[%s5772_s2 + $0x6a0] sm:$0xff]  ;;  %v2399_v35 = vpack.c.bf16 %v256_v25, %v250_v24  ;;  %v2401_v39 = vpack.c.bf16 %v269_v32, %v263_v28  ;;  %v287_v50 = vld [vmem:[%s5772_s2 + $0x7e8] sm:$0xff]  ;;  %v277_v57 = vld [vmem:[%s5772_s2 + $0x798] sm:$0xff] }
  0x37   :  { %v2515_v38 = vpack.c.bf16 %v246_v31, %v240_v30  ;;  %v2521_v54 = vpack.c.bf16 %v271_v46, %v265_v45  ;;  %v270_v56 = vld [vmem:[%s5772_s2 + $0x760] sm:$0xff]  ;;  %v283_v58 = vld [vmem:[%s5772_s2 + $0x7c8] sm:$0xff]  ;;  %v3737_v59 = vld [vmem:[%s5773_s1 + $0x18] sm:$0xff] }
  0x38   :  { %v292_v62 = vld [vmem:[%s5772_s2 + $0x810] sm:$0xff]  ;;  %v2525_v3 = vpack.c.bf16 %v283_v58, %v277_v57  ;;  %v282_v5 = vld [vmem:[%s5772_s2 + $0x7c0] sm:$0xff]  ;;  %v305_v6 = vld [vmem:[%s5772_s2 + $0x878] sm:$0xff] }
  0x39   :  { %2380 = vmatpush1.bf16.msra.mxu0 %v2379_v37  ;;  %2496 = vmatpush1.bf16.msra.mxu1 %v2495_v40  ;;  %v268_v37 = vld [vmem:[%s5772_s2 + $0x750] sm:$0xff]  ;;  %v275_v40 = vld [vmem:[%s5772_s2 + $0x788] sm:$0xff]  ;;  %v289_v7 = vld [vmem:[%s5772_s2 + $0x7f8] sm:$0xff] }
  0x3a   :  { %2382 = vmatprep.subr.bf16.mxu0 %v2381_v41  ;;  %2498 = vmatprep.subr.bf16.mxu1 %v2497_v43  ;;  %v2517_v41 = vpack.c.bf16 %v259_v34, %v253_v33  ;;  %v258_v43 = vld [vmem:[%s5772_s2 + $0x700] sm:$0xff]  ;;  %v2403_v47 = vpack.c.bf16 %v268_v37, %v262_v36  ;;  %v295_v8 = vld [vmem:[%s5772_s2 + $0x828] sm:$0xff]  ;;  %v304_v12 = vld [vmem:[%s5772_s2 + $0x870] sm:$0xff] }
  0x3b   :  { %v2519_v51 = vpack.c.bf16 %v258_v43, %v252_v42  ;;  %v2529_v16 = vpack.c.bf16 %v295_v8, %v289_v7  ;;  %v294_v18 = vld [vmem:[%s5772_s2 + $0x820] sm:$0xff]  ;;  %v317_v19 = vld [vmem:[%s5772_s2 + $0x8d8] sm:$0xff]  ;;  %v307_v21 = vld [vmem:[%s5772_s2 + $0x888] sm:$0xff] }
  0x3c   :  { %v301_v20 = vld [vmem:[%s5772_s2 + $0x858] sm:$0xff]  ;;  %v316_v24 = vld [vmem:[%s5772_s2 + $0x8d0] sm:$0xff]  ;;  %v306_v30 = vld [vmem:[%s5772_s2 + $0x880] sm:$0xff] }
  0x3d   :  { %2384 = vmatpush1.bf16.msra.mxu0 %v2383_v49  ;;  %2500 = vmatpush1.bf16.msra.mxu1 %v2499_v52  ;;  %v280_v49 = vld [vmem:[%s5772_s2 + $0x7b0] sm:$0xff]  ;;  %v2405_v52 = vpack.c.bf16 %v281_v44, %v275_v40  ;;  %v2533_v28 = vpack.c.bf16 %v307_v21, %v301_v20  ;;  %v329_v31 = vld [vmem:[%s5772_s2 + $0x938] sm:$0xff]  ;;  %v319_v33 = vld [vmem:[%s5772_s2 + $0x8e8] sm:$0xff] }
  0x3e   :  { %2386 = vmatprep.subr.bf16.mxu0 %v2385_v53  ;;  %2502 = vmatprep.subr.bf16.mxu1 %v2501_v55  ;;  %v293_v53 = vld [vmem:[%s5772_s2 + $0x818] sm:$0xff]  ;;  %v264_v55 = vld [vmem:[%s5772_s2 + $0x730] sm:$0xff]  ;;  %v2407_v60 = vpack.c.bf16 %v280_v49, %v274_v48  ;;  %v318_v42 = vld [vmem:[%s5772_s2 + $0x8e0] sm:$0xff] }
  0x3f   :  { %v2523_v63 = vpack.c.bf16 %v270_v56, %v264_v55  ;;  %v313_v32 = vld [vmem:[%s5772_s2 + $0x8b8] sm:$0xff]  ;;  %v328_v36 = vld [vmem:[%s5772_s2 + $0x930] sm:$0xff]  ;;  %v331_v45 = vld [vmem:[%s5772_s2 + $0x948] sm:$0xff] }
  0x40   :  { %v2537_v40 = vpack.c.bf16 %v319_v33, %v313_v32  ;;  %v341_v43 = vld [vmem:[%s5772_s2 + $0x998] sm:$0xff]  ;;  %v340_v48 = vld [vmem:[%s5772_s2 + $0x990] sm:$0xff]  ;;  %v343_v57 = vld [vmem:[%s5772_s2 + $0x9a8] sm:$0xff] }
  0x41   :  { %2388 = vmatpush1.bf16.msra.mxu0 %v2387_v61  ;;  %2504 = vmatpush1.bf16.msra.mxu1 %v2503_v1  ;;  %v286_v61 = vld [vmem:[%s5772_s2 + $0x7e0] sm:$0xff]  ;;  %v2409_v1 = vpack.c.bf16 %v293_v53, %v287_v50  ;;  %v325_v44 = vld [vmem:[%s5772_s2 + $0x918] sm:$0xff]  ;;  %v324_v53 = vld [vmem:[%s5772_s2 + $0x910] sm:$0xff] }
  0x42   :  { %2390 = vmatprep.subr.bf16.mxu0 %v2389_v2  ;;  %2506 = vmatprep.subr.bf16.mxu1 %v2505_v4  ;;  %v299_v2 = vld [vmem:[%s5772_s2 + $0x848] sm:$0xff]  ;;  %v276_v4 = vld [vmem:[%s5772_s2 + $0x790] sm:$0xff]  ;;  %v2411_v9 = vpack.c.bf16 %v292_v62, %v286_v61  ;;  %v353_v55 = vld [vmem:[%s5772_s2 + $0x9f8] sm:$0xff] }
  0x43   :  { %v2527_v13 = vpack.c.bf16 %v282_v5, %v276_v4  ;;  %v337_v56 = vld [vmem:[%s5772_s2 + $0x978] sm:$0xff]  ;;  %v352_v61 = vld [vmem:[%s5772_s2 + $0x9f0] sm:$0xff]  ;;  %v342_v4 = vld [vmem:[%s5772_s2 + $0x9a0] sm:$0xff] }
  0x44   :  { %520 = vmatmul.mubr.f32.vlgmr.msra.gmra.mrb[0].mxu0 %v3634_v10  ;;  %v365_v5 = vld [vmem:[%s5772_s2 + $0xa58] sm:$0xff]  ;;  %v355_v7 = vld [vmem:[%s5772_s2 + $0xa08] sm:$0xff]  ;;  %vm5743_vm8 = vmpackc.low %vm1960_vm4, %vm3170_vm7 }
  0x45   :  { %2392 = vmatpush1.bf16.msra.mxu0 %v2391_v11  ;;  %2508 = vmatpush1.bf16.msra.mxu1 %v2507_v14  ;;  %v298_v11 = vld [vmem:[%s5772_s2 + $0x840] sm:$0xff]  ;;  %v2413_v14 = vpack.c.bf16 %v305_v6, %v299_v2  ;;  %v2545_v2 = vpack.c.bf16 %v343_v57, %v337_v56  ;;  %v349_v6 = vld [vmem:[%s5772_s2 + $0x9d8] sm:$0xff]  ;;  %v367_v20 = vld [vmem:[%s5772_s2 + $0xa68] sm:$0xff] }
  0x46   :  { %2394 = vmatprep.subr.bf16.mxu0 %v2393_v15  ;;  %2510 = vmatprep.subr.bf16.mxu1 %v2509_v17  ;;  %v311_v15 = vld [vmem:[%s5772_s2 + $0x8a8] sm:$0xff]  ;;  %v288_v17 = vld [vmem:[%s5772_s2 + $0x7f0] sm:$0xff]  ;;  %v2415_v22 = vpack.c.bf16 %v304_v12, %v298_v11  ;;  %v394_v56 = vld [vmem:[%s5772_s2 + $0xb40] sm:$0xf] }
  0x47   :  { %2219 = vmatprep.mubr.msk.f32.mxu0 %vm432_vm0, %v3737_v59  ;;  %v2531_v25 = vpack.c.bf16 %v294_v18, %v288_v17  ;;  %v364_v11 = vld [vmem:[%s5772_s2 + $0xa50] sm:$0xff]  ;;  %v354_v17 = vld [vmem:[%s5772_s2 + $0xa00] sm:$0xff]  ;;  %v377_v18 = vld [vmem:[%s5772_s2 + $0xab8] sm:$0xff] }
  0x48   :  { %662 = vmatmul.mubr.f32.vlgmr.msra.gmra.mrb[0].mxu1 %v3634_v10  ;;  %v379_v32 = vld [vmem:[%s5772_s2 + $0xac8] sm:$0xff] }
  0x49   :  { %2396 = vmatpush1.bf16.msra.mxu0 %v2395_v23  ;;  %2512 = vmatpush1.bf16.msra.mxu1 %v2511_v26  ;;  %v310_v23 = vld [vmem:[%s5772_s2 + $0x8a0] sm:$0xff]  ;;  %v2417_v26 = vpack.c.bf16 %v317_v19, %v311_v15  ;;  %v2549_v15 = vpack.c.bf16 %v355_v7, %v349_v6  ;;  %v361_v19 = vld [vmem:[%s5772_s2 + $0xa38] sm:$0xff]  ;;  %v396_v7 = vld [vmem:[%s5772_s2 + $0xb50] sm:$0xf] }
  0x4a   :  { %2398 = vmatprep.subr.bf16.mxu0 %v2397_v27  ;;  %2514 = vmatprep.subr.bf16.mxu1 %v2513_v29  ;;  %v323_v27 = vld [vmem:[%s5772_s2 + $0x908] sm:$0xff]  ;;  %v300_v29 = vld [vmem:[%s5772_s2 + $0x850] sm:$0xff]  ;;  %v2419_v34 = vpack.c.bf16 %v316_v24, %v310_v23  ;;  %v887_v6 = vld [vmem:[%s5774_s3] sm:$0xff] }
  0x4b   :  { %2222 = vmatprep.mubr.msk.f32.mxu1 %vm432_vm0, %v3737_v59  ;;  %v2535_v37 = vpack.c.bf16 %v306_v30, %v300_v29  ;;  %v376_v23 = vld [vmem:[%s5772_s2 + $0xab0] sm:$0xff]  ;;  %v366_v29 = vld [vmem:[%s5772_s2 + $0xa60] sm:$0xff]  ;;  %v389_v30 = vld [vmem:[%s5772_s2 + $0xb18] sm:$0xff] }
  0x4d   :  { %2400 = vmatpush1.bf16.msra.mxu0 %v2399_v35  ;;  %2516 = vmatpush1.bf16.msra.mxu1 %v2515_v38  ;;  %v322_v35 = vld [vmem:[%s5772_s2 + $0x900] sm:$0xff]  ;;  %v2421_v38 = vpack.c.bf16 %v329_v31, %v323_v27  ;;  %v2553_v27 = vpack.c.bf16 %v367_v20, %v361_v19  ;;  %v373_v31 = vld [vmem:[%s5772_s2 + $0xa98] sm:$0xff] }
  0x4e   :  { %2402 = vmatprep.subr.bf16.mxu0 %v2401_v39  ;;  %2518 = vmatprep.subr.bf16.mxu1 %v2517_v41  ;;  %v335_v39 = vld [vmem:[%s5772_s2 + $0x968] sm:$0xff]  ;;  %v312_v41 = vld [vmem:[%s5772_s2 + $0x8b0] sm:$0xff]  ;;  %v2423_v46 = vpack.c.bf16 %v328_v36, %v322_v35  ;;  %v895_v19 = vld [vmem:[%s5774_s3 + $0x40] sm:$0xff] }
  0x4f   :  { %v2539_v49 = vpack.c.bf16 %v318_v42, %v312_v41  ;;  %v2425_v50 = vpack.c.bf16 %v341_v43, %v335_v39  ;;  %v372_v39 = vld [vmem:[%s5772_s2 + $0xa90] sm:$0xff]  ;;  %v385_v41 = vld [vmem:[%s5772_s2 + $0xaf8] sm:$0xff]  ;;  %v391_v42 = vld [vmem:[%s5772_s2 + $0xb28] sm:$0xff] }
  0x50   :  { %v899_v20 = vld [vmem:[%s5774_s3 + $0x60] sm:$0xff] }
  0x51   :  { %2404 = vmatpush1.bf16.msra.mxu0 %v2403_v47  ;;  %2520 = vmatpush1.bf16.msra.mxu1 %v2519_v51  ;;  %v334_v47 = vld [vmem:[%s5772_s2 + $0x960] sm:$0xff]  ;;  %v347_v51 = vld [vmem:[%s5772_s2 + $0x9c8] sm:$0xff] }
  0x52   :  { %2406 = vmatprep.subr.bf16.mxu0 %v2405_v52  ;;  %2522 = vmatprep.subr.bf16.mxu1 %v2521_v54  ;;  %v2541_v52 = vpack.c.bf16 %v331_v45, %v325_v44  ;;  %v330_v54 = vld [vmem:[%s5772_s2 + $0x940] sm:$0xff]  ;;  %v2427_v58 = vpack.c.bf16 %v340_v48, %v334_v47  ;;  %v2561_v45 = vpack.c.bf16 %v391_v42, %v385_v41  ;;  %v395_v48 = vld [vmem:[%s5772_s2 + $0xb48] sm:$0xf] }
  0x53   :  { %v2543_v62 = vpack.c.bf16 %v330_v54, %v324_v53  ;;  %v390_v47 = vld [vmem:[%s5772_s2 + $0xb20] sm:$0xff]  ;;  %v51_v53 = vld [vmem:[%s5772_s2 + $0x88] sm:$0xff]  ;;  %v57_v54 = vld [vmem:[%s5772_s2 + $0xb8] sm:$0xff] }
  0x54   :  { %v99_v41 = vld [vmem:[%s5772_s2 + $0x208] sm:$0xff] }
  0x55   :  { %2408 = vmatpush1.bf16.msra.mxu0 %v2407_v60  ;;  %2524 = vmatpush1.bf16.msra.mxu1 %v2523_v63  ;;  %v346_v60 = vld [vmem:[%s5772_s2 + $0x9c0] sm:$0xff]  ;;  %v2429_v63 = vpack.c.bf16 %v353_v55, %v347_v51 }
  0x56   :  { %2410 = vmatprep.subr.bf16.mxu0 %v2409_v1  ;;  %2526 = vmatprep.subr.bf16.mxu1 %v2525_v3  ;;  %v359_v1 = vld [vmem:[%s5772_s2 + $0xa28] sm:$0xff]  ;;  %v336_v3 = vld [vmem:[%s5772_s2 + $0x970] sm:$0xff]  ;;  %v2431_v8 = vpack.c.bf16 %v352_v61, %v346_v60  ;;  %v38_v51 = vld [vmem:[%s5772_s2 + $0x20] sm:$0xff] }
  0x57   :  { %v2547_v12 = vpack.c.bf16 %v342_v4, %v336_v3  ;;  %v50_v61 = vld [vmem:[%s5772_s2 + $0x80] sm:$0xff]  ;;  %v892_v3 = vld [vmem:[%s5774_s3 + $0x28] sm:$0xff] }
  0x58   :  { %v63_v4 = vld [vmem:[%s5772_s2 + $0xe8] sm:$0xff] }
  0x59   :  { %2412 = vmatpush1.bf16.msra.mxu0 %v2411_v9  ;;  %2528 = vmatpush1.bf16.msra.mxu1 %v2527_v13  ;;  %v358_v9 = vld [vmem:[%s5772_s2 + $0xa20] sm:$0xff]  ;;  %v2433_v13 = vpack.c.bf16 %v365_v5, %v359_v1  ;;  %v397_v1 = vld [vmem:[%s5772_s2 + $0xb58] sm:$0xf] }
  0x5a   :  { %2414 = vmatprep.subr.bf16.mxu0 %v2413_v14  ;;  %2530 = vmatprep.subr.bf16.mxu1 %v2529_v16  ;;  %v371_v14 = vld [vmem:[%s5772_s2 + $0xa88] sm:$0xff]  ;;  %v348_v16 = vld [vmem:[%s5772_s2 + $0x9d0] sm:$0xff]  ;;  %v2435_v21 = vpack.c.bf16 %v364_v11, %v358_v9  ;;  %v69_v5 = vld [vmem:[%s5772_s2 + $0x118] sm:$0xff] }
  0x5b   :  { %v2551_v24 = vpack.c.bf16 %v354_v17, %v348_v16  ;;  %v891_v9 = vld [vmem:[%s5774_s3 + $0x20] sm:$0xff]  ;;  %v2573_v16 = vpack.c.bf16 %v69_v5, %v63_v4  ;;  %v68_v17 = vld [vmem:[%s5772_s2 + $0x110] sm:$0xff]  ;;  %v123_v4 = vld [vmem:[%s5772_s2 + $0x2c8] sm:$0xff] }
  0x5d   :  { %2416 = vmatpush1.bf16.msra.mxu0 %v2415_v22  ;;  %2532 = vmatpush1.bf16.msra.mxu1 %v2531_v25  ;;  %v370_v22 = vld [vmem:[%s5772_s2 + $0xa80] sm:$0xff]  ;;  %v2437_v25 = vpack.c.bf16 %v377_v18, %v371_v14  ;;  %v896_v14 = vld [vmem:[%s5774_s3 + $0x48] sm:$0xff] }
  0x5e   :  { %2418 = vmatprep.subr.bf16.mxu0 %v2417_v26  ;;  %2534 = vmatprep.subr.bf16.mxu1 %v2533_v28  ;;  %v383_v26 = vld [vmem:[%s5772_s2 + $0xae8] sm:$0xff]  ;;  %v360_v28 = vld [vmem:[%s5772_s2 + $0xa30] sm:$0xff]  ;;  %v2439_v33 = vpack.c.bf16 %v376_v23, %v370_v22  ;;  %v81_v22 = vld [vmem:[%s5772_s2 + $0x178] sm:$0xff] }
  0x5f   :  { %v2555_v35 = vpack.c.bf16 %v366_v29, %v360_v28  ;;  %v2441_v36 = vpack.c.bf16 %v389_v30, %v383_v26  ;;  %v908_v23 = vld [vmem:[%s5774_s3 + $0xa8] sm:$0xff]  ;;  %v80_v26 = vld [vmem:[%s5772_s2 + $0x170] sm:$0xff] }
  0x60   :  { %v87_v29 = vld [vmem:[%s5772_s2 + $0x1a8] sm:$0xff] }
  0x61   :  { %2420 = vmatpush1.bf16.msra.mxu0 %v2419_v34  ;;  %2536 = vmatpush1.bf16.msra.mxu1 %v2535_v37  ;;  %v382_v34 = vld [vmem:[%s5772_s2 + $0xae0] sm:$0xff]  ;;  %v388_v37 = vld [vmem:[%s5772_s2 + $0xb10] sm:$0xff] }
  0x62   :  { %2422 = vmatprep.subr.bf16.mxu0 %v2421_v38  ;;  %2538 = vmatprep.subr.bf16.mxu1 %v2537_v40  ;;  %v2557_v38 = vpack.c.bf16 %v379_v32, %v373_v31  ;;  %v378_v40 = vld [vmem:[%s5772_s2 + $0xac0] sm:$0xff]  ;;  %v2443_v43 = vpack.c.bf16 %v388_v37, %v382_v34  ;;  %v912_v34 = vld [vmem:[%s5774_s3 + $0xc8] sm:$0xff] }
  0x63   :  { %v2559_v44 = vpack.c.bf16 %v378_v40, %v372_v39  ;;  %v903_v31 = vld [vmem:[%s5774_s3 + $0x80] sm:$0xff] }
  0x64   :  { %v907_v32 = vld [vmem:[%s5774_s3 + $0xa0] sm:$0xff] }
  0x65   :  { %2424 = vmatpush1.bf16.msra.mxu0 %v2423_v46  ;;  %2540 = vmatpush1.bf16.msra.mxu1 %v2539_v49  ;;  %v384_v46 = vld [vmem:[%s5772_s2 + $0xaf0] sm:$0xff]  ;;  %v39_v49 = vld [vmem:[%s5772_s2 + $0x28] sm:$0xff]  ;;  %v86_v37 = vld [vmem:[%s5772_s2 + $0x1a0] sm:$0xff]  ;;  %v2695_v39 = vpack.c.bf16 %v907_v32, %v903_v31 }
  0x66   :  { %2426 = vmatprep.subr.bf16.mxu0 %v2425_v50  ;;  %2542 = vmatprep.subr.bf16.mxu1 %v2541_v52  ;;  %v45_v50 = vld [vmem:[%s5772_s2 + $0x58] sm:$0xff]  ;;  %v44_v52 = vld [vmem:[%s5772_s2 + $0x50] sm:$0xff]  ;;  %v2563_v55 = vpack.c.bf16 %v390_v47, %v384_v46  ;;  %v920_v46 = vld [vmem:[%s5774_s3 + $0x108] sm:$0xff] }
  0x67   :  { %v2565_v57 = vpack.c.bf16 %v45_v50, %v39_v49  ;;  %v2567_v60 = vpack.c.bf16 %v44_v52, %v38_v51  ;;  %v924_v47 = vld [vmem:[%s5774_s3 + $0x128] sm:$0xff]  ;;  %v98_v49 = vld [vmem:[%s5772_s2 + $0x200] sm:$0xff]  ;;  %v104_v50 = vld [vmem:[%s5772_s2 + $0x230] sm:$0xff] }
  0x68   :  { %v947_v31 = vld [vmem:[%s5774_s3 + $0x1e0] sm:$0xff]  ;;  %v153_v32 = vld [vmem:[%s5772_s2 + $0x3b8] sm:$0xff] }
  0x69   :  { %2428 = vmatpush1.bf16.msra.mxu0 %v2427_v58  ;;  %2544 = vmatpush1.bf16.msra.mxu1 %v2543_v62  ;;  %v3987_v58 = vld [vmem:[%s5773_s1 + $0x10] sm:$0xff] }
  0x6a   :  { %2430 = vmatprep.subr.bf16.mxu0 %v2429_v63  ;;  %2546 = vmatprep.subr.bf16.mxu1 %v2545_v2  ;;  %v56_v62 = vld [vmem:[%s5772_s2 + $0xb0] sm:$0xff]  ;;  %v2569_v63 = vpack.c.bf16 %v57_v54, %v51_v53  ;;  %v888_v2 = vld [vmem:[%s5774_s3 + $0x8] sm:$0xff]  ;;  %v2701_v54 = vpack.c.bf16 %v924_v47, %v920_v46 }
  0x6b   :  { %v2571_v11 = vpack.c.bf16 %v56_v62, %v50_v61  ;;  %v111_v53 = vld [vmem:[%s5772_s2 + $0x268] sm:$0xff]  ;;  %v2587_v62 = vpack.c.bf16 %v104_v50, %v98_v49  ;;  %v164_v49 = vld [vmem:[%s5772_s2 + $0x410] sm:$0xff] }
  0x6c   :  { %v932_v61 = vld [vmem:[%s5774_s3 + $0x168] sm:$0xff] }
  0x6d   :  { %2432 = vmatpush1.bf16.msra.mxu0 %v2431_v8  ;;  %2548 = vmatpush1.bf16.msra.mxu1 %v2547_v12  ;;  %v2685_v8 = vpack.c.bf16 %v892_v3, %v888_v2  ;;  %v62_v12 = vld [vmem:[%s5772_s2 + $0xe0] sm:$0xff]  ;;  %v964_v46 = vld [vmem:[%s5774_s3 + $0x268] sm:$0xff] }
  0x6e   :  { %2434 = vmatprep.subr.bf16.mxu0 %v2433_v13  ;;  %2550 = vmatprep.subr.bf16.mxu1 %v2549_v15  ;;  %v2687_v13 = vpack.c.bf16 %v891_v9, %v887_v6  ;;  %v900_v15 = vld [vmem:[%s5774_s3 + $0x68] sm:$0xff]  ;;  %v927_v6 = vld [vmem:[%s5774_s3 + $0x140] sm:$0xff] }
  0x6f   :  { %v2689_v18 = vpack.c.bf16 %v900_v15, %v896_v14  ;;  %v936_v9 = vld [vmem:[%s5774_s3 + $0x188] sm:$0xff]  ;;  %v128_v14 = vld [vmem:[%s5772_s2 + $0x2f0] sm:$0xff] }
  0x71   :  { %2436 = vmatpush1.bf16.msra.mxu0 %v2435_v21  ;;  %2552 = vmatpush1.bf16.msra.mxu1 %v2551_v24  ;;  %v75_v21 = vld [vmem:[%s5772_s2 + $0x148] sm:$0xff]  ;;  %v2575_v24 = vpack.c.bf16 %v68_v17, %v62_v12 }
  0x72   :  { %2438 = vmatprep.subr.bf16.mxu0 %v2437_v25  ;;  %2554 = vmatprep.subr.bf16.mxu1 %v2553_v27  ;;  %v74_v25 = vld [vmem:[%s5772_s2 + $0x140] sm:$0xff]  ;;  %v2691_v27 = vpack.c.bf16 %v899_v20, %v895_v19  ;;  %v2577_v28 = vpack.c.bf16 %v81_v22, %v75_v21  ;;  %v135_v17 = vld [vmem:[%s5772_s2 + $0x328] sm:$0xff]  ;;  %v141_v21 = vld [vmem:[%s5772_s2 + $0x358] sm:$0xff] }
  0x73   :  { %v935_v19 = vld [vmem:[%s5774_s3 + $0x180] sm:$0xff]  ;;  %v944_v22 = vld [vmem:[%s5774_s3 + $0x1c8] sm:$0xff] }
  0x74   :  { %v939_v20 = vld [vmem:[%s5774_s3 + $0x1a0] sm:$0xff] }
  0x75   :  { %2440 = vmatpush1.bf16.msra.mxu0 %v2439_v33  ;;  %2556 = vmatpush1.bf16.msra.mxu1 %v2555_v35  ;;  %v93_v33 = vld [vmem:[%s5772_s2 + $0x1d8] sm:$0xff]  ;;  %v916_v35 = vld [vmem:[%s5774_s3 + $0xe8] sm:$0xff] }
  0x76   :  { %2442 = vmatprep.subr.bf16.mxu0 %v2441_v36  ;;  %2558 = vmatprep.subr.bf16.mxu1 %v2557_v38  ;;  %v2579_v36 = vpack.c.bf16 %v80_v26, %v74_v25  ;;  %v92_v38 = vld [vmem:[%s5772_s2 + $0x1d0] sm:$0xff]  ;;  %v2581_v40 = vpack.c.bf16 %v93_v33, %v87_v29  ;;  %v2697_v42 = vpack.c.bf16 %v916_v35, %v912_v34  ;;  %v952_v33 = vld [vmem:[%s5774_s3 + $0x208] sm:$0xff] }
  0x77   :  { %v140_v25 = vld [vmem:[%s5772_s2 + $0x350] sm:$0xff]  ;;  %v2711_v26 = vpack.c.bf16 %v939_v20, %v935_v19  ;;  %v956_v34 = vld [vmem:[%s5774_s3 + $0x228] sm:$0xff]  ;;  %v979_v19 = vld [vmem:[%s5774_s3 + $0x2e0] sm:$0xff] }
  0x78   :  { %v201_v20 = vld [vmem:[%s5772_s2 + $0x538] sm:$0xff] }
  0x79   :  { %2444 = vmatpush1.bf16.msra.mxu0 %v2443_v43  ;;  %2560 = vmatpush1.bf16.msra.mxu1 %v2559_v44  ;;  %v911_v43 = vld [vmem:[%s5774_s3 + $0xc0] sm:$0xff] }
  0x7a   :  { %2217 = vmatprep.subr.msk.mxu0 %vm436_vm1, %v395_v48  ;;  %2562 = vmatprep.subr.bf16.mxu1 %v2561_v45  ;;  %v915_v44 = vld [vmem:[%s5774_s3 + $0xe0] sm:$0xff]  ;;  %v105_v45 = vld [vmem:[%s5772_s2 + $0x238] sm:$0xff]  ;;  %v2583_v48 = vpack.c.bf16 %v92_v38, %v86_v37  ;;  %v152_v37 = vld [vmem:[%s5772_s2 + $0x3b0] sm:$0xff] }
  0x7b   :  { %v2699_v51 = vpack.c.bf16 %v915_v44, %v911_v43  ;;  %v2585_v52 = vpack.c.bf16 %v105_v45, %v99_v41  ;;  %v2717_v41 = vpack.c.bf16 %v956_v34, %v952_v33  ;;  %v955_v43 = vld [vmem:[%s5774_s3 + $0x220] sm:$0xff]  ;;  %v165_v44 = vld [vmem:[%s5772_s2 + $0x418] sm:$0xff]  ;;  %v960_v45 = vld [vmem:[%s5774_s3 + $0x248] sm:$0xff] }
  0x7c   :  { %v996_v33 = vld [vmem:[%s5774_s3 + $0x368] sm:$0xff] }
  0x7d   :  { %2218 = vmatpush1.msk.msra.mxu0 %vm436_vm1, %v394_v56  ;;  %2564 = vmatpush1.bf16.msra.mxu1 %v2563_v55  ;;  %v919_v55 = vld [vmem:[%s5774_s3 + $0x100] sm:$0xff] }
  0x7e   :  { %591 = vmatmul.mubr.f32.vlgmr.msra.gmra.mrb[0].mxu0 %v3987_v58  ;;  %2566 = vmatprep.subr.bf16.mxu0 %v2565_v57  ;;  %v923_v56 = vld [vmem:[%s5774_s3 + $0x120] sm:$0xff]  ;;  %v117_v57 = vld [vmem:[%s5772_s2 + $0x298] sm:$0xff] }
  0x7f   :  { %2568 = vmatpush1.bf16.msra.mxu0 %v2567_v60  ;;  %2220 = vmatprep.subr.msk.mxu1 %vm436_vm1, %v397_v1  ;;  %v928_v60 = vld [vmem:[%s5774_s3 + $0x148] sm:$0xff]  ;;  %v116_v1 = vld [vmem:[%s5772_s2 + $0x290] sm:$0xff]  ;;  %v2703_v2 = vpack.c.bf16 %v923_v56, %v919_v55  ;;  %v2589_v3 = vpack.c.bf16 %v117_v57, %v111_v53  ;;  %v2721_v53 = vpack.c.bf16 %v964_v46, %v960_v45  ;;  %v963_v55 = vld [vmem:[%s5774_s3 + $0x260] sm:$0xff] }
  0x80   :  { %2570 = vmatprep.subr.bf16.mxu0 %v2569_v63  ;;  %803 = vmatprep.mubr.f32.mxu0 %v3483_v0  ;;  %v904_v0 = vld [vmem:[%s5774_s3 + $0x88] sm:$0xff]  ;;  %v110_v63 = vld [vmem:[%s5772_s2 + $0x260] sm:$0xff]  ;;  %v2705_v5 = vpack.c.bf16 %v932_v61, %v928_v60  ;;  %v177_v56 = vld [vmem:[%s5772_s2 + $0x478] sm:$0xff] }
  0x81   :  { %2221 = vmatpush1.msk.msra.mxu1 %vm436_vm1, %v396_v7  ;;  %v2693_v30 = vpack.c.bf16 %v908_v23, %v904_v0  ;;  %v931_v7 = vld [vmem:[%s5774_s3 + $0x160] sm:$0xff]  ;;  %v2591_v12 = vpack.c.bf16 %v116_v1, %v110_v63  ;;  %v948_v0 = vld [vmem:[%s5774_s3 + $0x1e8] sm:$0xff]  ;;  %v176_v63 = vld [vmem:[%s5772_s2 + $0x470] sm:$0xff] }
  0x82   :  { %733 = vmatmul.mubr.f32.vlgmr.msra.gmra.mrb[0].mxu1 %v3987_v58  ;;  %2686 = vmatprep.subr.bf16.mxu1 %v2685_v8  ;;  %v129_v8 = vld [vmem:[%s5772_s2 + $0x2f8] sm:$0xff]  ;;  %v2707_v15 = vpack.c.bf16 %v931_v7, %v927_v6  ;;  %v2713_v29 = vpack.c.bf16 %v948_v0, %v944_v22  ;;  %v968_v57 = vld [vmem:[%s5774_s3 + $0x288] sm:$0xff]  ;;  %v971_v6 = vld [vmem:[%s5774_s3 + $0x2a0] sm:$0xff] }
  0x83   :  { %2572 = vmatpush1.bf16.msra.mxu0 %v2571_v11  ;;  %2688 = vmatpush1.bf16.msra.mxu1 %v2687_v13  ;;  %v940_v11 = vld [vmem:[%s5774_s3 + $0x1a8] sm:$0xff]  ;;  %v122_v13 = vld [vmem:[%s5772_s2 + $0x2c0] sm:$0xff]  ;;  %v189_v7 = vld [vmem:[%s5772_s2 + $0x4d8] sm:$0xff] }
  0x84   :  { %2574 = vmatprep.subr.bf16.mxu0 %v2573_v16  ;;  %2690 = vmatprep.subr.bf16.mxu1 %v2689_v18  ;;  %v2593_v16 = vpack.c.bf16 %v129_v8, %v123_v4  ;;  %v2709_v18 = vpack.c.bf16 %v940_v11, %v936_v9  ;;  %v2595_v23 = vpack.c.bf16 %v128_v14, %v122_v13  ;;  %v972_v60 = vld [vmem:[%s5774_s3 + $0x2a8] sm:$0xff]  ;;  %v188_v13 = vld [vmem:[%s5772_s2 + $0x4d0] sm:$0xff] }
  0x85   :  { %v2725_v4 = vpack.c.bf16 %v972_v60, %v968_v57  ;;  %v976_v8 = vld [vmem:[%s5774_s3 + $0x2c8] sm:$0xff] }
  0x86   :  { %v980_v9 = vld [vmem:[%s5774_s3 + $0x2e8] sm:$0xff] }
  0x87   :  { %2576 = vmatpush1.bf16.msra.mxu0 %v2575_v24  ;;  %2692 = vmatpush1.bf16.msra.mxu1 %v2691_v27  ;;  %v134_v24 = vld [vmem:[%s5772_s2 + $0x320] sm:$0xff]  ;;  %v2597_v27 = vpack.c.bf16 %v141_v21, %v135_v17  ;;  %v2729_v17 = vpack.c.bf16 %v980_v9, %v976_v8  ;;  %v984_v21 = vld [vmem:[%s5774_s3 + $0x308] sm:$0xff] }
  0x88   :  { %2578 = vmatprep.subr.bf16.mxu0 %v2577_v28  ;;  %2694 = vmatprep.subr.bf16.mxu1 %v2693_v30  ;;  %v147_v28 = vld [vmem:[%s5772_s2 + $0x388] sm:$0xff]  ;;  %v943_v30 = vld [vmem:[%s5774_s3 + $0x1c0] sm:$0xff]  ;;  %v2599_v35 = vpack.c.bf16 %v140_v25, %v134_v24  ;;  %v200_v24 = vld [vmem:[%s5772_s2 + $0x530] sm:$0xff] }
  0x89   :  { %v2715_v38 = vpack.c.bf16 %v947_v31, %v943_v30  ;;  %v988_v22 = vld [vmem:[%s5774_s3 + $0x328] sm:$0xff]  ;;  %v987_v30 = vld [vmem:[%s5774_s3 + $0x320] sm:$0xff]  ;;  %v213_v31 = vld [vmem:[%s5772_s2 + $0x598] sm:$0xff] }
  0x8a   :  { %v1004_v45 = vld [vmem:[%s5774_s3 + $0x3a8] sm:$0xff] }
  0x8b   :  { %2580 = vmatpush1.bf16.msra.mxu0 %v2579_v36  ;;  %2696 = vmatpush1.bf16.msra.mxu1 %v2695_v39  ;;  %v146_v36 = vld [vmem:[%s5772_s2 + $0x380] sm:$0xff]  ;;  %v2601_v39 = vpack.c.bf16 %v153_v32, %v147_v28  ;;  %v2733_v28 = vpack.c.bf16 %v988_v22, %v984_v21  ;;  %v992_v32 = vld [vmem:[%s5774_s3 + $0x348] sm:$0xff]  ;;  %v284_v22 = vld [vmem:[%s5772_s2 + $0x7d0] sm:$0xff] }
  0x8c   :  { %2582 = vmatprep.subr.bf16.mxu0 %v2581_v40  ;;  %2698 = vmatprep.subr.bf16.mxu1 %v2697_v42  ;;  %v159_v40 = vld [vmem:[%s5772_s2 + $0x3e8] sm:$0xff]  ;;  %v951_v42 = vld [vmem:[%s5774_s3 + $0x200] sm:$0xff]  ;;  %v2603_v47 = vpack.c.bf16 %v152_v37, %v146_v36  ;;  %v212_v36 = vld [vmem:[%s5772_s2 + $0x590] sm:$0xff] }
  0x8d   :  { %v2719_v50 = vpack.c.bf16 %v955_v43, %v951_v42  ;;  %v995_v42 = vld [vmem:[%s5774_s3 + $0x360] sm:$0xff]  ;;  %v225_v43 = vld [vmem:[%s5772_s2 + $0x5f8] sm:$0xff] }
  0x8e   :  { %v278_v21 = vld [vmem:[%s5772_s2 + $0x7a0] sm:$0xff] }
  0x8f   :  { %2584 = vmatpush1.bf16.msra.mxu0 %v2583_v48  ;;  %2700 = vmatpush1.bf16.msra.mxu1 %v2699_v51  ;;  %v158_v48 = vld [vmem:[%s5772_s2 + $0x3e0] sm:$0xff]  ;;  %v2605_v51 = vpack.c.bf16 %v165_v44, %v159_v40  ;;  %v2737_v40 = vpack.c.bf16 %v996_v33, %v992_v32  ;;  %v1000_v44 = vld [vmem:[%s5774_s3 + $0x388] sm:$0xff]  ;;  %v308_v32 = vld [vmem:[%s5772_s2 + $0x890] sm:$0xff] }
  0x90   :  { %2586 = vmatprep.subr.bf16.mxu0 %v2585_v52  ;;  %2702 = vmatprep.subr.bf16.mxu1 %v2701_v54  ;;  %v171_v52 = vld [vmem:[%s5772_s2 + $0x448] sm:$0xff]  ;;  %v959_v54 = vld [vmem:[%s5774_s3 + $0x240] sm:$0xff]  ;;  %v2607_v61 = vpack.c.bf16 %v164_v49, %v158_v48 }
  0x91   :  { %v2723_v1 = vpack.c.bf16 %v963_v55, %v959_v54  ;;  %v231_v54 = vld [vmem:[%s5772_s2 + $0x628] sm:$0xff]  ;;  %v237_v55 = vld [vmem:[%s5772_s2 + $0x658] sm:$0xff] }
  0x92   :  { %v2629_v60 = vpack.c.bf16 %v237_v55, %v231_v54  ;;  %v332_v54 = vld [vmem:[%s5772_s2 + $0x950] sm:$0xff]  ;;  %v339_v55 = vld [vmem:[%s5772_s2 + $0x988] sm:$0xff] }
  0x93   :  { %2588 = vmatpush1.bf16.msra.mxu0 %v2587_v62  ;;  %2704 = vmatpush1.bf16.msra.mxu1 %v2703_v2  ;;  %v170_v62 = vld [vmem:[%s5772_s2 + $0x440] sm:$0xff]  ;;  %v2609_v2 = vpack.c.bf16 %v177_v56, %v171_v52 }
  0x94   :  { %2590 = vmatprep.subr.bf16.mxu0 %v2589_v3  ;;  %2706 = vmatprep.subr.bf16.mxu1 %v2705_v5  ;;  %v183_v3 = vld [vmem:[%s5772_s2 + $0x4a8] sm:$0xff]  ;;  %v967_v5 = vld [vmem:[%s5774_s3 + $0x280] sm:$0xff]  ;;  %v2611_v11 = vpack.c.bf16 %v176_v63, %v170_v62  ;;  %v236_v62 = vld [vmem:[%s5772_s2 + $0x650] sm:$0xff] }
  0x95   :  { %v2727_v14 = vpack.c.bf16 %v971_v6, %v967_v5  ;;  %v999_v52 = vld [vmem:[%s5774_s3 + $0x380] sm:$0xff]  ;;  %v243_v63 = vld [vmem:[%s5772_s2 + $0x688] sm:$0xff]  ;;  %v248_v5 = vld [vmem:[%s5772_s2 + $0x6b0] sm:$0xff] }
  0x96   :  { %v255_v6 = vld [vmem:[%s5772_s2 + $0x6e8] sm:$0xff] }
  0x97   :  { %2592 = vmatpush1.bf16.msra.mxu0 %v2591_v12  ;;  %2708 = vmatpush1.bf16.msra.mxu1 %v2707_v15  ;;  %v182_v12 = vld [vmem:[%s5772_s2 + $0x4a0] sm:$0xff]  ;;  %v2613_v15 = vpack.c.bf16 %v189_v7, %v183_v3  ;;  %v261_v7 = vld [vmem:[%s5772_s2 + $0x718] sm:$0xff] }
  0x98   :  { %2594 = vmatprep.subr.bf16.mxu0 %v2593_v16  ;;  %2710 = vmatprep.subr.bf16.mxu1 %v2709_v18  ;;  %v195_v16 = vld [vmem:[%s5772_s2 + $0x508] sm:$0xff]  ;;  %v975_v18 = vld [vmem:[%s5774_s3 + $0x2c0] sm:$0xff]  ;;  %v2615_v0 = vpack.c.bf16 %v188_v13, %v182_v12  ;;  %v2637_v9 = vpack.c.bf16 %v261_v7, %v255_v6  ;;  %v260_v12 = vld [vmem:[%s5772_s2 + $0x710] sm:$0xff] }
  0x99   :  { %v2731_v25 = vpack.c.bf16 %v979_v19, %v975_v18  ;;  %v267_v13 = vld [vmem:[%s5772_s2 + $0x748] sm:$0xff]  ;;  %v285_v18 = vld [vmem:[%s5772_s2 + $0x7d8] sm:$0xff] }
  0x9a   :  { %v363_v6 = vld [vmem:[%s5772_s2 + $0xa48] sm:$0xff]  ;;  %v369_v7 = vld [vmem:[%s5772_s2 + $0xa78] sm:$0xff] }
  0x9b   :  { %2596 = vmatpush1.bf16.msra.mxu0 %v2595_v23  ;;  %2712 = vmatpush1.bf16.msra.mxu1 %v2711_v26  ;;  %v194_v23 = vld [vmem:[%s5772_s2 + $0x500] sm:$0xff]  ;;  %v2617_v26 = vpack.c.bf16 %v201_v20, %v195_v16  ;;  %v272_v16 = vld [vmem:[%s5772_s2 + $0x770] sm:$0xff] }
  0x9c   :  { %2598 = vmatprep.subr.bf16.mxu0 %v2597_v27  ;;  %2714 = vmatprep.subr.bf16.mxu1 %v2713_v29  ;;  %v207_v27 = vld [vmem:[%s5772_s2 + $0x568] sm:$0xff]  ;;  %v983_v29 = vld [vmem:[%s5774_s3 + $0x300] sm:$0xff]  ;;  %v2619_v34 = vpack.c.bf16 %v200_v24, %v194_v23  ;;  %v297_v23 = vld [vmem:[%s5772_s2 + $0x838] sm:$0xff]  ;;  %v2647_v24 = vpack.c.bf16 %v284_v22, %v278_v21 }
  0x9d   :  { %v2735_v37 = vpack.c.bf16 %v987_v30, %v983_v29  ;;  %v309_v29 = vld [vmem:[%s5772_s2 + $0x898] sm:$0xff]  ;;  %v386_v21 = vld [vmem:[%s5772_s2 + $0xb00] sm:$0xff]  ;;  %v392_v22 = vld [vmem:[%s5772_s2 + $0xb30] sm:$0xff] }
  0x9f   :  { %2600 = vmatpush1.bf16.msra.mxu0 %v2599_v35  ;;  %2716 = vmatpush1.bf16.msra.mxu1 %v2715_v38  ;;  %v206_v35 = vld [vmem:[%s5772_s2 + $0x560] sm:$0xff]  ;;  %v2621_v38 = vpack.c.bf16 %v213_v31, %v207_v27  ;;  %v296_v27 = vld [vmem:[%s5772_s2 + $0x830] sm:$0xff] }
  0xa0   :  { %2602 = vmatprep.subr.bf16.mxu0 %v2601_v39  ;;  %2718 = vmatprep.subr.bf16.mxu1 %v2717_v41  ;;  %v219_v39 = vld [vmem:[%s5772_s2 + $0x5c8] sm:$0xff]  ;;  %v991_v41 = vld [vmem:[%s5774_s3 + $0x340] sm:$0xff]  ;;  %v2623_v46 = vpack.c.bf16 %v212_v36, %v206_v35 }
  0xa1   :  { %v2739_v48 = vpack.c.bf16 %v995_v42, %v991_v41  ;;  %v2625_v49 = vpack.c.bf16 %v225_v43, %v219_v39  ;;  %v302_v31 = vld [vmem:[%s5772_s2 + $0x860] sm:$0xff]  ;;  %v1008_v35 = vld [vmem:[%s5774_s3 + $0x3c8] sm:$0xff] }
  0xa2   :  { %v1012_v36 = vld [vmem:[%s5774_s3 + $0x3e8] sm:$0xff]  ;;  %v1007_v39 = vld [vmem:[%s5774_s3 + $0x3c0] sm:$0xff]  ;;  %v2655_v42 = vpack.c.bf16 %v308_v32, %v302_v31 }
  0xa3   :  { %2604 = vmatpush1.bf16.msra.mxu0 %v2603_v47  ;;  %2720 = vmatpush1.bf16.msra.mxu1 %v2719_v50  ;;  %v218_v47 = vld [vmem:[%s5772_s2 + $0x5c0] sm:$0xff]  ;;  %v224_v50 = vld [vmem:[%s5772_s2 + $0x5f0] sm:$0xff] }
  0xa4   :  { %2606 = vmatprep.subr.bf16.mxu0 %v2605_v51  ;;  %2722 = vmatprep.subr.bf16.mxu1 %v2721_v53  ;;  %v2741_v51 = vpack.c.bf16 %v1004_v45, %v1000_v44  ;;  %v1003_v53 = vld [vmem:[%s5774_s3 + $0x3a0] sm:$0xff]  ;;  %v2627_v56 = vpack.c.bf16 %v224_v50, %v218_v47  ;;  %v320_v45 = vld [vmem:[%s5772_s2 + $0x8f0] sm:$0xff]  ;;  %v1020_v47 = vld [vmem:[%s5774_s3 + $0x428] sm:$0xff] }
  0xa5   :  { %v2743_v57 = vpack.c.bf16 %v1003_v53, %v999_v52  ;;  %v314_v43 = vld [vmem:[%s5772_s2 + $0x8c0] sm:$0xff] }
  0xa6   :  { %v326_v53 = vld [vmem:[%s5772_s2 + $0x920] sm:$0xff] }
  0xa7   :  { %2608 = vmatpush1.bf16.msra.mxu0 %v2607_v61  ;;  %2724 = vmatpush1.bf16.msra.mxu1 %v2723_v1  ;;  %v230_v61 = vld [vmem:[%s5772_s2 + $0x620] sm:$0xff]  ;;  %v249_v1 = vld [vmem:[%s5772_s2 + $0x6b8] sm:$0xff] }
  0xa8   :  { %2610 = vmatprep.subr.bf16.mxu0 %v2609_v2  ;;  %2726 = vmatprep.subr.bf16.mxu1 %v2725_v4  ;;  %v2631_v2 = vpack.c.bf16 %v236_v62, %v230_v61  ;;  %v2633_v3 = vpack.c.bf16 %v249_v1, %v243_v63  ;;  %v242_v4 = vld [vmem:[%s5772_s2 + $0x680] sm:$0xff]  ;;  %v344_v62 = vld [vmem:[%s5772_s2 + $0x9b0] sm:$0xff]  ;;  %v351_v63 = vld [vmem:[%s5772_s2 + $0x9e8] sm:$0xff] }
  0xa9   :  { %v2635_v8 = vpack.c.bf16 %v248_v5, %v242_v4  ;;  %v338_v61 = vld [vmem:[%s5772_s2 + $0x980] sm:$0xff]  ;;  %v357_v1 = vld [vmem:[%s5772_s2 + $0xa18] sm:$0xff]  ;;  %v356_v5 = vld [vmem:[%s5772_s2 + $0xa10] sm:$0xff] }
  0xaa   :  { %v350_v4 = vld [vmem:[%s5772_s2 + $0x9e0] sm:$0xff] }
  0xab   :  { %2612 = vmatpush1.bf16.msra.mxu0 %v2611_v11  ;;  %2728 = vmatpush1.bf16.msra.mxu1 %v2727_v14  ;;  %v254_v11 = vld [vmem:[%s5772_s2 + $0x6e0] sm:$0xff] }
  0xac   :  { %2614 = vmatprep.subr.bf16.mxu0 %v2613_v15  ;;  %2730 = vmatprep.subr.bf16.mxu1 %v2729_v17  ;;  %v266_v15 = vld [vmem:[%s5772_s2 + $0x740] sm:$0xff]  ;;  %v279_v17 = vld [vmem:[%s5772_s2 + $0x7a8] sm:$0xff] }
  0xad   :  { %v2643_v19 = vpack.c.bf16 %v272_v16, %v266_v15  ;;  %v2645_v20 = vpack.c.bf16 %v285_v18, %v279_v17  ;;  %v374_v15 = vld [vmem:[%s5772_s2 + $0xaa0] sm:$0xff]  ;;  %v380_v16 = vld [vmem:[%s5772_s2 + $0xad0] sm:$0xff]  ;;  %v387_v17 = vld [vmem:[%s5772_s2 + $0xb08] sm:$0xff] }
  0xae   :  { %v393_v18 = vld [vmem:[%s5772_s2 + $0xb38] sm:$0xff] }
  0xaf   :  { %2616 = vmatpush1.bf16.msra.mxu0 %v2615_v0  ;;  %2732 = vmatpush1.bf16.msra.mxu1 %v2731_v25  ;;  %v291_v0 = vld [vmem:[%s5772_s2 + $0x808] sm:$0xff] }
  0xb0   :  { %2618 = vmatprep.subr.bf16.mxu0 %v2617_v26  ;;  %2734 = vmatprep.subr.bf16.mxu1 %v2733_v28  ;;  %v2649_v25 = vpack.c.bf16 %v297_v23, %v291_v0  ;;  %v290_v26 = vld [vmem:[%s5772_s2 + $0x800] sm:$0xff]  ;;  %v303_v28 = vld [vmem:[%s5772_s2 + $0x868] sm:$0xff]  ;;  %v2683_v0 = vpack.c.bf16 %v392_v22, %v386_v21  ;;  %v970_v21 = vld [vmem:[%s5774_s3 + $0x298] sm:$0xff] }
  0xb1   :  { %v2651_v30 = vpack.c.bf16 %v296_v27, %v290_v26  ;;  %v2653_v33 = vpack.c.bf16 %v309_v29, %v303_v28  ;;  %v399_v23 = vld [vmem:[%s5772_s2 + $0xb68] sm:$0xf]  ;;  %v889_v26 = vld [vmem:[%s5774_s3 + $0x10] sm:$0xff]  ;;  %v898_v28 = vld [vmem:[%s5774_s3 + $0x58] sm:$0xff] }
  0xb2   :  { %v893_v27 = vld [vmem:[%s5774_s3 + $0x30] sm:$0xff]  ;;  %v902_v29 = vld [vmem:[%s5774_s3 + $0x78] sm:$0xff] }
  0xb3   :  { %2620 = vmatpush1.bf16.msra.mxu0 %v2619_v34  ;;  %2736 = vmatpush1.bf16.msra.mxu1 %v2735_v37  ;;  %v315_v34 = vld [vmem:[%s5772_s2 + $0x8c8] sm:$0xff]  ;;  %v321_v37 = vld [vmem:[%s5772_s2 + $0x8f8] sm:$0xff]  ;;  %v2867_v32 = vpack.c.bf16 %v893_v27, %v889_v26 }
  0xb4   :  { %2622 = vmatprep.subr.bf16.mxu0 %v2621_v38  ;;  %2738 = vmatprep.subr.bf16.mxu1 %v2737_v40  ;;  %v2745_v38 = vpack.c.bf16 %v1012_v36, %v1008_v35  ;;  %v1011_v40 = vld [vmem:[%s5774_s3 + $0x3e0] sm:$0xff]  ;;  %v2657_v44 = vpack.c.bf16 %v321_v37, %v315_v34  ;;  %v897_v34 = vld [vmem:[%s5774_s3 + $0x50] sm:$0xff]  ;;  %v906_v36 = vld [vmem:[%s5774_s3 + $0x98] sm:$0xff] }
  0xb5   :  { %v2747_v41 = vpack.c.bf16 %v1011_v40, %v1007_v39  ;;  %v901_v35 = vld [vmem:[%s5774_s3 + $0x70] sm:$0xff]  ;;  %v910_v37 = vld [vmem:[%s5774_s3 + $0xb8] sm:$0xff] }
  0xb6   :  { %v2873_v39 = vpack.c.bf16 %v910_v37, %v906_v36  ;;  %v905_v40 = vld [vmem:[%s5774_s3 + $0x90] sm:$0xff]  ;;  %v974_v22 = vld [vmem:[%s5774_s3 + $0x2b8] sm:$0xff] }
  0xb7   :  { %2624 = vmatpush1.bf16.msra.mxu0 %v2623_v46  ;;  %2740 = vmatpush1.bf16.msra.mxu1 %v2739_v48  ;;  %v1016_v46 = vld [vmem:[%s5774_s3 + $0x408] sm:$0xff]  ;;  %v978_v26 = vld [vmem:[%s5774_s3 + $0x2d8] sm:$0xff]  ;;  %v985_v36 = vld [vmem:[%s5774_s3 + $0x310] sm:$0xff] }
  0xb8   :  { %2626 = vmatprep.subr.bf16.mxu0 %v2625_v49  ;;  %2742 = vmatprep.subr.bf16.mxu1 %v2741_v51  ;;  %v327_v48 = vld [vmem:[%s5772_s2 + $0x928] sm:$0xff]  ;;  %v333_v49 = vld [vmem:[%s5772_s2 + $0x958] sm:$0xff]  ;;  %v2749_v50 = vpack.c.bf16 %v1020_v47, %v1016_v46  ;;  %v2659_v51 = vpack.c.bf16 %v320_v45, %v314_v43  ;;  %v913_v45 = vld [vmem:[%s5774_s3 + $0xd0] sm:$0xff] }
  0xb9   :  { %v2661_v52 = vpack.c.bf16 %v333_v49, %v327_v48  ;;  %v917_v46 = vld [vmem:[%s5774_s3 + $0xf0] sm:$0xff]  ;;  %v922_v47 = vld [vmem:[%s5774_s3 + $0x118] sm:$0xff] }
  0xba   :  { %v926_v48 = vld [vmem:[%s5774_s3 + $0x138] sm:$0xff]  ;;  %v2879_v49 = vpack.c.bf16 %v917_v46, %v913_v45  ;;  %v989_v37 = vld [vmem:[%s5774_s3 + $0x330] sm:$0xff] }
  0xbb   :  { %2628 = vmatpush1.bf16.msra.mxu0 %v2627_v56  ;;  %2744 = vmatpush1.bf16.msra.mxu1 %v2743_v57  ;;  %v345_v56 = vld [vmem:[%s5772_s2 + $0x9b8] sm:$0xff]  ;;  %v2663_v57 = vpack.c.bf16 %v332_v54, %v326_v53 }
  0xbc   :  { %2630 = vmatprep.subr.bf16.mxu0 %v2629_v60  ;;  %2746 = vmatprep.subr.bf16.mxu1 %v2745_v38  ;;  %v2665_v60 = vpack.c.bf16 %v345_v56, %v339_v55  ;;  %v2871_v38 = vpack.c.bf16 %v901_v35, %v897_v34  ;;  %v930_v53 = vld [vmem:[%s5774_s3 + $0x158] sm:$0xff] }
  0xbd   :  { %v934_v54 = vld [vmem:[%s5774_s3 + $0x178] sm:$0xff] }
  0xbe   :  { %804 = vmatmul.mubr.f32.vlgmr.msra.gmra.mrb[2].mxu0 %v3634_v10  ;;  %v273_v10 = vld [vmem:[%s5772_s2 + $0x778] sm:$0xff]  ;;  %v2885_v56 = vpack.c.bf16 %v934_v54, %v930_v53  ;;  %v1009_v53 = vld [vmem:[%s5774_s3 + $0x3d0] sm:$0xff] }
  0xbf   :  { %2632 = vmatpush1.bf16.msra.mxu0 %v2631_v2  ;;  %2225 = vmatprep.mubr.msk.f32.mxu0 %vm432_vm0, %v3737_v59  ;;  %v2639_v59 = vpack.c.bf16 %v260_v12, %v254_v11  ;;  %v2641_v14 = vpack.c.bf16 %v273_v10, %v267_v13  ;;  %v2667_v2 = vpack.c.bf16 %v344_v62, %v338_v61  ;;  %v362_v11 = vld [vmem:[%s5772_s2 + $0xa40] sm:$0xff]  ;;  %v368_v12 = vld [vmem:[%s5772_s2 + $0xa70] sm:$0xff]  ;;  %v375_v13 = vld [vmem:[%s5772_s2 + $0xaa8] sm:$0xff] }
  0xc0   :  { %2634 = vmatprep.subr.bf16.mxu0 %v2633_v3  ;;  %2748 = vmatpush1.bf16.msra.mxu1 %v2747_v41  ;;  %v2669_v3 = vpack.c.bf16 %v357_v1, %v351_v63  ;;  %v381_v10 = vld [vmem:[%s5772_s2 + $0xad8] sm:$0xff]  ;;  %v909_v41 = vld [vmem:[%s5774_s3 + $0xb0] sm:$0xff] }
  0xc1   :  { %2750 = vmatprep.subr.bf16.mxu1 %v2749_v50  ;;  %v2875_v43 = vpack.c.bf16 %v909_v41, %v905_v40  ;;  %v2881_v50 = vpack.c.bf16 %v926_v48, %v922_v47  ;;  %v938_v61 = vld [vmem:[%s5774_s3 + $0x198] sm:$0xff]  ;;  %v2915_v40 = vpack.c.bf16 %v989_v37, %v985_v36  ;;  %v1001_v47 = vld [vmem:[%s5774_s3 + $0x390] sm:$0xff]  ;;  %v1031_v37 = vld [vmem:[%s5774_s3 + $0x480] sm:$0xff] }
  0xc2   :  { %v942_v62 = vld [vmem:[%s5774_s3 + $0x1b8] sm:$0xff]  ;;  %v1005_v48 = vld [vmem:[%s5774_s3 + $0x3b0] sm:$0xff] }
  0xc3   :  { %2636 = vmatpush1.bf16.msra.mxu0 %v2635_v8  ;;  %v2671_v8 = vpack.c.bf16 %v356_v5, %v350_v4  ;;  %v2889_v1 = vpack.c.bf16 %v942_v62, %v938_v61  ;;  %v946_v4 = vld [vmem:[%s5774_s3 + $0x1d8] sm:$0xff]  ;;  %v1013_v54 = vld [vmem:[%s5774_s3 + $0x3f0] sm:$0xff]  ;;  %v402_v61 = vlaneseq }
  0xc4   :  { %2638 = vmatprep.subr.bf16.mxu0 %v2637_v9  ;;  %v2673_v9 = vpack.c.bf16 %v369_v7, %v363_v6  ;;  %v950_v5 = vld [vmem:[%s5774_s3 + $0x1f8] sm:$0xff] }
  0xc5   :  { %v2893_v7 = vpack.c.bf16 %v950_v5, %v946_v4  ;;  %v982_v27 = vld [vmem:[%s5774_s3 + $0x2f8] sm:$0xff]  ;;  %v4751_v62 = vshrl.u32 %v402_v61, 7 }
  0xc7   :  { %2640 = vmatpush1.bf16.msra.mxu0 %v2639_v59  ;;  %v2675_v59 = vpack.c.bf16 %v368_v12, %v362_v11  ;;  %v954_v11 = vld [vmem:[%s5774_s3 + $0x218] sm:$0xff]  ;;  %v416_v5 = vsub.s32 3, %v4751_v62 }
  0xc8   :  { %2642 = vmatprep.subr.bf16.mxu0 %v2641_v14  ;;  %v2677_v14 = vpack.c.bf16 %v381_v10, %v375_v13  ;;  %v958_v12 = vld [vmem:[%s5774_s3 + $0x238] sm:$0xff] }
  0xc9   :  { %v2897_v10 = vpack.c.bf16 %v958_v12, %v954_v11  ;;  %v1017_v12 = vld [vmem:[%s5774_s3 + $0x410] sm:$0xff] }
  0xcb   :  { %2644 = vmatpush1.bf16.msra.mxu0 %v2643_v19  ;;  %v2679_v19 = vpack.c.bf16 %v380_v16, %v374_v15  ;;  %v962_v15 = vld [vmem:[%s5774_s3 + $0x258] sm:$0xff] }
  0xcc   :  { %2646 = vmatprep.subr.bf16.mxu0 %v2645_v20  ;;  %v2681_v20 = vpack.c.bf16 %v393_v18, %v387_v17  ;;  %v966_v16 = vld [vmem:[%s5774_s3 + $0x278] sm:$0xff] }
  0xcd   :  { %v2901_v18 = vpack.c.bf16 %v966_v16, %v962_v15  ;;  %v1026_v15 = vld [vmem:[%s5774_s3 + $0x458] sm:$0xff] }
  0xce   :  { %v1030_v16 = vld [vmem:[%s5774_s3 + $0x478] sm:$0xff] }
  0xcf   :  { %2648 = vmatpush1.bf16.msra.mxu0 %v2647_v24  ;;  %v890_v24 = vld [vmem:[%s5774_s3 + $0x18] sm:$0xff] }
  0xd0   :  { %2650 = vmatprep.subr.bf16.mxu0 %v2649_v25  ;;  %v894_v25 = vld [vmem:[%s5774_s3 + $0x38] sm:$0xff] }
  0xd1   :  { %v2865_v31 = vpack.c.bf16 %v894_v25, %v890_v24  ;;  %v969_v24 = vld [vmem:[%s5774_s3 + $0x290] sm:$0xff] }
  0xd2   :  { %v973_v25 = vld [vmem:[%s5774_s3 + $0x2b0] sm:$0xff] }
  0xd3   :  { %2652 = vmatpush1.bf16.msra.mxu0 %v2651_v30  ;;  %v398_v30 = vld [vmem:[%s5772_s2 + $0xb60] sm:$0xf] }
  0xd4   :  { %2654 = vmatprep.subr.bf16.mxu0 %v2653_v33  ;;  %v2869_v33 = vpack.c.bf16 %v902_v29, %v898_v28  ;;  %v2907_v28 = vpack.c.bf16 %v973_v25, %v969_v24  ;;  %v2909_v29 = vpack.c.bf16 %v982_v27, %v978_v26  ;;  %v2933_v25 = vpack.c.bf16 %v1030_v16, %v1026_v15  ;;  %v1025_v26 = vld [vmem:[%s5774_s3 + $0x450] sm:$0xff]  ;;  %v1055_v15 = vld [vmem:[%s5774_s3 + $0x540] sm:$0xff] }
  0xd5   :  { %v1029_v27 = vld [vmem:[%s5774_s3 + $0x470] sm:$0xff]  ;;  %v1059_v16 = vld [vmem:[%s5774_s3 + $0x560] sm:$0xff] }
  0xd7   :  { %2656 = vmatpush1.bf16.msra.mxu0 %v2655_v42  ;;  %v914_v42 = vld [vmem:[%s5774_s3 + $0xd8] sm:$0xff] }
  0xd8   :  { %2658 = vmatprep.subr.bf16.mxu0 %v2657_v44 }
  0xdb   :  { %2660 = vmatpush1.bf16.msra.mxu0 %v2659_v51  ;;  %v921_v51 = vld [vmem:[%s5774_s3 + $0x110] sm:$0xff] }
  0xdc   :  { %2662 = vmatprep.subr.bf16.mxu0 %v2661_v52  ;;  %v925_v52 = vld [vmem:[%s5774_s3 + $0x130] sm:$0xff] }
  0xdd   :  { %v2883_v55 = vpack.c.bf16 %v925_v52, %v921_v51  ;;  %v2923_v51 = vpack.c.bf16 %v1005_v48, %v1001_v47  ;;  %v1039_v48 = vld [vmem:[%s5774_s3 + $0x4c0] sm:$0xff] }
  0xdf   :  { %2664 = vmatpush1.bf16.msra.mxu0 %v2663_v57  ;;  %v929_v57 = vld [vmem:[%s5774_s3 + $0x150] sm:$0xff] }
  0xe0   :  { %2666 = vmatprep.subr.bf16.mxu0 %v2665_v60  ;;  %v933_v60 = vld [vmem:[%s5774_s3 + $0x170] sm:$0xff] }
  0xe1   :  { %v2887_v63 = vpack.c.bf16 %v933_v60, %v929_v57  ;;  %v2927_v57 = vpack.c.bf16 %v1013_v54, %v1009_v53  ;;  %v1045_v53 = vld [vmem:[%s5774_s3 + $0x4f0] sm:$0xff]  ;;  %v1048_v54 = vld [vmem:[%s5774_s3 + $0x508] sm:$0xff] }
  0xe3   :  { %2668 = vmatpush1.bf16.msra.mxu0 %v2667_v2  ;;  %v937_v2 = vld [vmem:[%s5774_s3 + $0x190] sm:$0xff] }
  0xe4   :  { %2670 = vmatprep.subr.bf16.mxu0 %v2669_v3  ;;  %v941_v3 = vld [vmem:[%s5774_s3 + $0x1b0] sm:$0xff] }
  0xe5   :  { %v2891_v6 = vpack.c.bf16 %v941_v3, %v937_v2  ;;  %v4760_v2 = vsub.s32 1, %v4751_v62 }
  0xe7   :  { %2672 = vmatpush1.bf16.msra.mxu0 %v2671_v8  ;;  %v945_v8 = vld [vmem:[%s5774_s3 + $0x1d0] sm:$0xff] }
  0xe8   :  { %2674 = vmatprep.subr.bf16.mxu0 %v2673_v9  ;;  %v949_v9 = vld [vmem:[%s5774_s3 + $0x1f0] sm:$0xff] }
  0xe9   :  { %v2895_v13 = vpack.c.bf16 %v949_v9, %v945_v8  ;;  %v1019_v8 = vld [vmem:[%s5774_s3 + $0x420] sm:$0xff] }
  0xeb   :  { %2676 = vmatpush1.bf16.msra.mxu0 %v2675_v59  ;;  %v953_v59 = vld [vmem:[%s5774_s3 + $0x210] sm:$0xff] }
  0xec   :  { %2678 = vmatprep.subr.bf16.mxu0 %v2677_v14  ;;  %v957_v14 = vld [vmem:[%s5774_s3 + $0x230] sm:$0xff] }
  0xed   :  { %v2899_v17 = vpack.c.bf16 %v957_v14, %v953_v59  ;;  %v1028_v14 = vld [vmem:[%s5774_s3 + $0x468] sm:$0xff] }
  0xef   :  { %2680 = vmatpush1.bf16.msra.mxu0 %v2679_v19  ;;  %v961_v19 = vld [vmem:[%s5774_s3 + $0x250] sm:$0xff] }
  0xf0   :  { %2682 = vmatprep.subr.bf16.mxu0 %v2681_v20  ;;  %v965_v20 = vld [vmem:[%s5774_s3 + $0x270] sm:$0xff] }
  0xf3   :  { %2684 = vmatpush1.bf16.msra.mxu0 %v2683_v0  ;;  %v2903_v0 = vpack.c.bf16 %v965_v20, %v961_v19 }
  0xf4   :  { %2223 = vmatprep.subr.msk.mxu0 %vm436_vm1, %v399_v23  ;;  %v2905_v23 = vpack.c.bf16 %v974_v22, %v970_v21  ;;  %v1023_v22 = vld [vmem:[%s5774_s3 + $0x440] sm:$0xff] }
  0xf7   :  { %2224 = vmatpush1.msk.msra.mxu0 %vm436_vm1, %v398_v30  ;;  %v977_v30 = vld [vmem:[%s5774_s3 + $0x2d0] sm:$0xff] }
  0xf8   :  { %875 = vmatmul.mubr.f32.vlgmr.msra.gmra.mrb[2].mxu0 %v3987_v58  ;;  %2866 = vmatprep.subr.bf16.mxu0 %v2865_v31  ;;  %v918_v58 = vld [vmem:[%s5774_s3 + $0xf8] sm:$0xff]  ;;  %v981_v31 = vld [vmem:[%s5774_s3 + $0x2f0] sm:$0xff] }
  0xf9   :  { %2868 = vmatpush1.bf16.msra.mxu0 %v2867_v32  ;;  %v2877_v44 = vpack.c.bf16 %v918_v58, %v914_v42  ;;  %v986_v32 = vld [vmem:[%s5774_s3 + $0x318] sm:$0xff]  ;;  %v2911_v34 = vpack.c.bf16 %v981_v31, %v977_v30  ;;  %v993_v42 = vld [vmem:[%s5774_s3 + $0x350] sm:$0xff]  ;;  %v1036_v31 = vld [vmem:[%s5774_s3 + $0x4a8] sm:$0xff] }
  0xfa   :  { %2870 = vmatprep.subr.bf16.mxu0 %v2869_v33  ;;  %v990_v33 = vld [vmem:[%s5774_s3 + $0x338] sm:$0xff]  ;;  %v997_v58 = vld [vmem:[%s5774_s3 + $0x370] sm:$0xff] }
  0xfb   :  { %v2913_v35 = vpack.c.bf16 %v990_v33, %v986_v32  ;;  %v2919_v45 = vpack.c.bf16 %v997_v58, %v993_v42  ;;  %v1034_v32 = vld [vmem:[%s5774_s3 + $0x498] sm:$0xff]  ;;  %v1037_v42 = vld [vmem:[%s5774_s3 + $0x4b0] sm:$0xff]  ;;  %v1040_v58 = vld [vmem:[%s5774_s3 + $0x4c8] sm:$0xff] }
  0xfc   :  { %v1038_v33 = vld [vmem:[%s5774_s3 + $0x4b8] sm:$0xff] }
  0xfd   :  { %2872 = vmatpush1.bf16.msra.mxu0 %v2871_v38  ;;  %v994_v38 = vld [vmem:[%s5774_s3 + $0x358] sm:$0xff] }
  0xfe   :  { %2874 = vmatprep.subr.bf16.mxu0 %v2873_v39  ;;  %v998_v39 = vld [vmem:[%s5774_s3 + $0x378] sm:$0xff] }
  0xff   :  { %v2917_v41 = vpack.c.bf16 %v998_v39, %v994_v38  ;;  %v1035_v38 = vld [vmem:[%s5774_s3 + $0x4a0] sm:$0xff] }
 0x101   :  { %2876 = vmatpush1.bf16.msra.mxu0 %v2875_v43  ;;  %v1002_v43 = vld [vmem:[%s5774_s3 + $0x398] sm:$0xff] }
 0x102   :  { %2878 = vmatprep.subr.bf16.mxu0 %v2877_v44  ;;  %v1006_v44 = vld [vmem:[%s5774_s3 + $0x3b8] sm:$0xff] }
 0x103   :  { %v2921_v46 = vpack.c.bf16 %v1006_v44, %v1002_v43  ;;  %v1044_v43 = vld [vmem:[%s5774_s3 + $0x4e8] sm:$0xff]  ;;  %v1042_v44 = vld [vmem:[%s5774_s3 + $0x4d8] sm:$0xff] }
 0x105   :  { %2880 = vmatpush1.bf16.msra.mxu0 %v2879_v49  ;;  %v1010_v49 = vld [vmem:[%s5774_s3 + $0x3d8] sm:$0xff] }
 0x106   :  { %2882 = vmatprep.subr.bf16.mxu0 %v2881_v50  ;;  %v1014_v50 = vld [vmem:[%s5774_s3 + $0x3f8] sm:$0xff] }
 0x107   :  { %v2925_v52 = vpack.c.bf16 %v1014_v50, %v1010_v49  ;;  %v1043_v49 = vld [vmem:[%s5774_s3 + $0x4e0] sm:$0xff]  ;;  %v2761_v50 = vpack.c.bf16 %v1044_v43, %v1040_v58  ;;  %v1073_v58 = vld [vmem:[%s5774_s3 + $0x5d0] sm:$0xff] }
 0x108   :  { %v1077_v43 = vld [vmem:[%s5774_s3 + $0x5f0] sm:$0xff] }
 0x109   :  { %2884 = vmatpush1.bf16.msra.mxu0 %v2883_v55  ;;  %v1018_v55 = vld [vmem:[%s5774_s3 + $0x418] sm:$0xff] }
 0x10a   :  { %2886 = vmatprep.subr.bf16.mxu0 %v2885_v56  ;;  %v1022_v56 = vld [vmem:[%s5774_s3 + $0x438] sm:$0xff] }
 0x10b   :  { %v2929_v60 = vpack.c.bf16 %v1022_v56, %v1018_v55  ;;  %v1052_v55 = vld [vmem:[%s5774_s3 + $0x528] sm:$0xff]  ;;  %v1050_v56 = vld [vmem:[%s5774_s3 + $0x518] sm:$0xff] }
 0x10d   :  { %2888 = vmatpush1.bf16.msra.mxu0 %v2887_v63  ;;  %v404_v63 = vsub.s32 0, %v4751_v62 }
 0x10e   :  { %2890 = vmatprep.subr.bf16.mxu0 %v2889_v1  ;;  %v4757_v1 = vld [vmem:[%s5775_s5] ss:$4 sm:$0x3f] }
 0x10f   :  { %v405_v3 = vrot.slane %v4757_v1, %v404_v63  ;;  %v409_v4 = vrot.slane %v4757_v1, %v4760_v2 }
 0x111   :  { %2892 = vmatpush1.bf16.msra.mxu0 %v2891_v6 }
 0x112   :  { %2894 = vmatprep.subr.bf16.mxu0 %v2893_v7  ;;  %v1015_v7 = vld [vmem:[%s5774_s3 + $0x400] sm:$0xff] }
 0x113   :  { %v2751_v19 = vpack.c.bf16 %v1019_v8, %v1015_v7  ;;  %v1049_v8 = vld [vmem:[%s5774_s3 + $0x510] sm:$0xff] }
 0x115   :  { %2896 = vmatpush1.bf16.msra.mxu0 %v2895_v13  ;;  %v1021_v13 = vld [vmem:[%s5774_s3 + $0x430] sm:$0xff] }
 0x116   :  { %2898 = vmatprep.subr.bf16.mxu0 %v2897_v10  ;;  %v1024_v10 = vld [vmem:[%s5774_s3 + $0x448] sm:$0xff]  ;;  %v2931_v20 = vpack.c.bf16 %v1021_v13, %v1017_v12  ;;  %v1058_v13 = vld [vmem:[%s5774_s3 + $0x558] sm:$0xff] }
 0x117   :  { %v2753_v24 = vpack.c.bf16 %v1028_v14, %v1024_v10  ;;  %v1060_v12 = vld [vmem:[%s5774_s3 + $0x568] sm:$0xff]  ;;  %v1062_v10 = vld [vmem:[%s5774_s3 + $0x578] sm:$0xff] }
 0x119   :  { %2900 = vmatpush1.bf16.msra.mxu0 %v2899_v17  ;;  %v417_v17 = vrot.slane %v4757_v1, %v416_v5 }
 0x11a   :  { %2902 = vmatprep.subr.bf16.mxu0 %v2901_v18 }
 0x11d   :  { %2904 = vmatpush1.bf16.msra.mxu0 %v2903_v0  ;;  %v1027_v0 = vld [vmem:[%s5774_s3 + $0x460] sm:$0xff] }
 0x11e   :  { %2906 = vmatprep.subr.bf16.mxu0 %v2905_v23 }
 0x121   :  { %2908 = vmatpush1.bf16.msra.mxu0 %v2907_v28 }
 0x122   :  { %2910 = vmatprep.subr.bf16.mxu0 %v2909_v29  ;;  %v1032_v29 = vld [vmem:[%s5774_s3 + $0x488] sm:$0xff] }
 0x123   :  { %v2757_v39 = vpack.c.bf16 %v1036_v31, %v1032_v29  ;;  %v1065_v31 = vld [vmem:[%s5774_s3 + $0x590] sm:$0xff] }
 0x125   :  { %2912 = vmatpush1.bf16.msra.mxu0 %v2911_v34  ;;  %v2755_v34 = vpack.c.bf16 %v1027_v0, %v1023_v22  ;;  %v1064_v22 = vld [vmem:[%s5774_s3 + $0x588] sm:$0xff] }
 0x126   :  { %2914 = vmatprep.subr.bf16.mxu0 %v2913_v35  ;;  %v2935_v35 = vpack.c.bf16 %v1029_v27, %v1025_v26  ;;  %v1068_v0 = vld [vmem:[%s5774_s3 + $0x5a8] sm:$0xff]  ;;  %v1063_v27 = vld [vmem:[%s5774_s3 + $0x580] sm:$0xff] }
 0x127   :  { %v2773_v29 = vpack.c.bf16 %v1068_v0, %v1064_v22  ;;  %v1097_v22 = vld [vmem:[%s5774_s3 + $0x690] sm:$0xff] }
 0x128   :  { %v1101_v0 = vld [vmem:[%s5774_s3 + $0x6b0] sm:$0xff] }
 0x129   :  { %2916 = vmatpush1.bf16.msra.mxu0 %v2915_v40  ;;  %v2937_v40 = vpack.c.bf16 %v1038_v33, %v1034_v32  ;;  %v1069_v32 = vld [vmem:[%s5774_s3 + $0x5b0] sm:$0xff]  ;;  %v1072_v33 = vld [vmem:[%s5774_s3 + $0x5c8] sm:$0xff] }
 0x12a   :  { %2918 = vmatprep.subr.bf16.mxu0 %v2917_v41  ;;  %v1033_v41 = vld [vmem:[%s5774_s3 + $0x490] sm:$0xff] }
 0x12b   :  { %v2939_v47 = vpack.c.bf16 %v1037_v42, %v1033_v41 }
 0x12d   :  { %2920 = vmatpush1.bf16.msra.mxu0 %v2919_v45  ;;  %v1046_v45 = vld [vmem:[%s5774_s3 + $0x4f8] sm:$0xff] }
 0x12e   :  { %2922 = vmatprep.subr.bf16.mxu0 %v2921_v46  ;;  %v2759_v46 = vpack.c.bf16 %v1035_v38, %v1031_v37  ;;  %v2955_v38 = vpack.c.bf16 %v1069_v32, %v1065_v31 }
 0x131   :  { %2924 = vmatpush1.bf16.msra.mxu0 %v2923_v51  ;;  %v2941_v51 = vpack.c.bf16 %v1046_v45, %v1042_v44  ;;  %v1080_v44 = vld [vmem:[%s5774_s3 + $0x608] sm:$0xff] }
 0x132   :  { %2926 = vmatprep.subr.bf16.mxu0 %v2925_v52  ;;  %v1041_v52 = vld [vmem:[%s5774_s3 + $0x4d0] sm:$0xff]  ;;  %v1084_v45 = vld [vmem:[%s5774_s3 + $0x628] sm:$0xff] }
 0x133   :  { %v2943_v61 = vpack.c.bf16 %v1045_v53, %v1041_v52  ;;  %v2781_v52 = vpack.c.bf16 %v1084_v45, %v1080_v44  ;;  %v1113_v44 = vld [vmem:[%s5774_s3 + $0x710] sm:$0xff] }
 0x134   :  { %v1117_v45 = vld [vmem:[%s5774_s3 + $0x730] sm:$0xff] }
 0x135   :  { %2928 = vmatpush1.bf16.msra.mxu0 %v2927_v57  ;;  %v1054_v57 = vld [vmem:[%s5774_s3 + $0x538] sm:$0xff] }
 0x136   :  { %2930 = vmatprep.subr.bf16.mxu0 %v2929_v60  ;;  %v2763_v60 = vpack.c.bf16 %v1043_v49, %v1039_v48  ;;  %v2945_v7 = vpack.c.bf16 %v1054_v57, %v1050_v56  ;;  %v2959_v49 = vpack.c.bf16 %v1077_v43, %v1073_v58  ;;  %v1088_v56 = vld [vmem:[%s5774_s3 + $0x648] sm:$0xff] }
 0x137   :  { %v1092_v57 = vld [vmem:[%s5774_s3 + $0x668] sm:$0xff] }
 0x151   :  { %v592_v6 = vpop.f32.mrb[0].mxu0 }
 0x152   :  { %v3136_v9 = vadd.f32 %v592_v6, %v405_v3  ;;  %v594_v11 = vpop.f32.mrb[1].mxu0  ;;  %v1047_v3 = vld [vmem:[%s5774_s3 + $0x500] sm:$0xff]  ;;  %v2765_v6 = vpack.c.bf16 %v1052_v55, %v1048_v54  ;;  %v1081_v54 = vld [vmem:[%s5774_s3 + $0x610] sm:$0xff] }
 0x153   :  { %v3137_v59 = vadd.f32 %v594_v11, %v409_v4  ;;  %v1051_v4 = vld [vmem:[%s5774_s3 + $0x520] sm:$0xff]  ;;  %v1056_v11 = vld [vmem:[%s5774_s3 + $0x548] sm:$0xff]  ;;  %v1085_v55 = vld [vmem:[%s5774_s3 + $0x630] sm:$0xff] }
 0x154   :  { %v881_v23 = vmax.f32 %v3136_v9, 0.0  ;;  %v1053_v9 = vld [vmem:[%s5774_s3 + $0x530] sm:$0xff] }
 0x155   :  { %v882_v18 = vmax.f32 %v3137_v59, 0.0  ;;  %v4795_v21 = vpop.f32.mrb[0].mxu1  ;;  %v2767_v59 = vpack.c.bf16 %v1051_v4, %v1047_v3  ;;  %v2947_v14 = vpack.c.bf16 %v1053_v9, %v1049_v8  ;;  %v2963_v4 = vpack.c.bf16 %v1085_v55, %v1081_v54 }
 0x156   :  { %v736_v28 = vpop.f32.mrb[1].mxu1  ;;  %v2785_v8 = vpack.c.bf16 %v1092_v57, %v1088_v56  ;;  %v1121_v56 = vld [vmem:[%s5774_s3 + $0x750] sm:$0xff] }
 0x157   :  { %1355 = vmatprep.mubr.f32.mxu1 %v882_v18  ;;  %1568 = vmatprep.mubr.f32.mxu0 %v882_v18  ;;  %v3139_v30 = vadd.f32 %v736_v28, %v417_v17  ;;  %v2769_v17 = vpack.c.bf16 %v1060_v12, %v1056_v11  ;;  %v2949_v18 = vpack.c.bf16 %v1062_v10, %v1058_v13  ;;  %v1067_v28 = vld [vmem:[%s5774_s3 + $0x5a0] sm:$0xff]  ;;  %v1089_v11 = vld [vmem:[%s5774_s3 + $0x650] sm:$0xff]  ;;  %v1096_v13 = vld [vmem:[%s5774_s3 + $0x688] sm:$0xff] }
 0x158   :  { %1356 = vmatmul.mubr.f32.vlgmr.msra.gmra.mrb[2].mxu1 %v881_v23  ;;  %1569 = vmatmul.mubr.f32.vlgmr.msra.gmra.mrb[4].mxu0 %v881_v23  ;;  %v1066_v23 = vld [vmem:[%s5774_s3 + $0x598] sm:$0xff]  ;;  %v2775_v37 = vpack.c.bf16 %v1067_v28, %v1063_v27  ;;  %v1093_v12 = vld [vmem:[%s5774_s3 + $0x670] sm:$0xff]  ;;  %v1100_v10 = vld [vmem:[%s5774_s3 + $0x6a8] sm:$0xff]  ;;  %v2971_v28 = vpack.c.bf16 %v1101_v0, %v1097_v22 }
 0x159   :  { %2752 = vmatpush1.bf16.msra.mxu1 %v2751_v19  ;;  %2932 = vmatpush1.bf16.msra.mxu0 %v2931_v20  ;;  %v884_v36 = vmax.f32 %v3139_v30, 0.0  ;;  %v1057_v19 = vld [vmem:[%s5774_s3 + $0x550] sm:$0xff]  ;;  %v1139_v22 = vld [vmem:[%s5774_s3 + $0x7e0] sm:$0xff] }
 0x15a   :  { %2754 = vmatprep.subr.bf16.mxu1 %v2753_v24  ;;  %2934 = vmatprep.subr.bf16.mxu0 %v2933_v25  ;;  %v1061_v20 = vld [vmem:[%s5774_s3 + $0x570] sm:$0xff]  ;;  %v1070_v24 = vld [vmem:[%s5774_s3 + $0x5b8] sm:$0xff]  ;;  %v2771_v25 = vpack.c.bf16 %v1059_v16, %v1055_v15  ;;  %v2967_v16 = vpack.c.bf16 %v1093_v12, %v1089_v11  ;;  %v412_v11 = vsub.s32 2, %v4751_v62 }
 0x15b   :  { %1426 = vmatprep.mubr.f32.mxu1 %v884_v36  ;;  %1639 = vmatprep.mubr.f32.mxu0 %v884_v36  ;;  %v2951_v26 = vpack.c.bf16 %v1061_v20, %v1057_v19  ;;  %v2953_v30 = vpack.c.bf16 %v1070_v24, %v1066_v23  ;;  %v1078_v36 = vld [vmem:[%s5774_s3 + $0x5f8] sm:$0xff]  ;;  %v2789_v19 = vpack.c.bf16 %v1100_v10, %v1096_v13  ;;  %v1104_v23 = vld [vmem:[%s5774_s3 + $0x6c8] sm:$0xff]  ;;  %v1125_v57 = vld [vmem:[%s5774_s3 + $0x770] sm:$0xff] }
 0x15c   :  { %v1108_v24 = vld [vmem:[%s5774_s3 + $0x6e8] sm:$0xff]  ;;  %v1129_v10 = vld [vmem:[%s5774_s3 + $0x790] sm:$0xff]  ;;  %v413_v0 = vrot.slane %v4757_v1, %v412_v11 }
 0x15d   :  { %2756 = vmatpush1.bf16.msra.mxu1 %v2755_v34  ;;  %2936 = vmatpush1.bf16.msra.mxu0 %v2935_v35  ;;  %v1076_v34 = vld [vmem:[%s5774_s3 + $0x5e8] sm:$0xff]  ;;  %v1074_v35 = vld [vmem:[%s5774_s3 + $0x5d8] sm:$0xff]  ;;  %v2793_v31 = vpack.c.bf16 %v1108_v24, %v1104_v23 }
 0x15e   :  { %2758 = vmatprep.subr.bf16.mxu1 %v2757_v39  ;;  %2938 = vmatprep.subr.bf16.mxu0 %v2937_v40  ;;  %v1071_v39 = vld [vmem:[%s5774_s3 + $0x5c0] sm:$0xff]  ;;  %v2777_v41 = vpack.c.bf16 %v1076_v34, %v1072_v33  ;;  %v2957_v42 = vpack.c.bf16 %v1078_v36, %v1074_v35  ;;  %v1105_v33 = vld [vmem:[%s5774_s3 + $0x6d0] sm:$0xff]  ;;  %v1112_v35 = vld [vmem:[%s5774_s3 + $0x708] sm:$0xff] }
 0x15f   :  { %v1075_v40 = vld [vmem:[%s5774_s3 + $0x5e0] sm:$0xff]  ;;  %v1109_v34 = vld [vmem:[%s5774_s3 + $0x6f0] sm:$0xff]  ;;  %v1116_v36 = vld [vmem:[%s5774_s3 + $0x728] sm:$0xff] }
 0x160   :  { %v2779_v48 = vpack.c.bf16 %v1075_v40, %v1071_v39  ;;  %v2975_v40 = vpack.c.bf16 %v1109_v34, %v1105_v33  ;;  %v2797_v58 = vpack.c.bf16 %v1116_v36, %v1112_v35  ;;  %v1143_v33 = vld [vmem:[%s5774_s3 + $0x800] sm:$0xff]  ;;  %v3138_v35 = vadd.f32 %v4795_v21, %v413_v0  ;;  %v1156_v21 = vld [vmem:[%s5774_s3 + $0x868] sm:$0xff]  ;;  %v1182_v0 = vld [vmem:[%s5774_s3 + $0x938] sm:$0xff] }
 0x161   :  { %2760 = vmatpush1.bf16.msra.mxu1 %v2759_v46  ;;  %2940 = vmatpush1.bf16.msra.mxu0 %v2939_v47  ;;  %v1082_v46 = vld [vmem:[%s5774_s3 + $0x618] sm:$0xff]  ;;  %v1147_v34 = vld [vmem:[%s5774_s3 + $0x820] sm:$0xff] }
 0x162   :  { %2762 = vmatprep.subr.bf16.mxu1 %v2761_v50  ;;  %2942 = vmatprep.subr.bf16.mxu0 %v2941_v51  ;;  %v1086_v47 = vld [vmem:[%s5774_s3 + $0x638] sm:$0xff]  ;;  %v1079_v50 = vld [vmem:[%s5774_s3 + $0x600] sm:$0xff] }
 0x163   :  { %v1083_v51 = vld [vmem:[%s5774_s3 + $0x620] sm:$0xff]  ;;  %v2961_v53 = vpack.c.bf16 %v1086_v47, %v1082_v46  ;;  %v1120_v46 = vld [vmem:[%s5774_s3 + $0x748] sm:$0xff] }
 0x164   :  { %v2783_v3 = vpack.c.bf16 %v1083_v51, %v1079_v50  ;;  %v1124_v47 = vld [vmem:[%s5774_s3 + $0x768] sm:$0xff]  ;;  %v2979_v51 = vpack.c.bf16 %v1117_v45, %v1113_v44  ;;  %v1151_v44 = vld [vmem:[%s5774_s3 + $0x840] sm:$0xff] }
 0x165   :  { %2764 = vmatpush1.bf16.msra.mxu1 %v2763_v60  ;;  %2944 = vmatpush1.bf16.msra.mxu0 %v2943_v61  ;;  %v1090_v60 = vld [vmem:[%s5774_s3 + $0x658] sm:$0xff]  ;;  %v2801_v54 = vpack.c.bf16 %v1124_v47, %v1120_v46  ;;  %v1155_v45 = vld [vmem:[%s5774_s3 + $0x860] sm:$0xff]  ;;  %v883_v46 = vmax.f32 %v3138_v35, 0.0 }
 0x166   :  { %2766 = vmatprep.subr.bf16.mxu1 %v2765_v6  ;;  %2946 = vmatprep.subr.bf16.mxu0 %v2945_v7  ;;  %v1094_v61 = vld [vmem:[%s5774_s3 + $0x678] sm:$0xff]  ;;  %v1087_v6 = vld [vmem:[%s5774_s3 + $0x640] sm:$0xff] }
 0x167   :  { %v1091_v7 = vld [vmem:[%s5774_s3 + $0x660] sm:$0xff]  ;;  %v2965_v9 = vpack.c.bf16 %v1094_v61, %v1090_v60  ;;  %v1128_v60 = vld [vmem:[%s5774_s3 + $0x788] sm:$0xff] }
 0x168   :  { %v2787_v15 = vpack.c.bf16 %v1091_v7, %v1087_v6  ;;  %v1132_v61 = vld [vmem:[%s5774_s3 + $0x7a8] sm:$0xff]  ;;  %v2983_v7 = vpack.c.bf16 %v1125_v57, %v1121_v56  ;;  %v1159_v57 = vld [vmem:[%s5774_s3 + $0x880] sm:$0xff] }
 0x169   :  { %2768 = vmatpush1.bf16.msra.mxu1 %v2767_v59  ;;  %2948 = vmatpush1.bf16.msra.mxu0 %v2947_v14  ;;  %v1098_v59 = vld [vmem:[%s5774_s3 + $0x698] sm:$0xff]  ;;  %v2805_v12 = vpack.c.bf16 %v1132_v61, %v1128_v60  ;;  %v1163_v60 = vld [vmem:[%s5774_s3 + $0x8a0] sm:$0xff] }
 0x16a   :  { %2770 = vmatprep.subr.bf16.mxu1 %v2769_v17  ;;  %2950 = vmatprep.subr.bf16.mxu0 %v2949_v18  ;;  %v1102_v14 = vld [vmem:[%s5774_s3 + $0x6b8] sm:$0xff]  ;;  %v1095_v17 = vld [vmem:[%s5774_s3 + $0x680] sm:$0xff] }
 0x16b   :  { %v1099_v18 = vld [vmem:[%s5774_s3 + $0x6a0] sm:$0xff]  ;;  %v2969_v20 = vpack.c.bf16 %v1102_v14, %v1098_v59  ;;  %v1133_v59 = vld [vmem:[%s5774_s3 + $0x7b0] sm:$0xff]  ;;  %v1136_v14 = vld [vmem:[%s5774_s3 + $0x7c8] sm:$0xff] }
 0x16c   :  { %v2791_v27 = vpack.c.bf16 %v1099_v18, %v1095_v17  ;;  %v1142_v17 = vld [vmem:[%s5774_s3 + $0x7f8] sm:$0xff] }
 0x16d   :  { %2772 = vmatpush1.bf16.msra.mxu1 %v2771_v25  ;;  %2952 = vmatpush1.bf16.msra.mxu0 %v2951_v26  ;;  %v1106_v25 = vld [vmem:[%s5774_s3 + $0x6d8] sm:$0xff] }
 0x16e   :  { %2774 = vmatprep.subr.bf16.mxu1 %v2773_v29  ;;  %2954 = vmatprep.subr.bf16.mxu0 %v2953_v30  ;;  %v1110_v26 = vld [vmem:[%s5774_s3 + $0x6f8] sm:$0xff]  ;;  %v1103_v29 = vld [vmem:[%s5774_s3 + $0x6c0] sm:$0xff] }
 0x16f   :  { %v1107_v30 = vld [vmem:[%s5774_s3 + $0x6e0] sm:$0xff]  ;;  %v2973_v32 = vpack.c.bf16 %v1110_v26, %v1106_v25  ;;  %v1137_v25 = vld [vmem:[%s5774_s3 + $0x7d0] sm:$0xff] }
 0x170   :  { %v2795_v39 = vpack.c.bf16 %v1107_v30, %v1103_v29  ;;  %v1141_v26 = vld [vmem:[%s5774_s3 + $0x7f0] sm:$0xff]  ;;  %v1146_v29 = vld [vmem:[%s5774_s3 + $0x818] sm:$0xff] }
 0x171   :  { %2776 = vmatpush1.bf16.msra.mxu1 %v2775_v37  ;;  %2956 = vmatpush1.bf16.msra.mxu0 %v2955_v38  ;;  %v1114_v37 = vld [vmem:[%s5774_s3 + $0x718] sm:$0xff] }
 0x172   :  { %2778 = vmatprep.subr.bf16.mxu1 %v2777_v41  ;;  %2958 = vmatprep.subr.bf16.mxu0 %v2957_v42  ;;  %v1118_v38 = vld [vmem:[%s5774_s3 + $0x738] sm:$0xff]  ;;  %v1111_v41 = vld [vmem:[%s5774_s3 + $0x700] sm:$0xff] }
 0x173   :  { %v1115_v42 = vld [vmem:[%s5774_s3 + $0x720] sm:$0xff]  ;;  %v2977_v43 = vpack.c.bf16 %v1118_v38, %v1114_v37  ;;  %v1150_v30 = vld [vmem:[%s5774_s3 + $0x838] sm:$0xff]  ;;  %v1145_v38 = vld [vmem:[%s5774_s3 + $0x810] sm:$0xff] }
 0x174   :  { %v2799_v50 = vpack.c.bf16 %v1115_v42, %v1111_v41  ;;  %v2993_v37 = vpack.c.bf16 %v1150_v30, %v1146_v29  ;;  %v1154_v41 = vld [vmem:[%s5774_s3 + $0x858] sm:$0xff]  ;;  %v1177_v29 = vld [vmem:[%s5774_s3 + $0x910] sm:$0xff] }
 0x175   :  { %2780 = vmatpush1.bf16.msra.mxu1 %v2779_v48  ;;  %2960 = vmatpush1.bf16.msra.mxu0 %v2959_v49  ;;  %v1122_v48 = vld [vmem:[%s5774_s3 + $0x758] sm:$0xff]  ;;  %v1181_v30 = vld [vmem:[%s5774_s3 + $0x930] sm:$0xff] }
 0x176   :  { %2782 = vmatprep.subr.bf16.mxu1 %v2781_v52  ;;  %2962 = vmatprep.subr.bf16.mxu0 %v2961_v53  ;;  %v1126_v49 = vld [vmem:[%s5774_s3 + $0x778] sm:$0xff]  ;;  %v1119_v52 = vld [vmem:[%s5774_s3 + $0x740] sm:$0xff] }
 0x177   :  { %v1123_v53 = vld [vmem:[%s5774_s3 + $0x760] sm:$0xff]  ;;  %v2981_v55 = vpack.c.bf16 %v1126_v49, %v1122_v48  ;;  %v1158_v42 = vld [vmem:[%s5774_s3 + $0x878] sm:$0xff]  ;;  %v1153_v49 = vld [vmem:[%s5774_s3 + $0x850] sm:$0xff] }
 0x178   :  { %v2803_v6 = vpack.c.bf16 %v1123_v53, %v1119_v52  ;;  %v2997_v48 = vpack.c.bf16 %v1158_v42, %v1154_v41  ;;  %v1164_v52 = vld [vmem:[%s5774_s3 + $0x8a8] sm:$0xff]  ;;  %v1162_v53 = vld [vmem:[%s5774_s3 + $0x898] sm:$0xff]  ;;  %v1189_v41 = vld [vmem:[%s5774_s3 + $0x970] sm:$0xff] }
 0x179   :  { %2784 = vmatpush1.bf16.msra.mxu1 %v2783_v3  ;;  %2964 = vmatpush1.bf16.msra.mxu0 %v2963_v4  ;;  %v1130_v3 = vld [vmem:[%s5774_s3 + $0x798] sm:$0xff]  ;;  %v1192_v42 = vld [vmem:[%s5774_s3 + $0x988] sm:$0xff] }
 0x17a   :  { %2786 = vmatprep.subr.bf16.mxu1 %v2785_v8  ;;  %2966 = vmatprep.subr.bf16.mxu0 %v2965_v9  ;;  %v1134_v4 = vld [vmem:[%s5774_s3 + $0x7b8] sm:$0xff]  ;;  %v1127_v8 = vld [vmem:[%s5774_s3 + $0x780] sm:$0xff] }
 0x17b   :  { %v1131_v9 = vld [vmem:[%s5774_s3 + $0x7a0] sm:$0xff]  ;;  %v2985_v13 = vpack.c.bf16 %v1134_v4, %v1130_v3  ;;  %v1161_v4 = vld [vmem:[%s5774_s3 + $0x890] sm:$0xff] }
 0x17c   :  { %v2807_v18 = vpack.c.bf16 %v1131_v9, %v1127_v8  ;;  %v1172_v8 = vld [vmem:[%s5774_s3 + $0x8e8] sm:$0xff]  ;;  %v1170_v9 = vld [vmem:[%s5774_s3 + $0x8d8] sm:$0xff] }
 0x17d   :  { %2788 = vmatpush1.bf16.msra.mxu1 %v2787_v15  ;;  %2968 = vmatpush1.bf16.msra.mxu0 %v2967_v16  ;;  %v1140_v15 = vld [vmem:[%s5774_s3 + $0x7e8] sm:$0xff]  ;;  %v1138_v16 = vld [vmem:[%s5774_s3 + $0x7d8] sm:$0xff] }
 0x17e   :  { %2790 = vmatprep.subr.bf16.mxu1 %v2789_v19  ;;  %2970 = vmatprep.subr.bf16.mxu0 %v2969_v20  ;;  %v2987_v19 = vpack.c.bf16 %v1133_v59, %v1129_v10  ;;  %v1135_v20 = vld [vmem:[%s5774_s3 + $0x7c0] sm:$0xff]  ;;  %v2809_v23 = vpack.c.bf16 %v1140_v15, %v1136_v14  ;;  %v2989_v24 = vpack.c.bf16 %v1142_v17, %v1138_v16  ;;  %v1169_v17 = vld [vmem:[%s5774_s3 + $0x8d0] sm:$0xff] }
 0x17f   :  { %v1167_v59 = vld [vmem:[%s5774_s3 + $0x8c0] sm:$0xff] }
 0x180   :  { %v1171_v14 = vld [vmem:[%s5774_s3 + $0x8e0] sm:$0xff] }
 0x181   :  { %2792 = vmatpush1.bf16.msra.mxu1 %v2791_v27  ;;  %2972 = vmatpush1.bf16.msra.mxu0 %v2971_v28  ;;  %v1144_v27 = vld [vmem:[%s5774_s3 + $0x808] sm:$0xff] }
 0x182   :  { %2794 = vmatprep.subr.bf16.mxu1 %v2793_v31  ;;  %2974 = vmatprep.subr.bf16.mxu0 %v2973_v32  ;;  %v1148_v28 = vld [vmem:[%s5774_s3 + $0x828] sm:$0xff]  ;;  %v2811_v31 = vpack.c.bf16 %v1139_v22, %v1135_v20  ;;  %v2991_v32 = vpack.c.bf16 %v1141_v26, %v1137_v25  ;;  %v1178_v22 = vld [vmem:[%s5774_s3 + $0x918] sm:$0xff]  ;;  %v1175_v25 = vld [vmem:[%s5774_s3 + $0x900] sm:$0xff] }
 0x183   :  { %v2813_v36 = vpack.c.bf16 %v1148_v28, %v1144_v27  ;;  %v1180_v20 = vld [vmem:[%s5774_s3 + $0x928] sm:$0xff]  ;;  %v1179_v26 = vld [vmem:[%s5774_s3 + $0x920] sm:$0xff]  ;;  %v3009_v28 = vpack.c.bf16 %v1182_v0, %v1178_v22 }
 0x184   :  { %v2831_v35 = vpack.c.bf16 %v1179_v26, %v1175_v25  ;;  %v1216_v22 = vld [vmem:[%s5774_s3 + $0xa48] sm:$0xff] }
 0x185   :  { %2796 = vmatpush1.bf16.msra.mxu1 %v2795_v39  ;;  %2976 = vmatpush1.bf16.msra.mxu0 %v2975_v40  ;;  %v1149_v39 = vld [vmem:[%s5774_s3 + $0x830] sm:$0xff]  ;;  %v1152_v40 = vld [vmem:[%s5774_s3 + $0x848] sm:$0xff] }
 0x186   :  { %2798 = vmatprep.subr.bf16.mxu1 %v2797_v58  ;;  %2978 = vmatprep.subr.bf16.mxu0 %v2977_v43  ;;  %v2815_v58 = vpack.c.bf16 %v1147_v34, %v1143_v33  ;;  %v2995_v43 = vpack.c.bf16 %v1149_v39, %v1145_v38  ;;  %v2817_v47 = vpack.c.bf16 %v1156_v21, %v1152_v40  ;;  %v1186_v33 = vld [vmem:[%s5774_s3 + $0x958] sm:$0xff]  ;;  %v1187_v38 = vld [vmem:[%s5774_s3 + $0x960] sm:$0xff]  ;;  %v1185_v21 = vld [vmem:[%s5774_s3 + $0x950] sm:$0xff] }
 0x187   :  { %v1190_v34 = vld [vmem:[%s5774_s3 + $0x978] sm:$0xff]  ;;  %v1220_v0 = vld [vmem:[%s5774_s3 + $0xa68] sm:$0xff] }
 0x188   :  { %v3013_v40 = vpack.c.bf16 %v1190_v34, %v1186_v33  ;;  %v1224_v33 = vld [vmem:[%s5774_s3 + $0xa88] sm:$0xff] }
 0x189   :  { %2800 = vmatpush1.bf16.msra.mxu1 %v2799_v50  ;;  %2980 = vmatpush1.bf16.msra.mxu0 %v2979_v51  ;;  %v1157_v50 = vld [vmem:[%s5774_s3 + $0x870] sm:$0xff]  ;;  %v1160_v51 = vld [vmem:[%s5774_s3 + $0x888] sm:$0xff] }
 0x18a   :  { %2802 = vmatprep.subr.bf16.mxu1 %v2801_v54  ;;  %2982 = vmatprep.subr.bf16.mxu0 %v2981_v55  ;;  %v1166_v54 = vld [vmem:[%s5774_s3 + $0x8b8] sm:$0xff]  ;;  %v2819_v55 = vpack.c.bf16 %v1155_v45, %v1151_v44  ;;  %v2999_v56 = vpack.c.bf16 %v1157_v50, %v1153_v49  ;;  %v2821_v61 = vpack.c.bf16 %v1164_v52, %v1160_v51  ;;  %v1193_v51 = vld [vmem:[%s5774_s3 + $0x990] sm:$0xff]  ;;  %v1228_v34 = vld [vmem:[%s5774_s3 + $0xaa8] sm:$0xff] }
 0x18b   :  { %v3001_v3 = vpack.c.bf16 %v1166_v54, %v1162_v53  ;;  %v1198_v44 = vld [vmem:[%s5774_s3 + $0x9b8] sm:$0xff]  ;;  %v1197_v52 = vld [vmem:[%s5774_s3 + $0x9b0] sm:$0xff]  ;;  %v1200_v53 = vld [vmem:[%s5774_s3 + $0x9c8] sm:$0xff] }
 0x18c   :  { %v1204_v54 = vld [vmem:[%s5774_s3 + $0x9e8] sm:$0xff] }
 0x18d   :  { %2804 = vmatpush1.bf16.msra.mxu1 %v2803_v6  ;;  %2984 = vmatpush1.bf16.msra.mxu0 %v2983_v7  ;;  %v1165_v6 = vld [vmem:[%s5774_s3 + $0x8b0] sm:$0xff]  ;;  %v1168_v7 = vld [vmem:[%s5774_s3 + $0x8c8] sm:$0xff] }
 0x18e   :  { %2806 = vmatprep.subr.bf16.mxu1 %v2805_v12  ;;  %2986 = vmatprep.subr.bf16.mxu0 %v2985_v13  ;;  %v1174_v12 = vld [vmem:[%s5774_s3 + $0x8f8] sm:$0xff]  ;;  %v2823_v13 = vpack.c.bf16 %v1163_v60, %v1159_v57  ;;  %v3003_v10 = vpack.c.bf16 %v1165_v6, %v1161_v4  ;;  %v2825_v15 = vpack.c.bf16 %v1172_v8, %v1168_v7  ;;  %v1201_v7 = vld [vmem:[%s5774_s3 + $0x9d0] sm:$0xff] }
 0x18f   :  { %v3005_v16 = vpack.c.bf16 %v1174_v12, %v1170_v9  ;;  %v3019_v60 = vpack.c.bf16 %v1197_v52, %v1193_v51  ;;  %v2841_v4 = vpack.c.bf16 %v1204_v54, %v1200_v53  ;;  %v1205_v8 = vld [vmem:[%s5774_s3 + $0x9f0] sm:$0xff]  ;;  %v1208_v9 = vld [vmem:[%s5774_s3 + $0xa08] sm:$0xff] }
 0x190   :  { %v1212_v12 = vld [vmem:[%s5774_s3 + $0xa28] sm:$0xff]  ;;  %v1233_v53 = vld [vmem:[%s5774_s3 + $0xad0] sm:$0xff] }
 0x191   :  { %2808 = vmatpush1.bf16.msra.mxu1 %v2807_v18  ;;  %2988 = vmatpush1.bf16.msra.mxu0 %v2987_v19  ;;  %v1173_v18 = vld [vmem:[%s5774_s3 + $0x8f0] sm:$0xff]  ;;  %v1176_v19 = vld [vmem:[%s5774_s3 + $0x908] sm:$0xff] }
 0x192   :  { %2810 = vmatprep.subr.bf16.mxu1 %v2809_v23  ;;  %2990 = vmatprep.subr.bf16.mxu0 %v2989_v24  ;;  %v2827_v23 = vpack.c.bf16 %v1171_v14, %v1167_v59  ;;  %v3007_v24 = vpack.c.bf16 %v1173_v18, %v1169_v17  ;;  %v2829_v27 = vpack.c.bf16 %v1180_v20, %v1176_v19  ;;  %v1209_v19 = vld [vmem:[%s5774_s3 + $0xa10] sm:$0xff] }
 0x193   :  { %v3023_v14 = vpack.c.bf16 %v1205_v8, %v1201_v7  ;;  %v2845_v17 = vpack.c.bf16 %v1212_v12, %v1208_v9  ;;  %v1213_v20 = vld [vmem:[%s5774_s3 + $0xa30] sm:$0xff]  ;;  %v1243_v8 = vld [vmem:[%s5774_s3 + $0xb20] sm:$0xff] }
 0x194   :  { %v3027_v26 = vpack.c.bf16 %v1213_v20, %v1209_v19  ;;  %v1237_v54 = vld [vmem:[%s5774_s3 + $0xaf0] sm:$0xff] }
 0x195   :  { %2812 = vmatpush1.bf16.msra.mxu1 %v2811_v31  ;;  %2992 = vmatpush1.bf16.msra.mxu0 %v2991_v32  ;;  %v1184_v31 = vld [vmem:[%s5774_s3 + $0x948] sm:$0xff]  ;;  %v1241_v9 = vld [vmem:[%s5774_s3 + $0xb10] sm:$0xff] }
 0x196   :  { %2814 = vmatprep.subr.bf16.mxu1 %v2813_v36  ;;  %2994 = vmatprep.subr.bf16.mxu0 %v2993_v37  ;;  %v1188_v32 = vld [vmem:[%s5774_s3 + $0x968] sm:$0xff]  ;;  %v3011_v36 = vpack.c.bf16 %v1181_v30, %v1177_v29  ;;  %v1183_v37 = vld [vmem:[%s5774_s3 + $0x940] sm:$0xff]  ;;  %v2849_v29 = vpack.c.bf16 %v1220_v0, %v1216_v22  ;;  %v1245_v12 = vld [vmem:[%s5774_s3 + $0xb30] sm:$0xff] }
 0x197   :  { %v2833_v39 = vpack.c.bf16 %v1188_v32, %v1184_v31  ;;  %v2835_v45 = vpack.c.bf16 %v1187_v38, %v1183_v37  ;;  %v1217_v31 = vld [vmem:[%s5774_s3 + $0xa50] sm:$0xff]  ;;  %v1247_v22 = vld [vmem:[%s5774_s3 + $0xb40] sm:$0x3f] }
 0x198   :  { %1427 = vmatmul.mubr.f32.vlgmr.msra.gmra.mrb[2].mxu1 %v883_v46  ;;  %1640 = vmatmul.mubr.f32.vlgmr.msra.gmra.mrb[4].mxu0 %v883_v46  ;;  %v3015_v46 = vpack.c.bf16 %v1189_v41, %v1185_v21  ;;  %v1221_v32 = vld [vmem:[%s5774_s3 + $0xa70] sm:$0xff]  ;;  %v2853_v21 = vpack.c.bf16 %v1228_v34, %v1224_v33 }
 0x199   :  { %2816 = vmatpush1.bf16.msra.mxu1 %v2815_v58  ;;  %2996 = vmatpush1.bf16.msra.mxu0 %v2995_v43  ;;  %v1196_v58 = vld [vmem:[%s5774_s3 + $0x9a8] sm:$0xff]  ;;  %v1194_v43 = vld [vmem:[%s5774_s3 + $0x998] sm:$0xff]  ;;  %v3031_v38 = vpack.c.bf16 %v1221_v32, %v1217_v31  ;;  %v1249_v0 = vld [vmem:[%s5774_s3 + $0xb50] sm:$0x3f] }
 0x19a   :  { %2818 = vmatprep.subr.bf16.mxu1 %v2817_v47  ;;  %2998 = vmatprep.subr.bf16.mxu0 %v2997_v48  ;;  %v1191_v47 = vld [vmem:[%s5774_s3 + $0x980] sm:$0xff]  ;;  %v2837_v49 = vpack.c.bf16 %v1196_v58, %v1192_v42  ;;  %v3017_v50 = vpack.c.bf16 %v1198_v44, %v1194_v43  ;;  %v1225_v42 = vld [vmem:[%s5774_s3 + $0xa90] sm:$0xff]  ;;  %v1232_v43 = vld [vmem:[%s5774_s3 + $0xac8] sm:$0xff] }
 0x19b   :  { %v1195_v48 = vld [vmem:[%s5774_s3 + $0x9a0] sm:$0xff]  ;;  %v1229_v58 = vld [vmem:[%s5774_s3 + $0xab0] sm:$0xff]  ;;  %v1236_v44 = vld [vmem:[%s5774_s3 + $0xae8] sm:$0xff] }
 0x19c   :  { %v2839_v57 = vpack.c.bf16 %v1195_v48, %v1191_v47  ;;  %v3035_v48 = vpack.c.bf16 %v1229_v58, %v1225_v42  ;;  %v2857_v51 = vpack.c.bf16 %v1236_v44, %v1232_v43  ;;  %v1743_v42 = vld [vmem:[%s5776_s4 + $0xb0] sm:$0xff]  ;;  %v1744_v58 = vld [vmem:[%s5776_s4 + $0xb8] sm:$0xff] }
 0x19d   :  { %2820 = vmatpush1.bf16.msra.mxu1 %v2819_v55  ;;  %3000 = vmatpush1.bf16.msra.mxu0 %v2999_v56  ;;  %v1202_v55 = vld [vmem:[%s5774_s3 + $0x9d8] sm:$0xff]  ;;  %v3057_v44 = vpack.c.bf16 %v1744_v58, %v1743_v42  ;;  %v1763_v42 = vld [vmem:[%s5776_s4 + $0x150] sm:$0xff] }
 0x19e   :  { %2822 = vmatprep.subr.bf16.mxu1 %v2821_v61  ;;  %3002 = vmatprep.subr.bf16.mxu0 %v3001_v3  ;;  %v1206_v56 = vld [vmem:[%s5774_s3 + $0x9f8] sm:$0xff]  ;;  %v1199_v61 = vld [vmem:[%s5774_s3 + $0x9c0] sm:$0xff] }
 0x19f   :  { %v1203_v3 = vld [vmem:[%s5774_s3 + $0x9e0] sm:$0xff]  ;;  %v3021_v6 = vpack.c.bf16 %v1206_v56, %v1202_v55  ;;  %v1240_v55 = vld [vmem:[%s5774_s3 + $0xb08] sm:$0xff]  ;;  %v1764_v58 = vld [vmem:[%s5776_s4 + $0x158] sm:$0xff] }
 0x1a0   :  { %v2843_v59 = vpack.c.bf16 %v1203_v3, %v1199_v61  ;;  %v1244_v56 = vld [vmem:[%s5774_s3 + $0xb28] sm:$0xff]  ;;  %v3039_v3 = vpack.c.bf16 %v1237_v54, %v1233_v53  ;;  %v1747_v53 = vld [vmem:[%s5776_s4 + $0xd0] sm:$0xff]  ;;  %v1748_v54 = vld [vmem:[%s5776_s4 + $0xd8] sm:$0xff] }
 0x1a1   :  { %2824 = vmatpush1.bf16.msra.mxu1 %v2823_v13  ;;  %3004 = vmatpush1.bf16.msra.mxu0 %v3003_v10  ;;  %v1210_v13 = vld [vmem:[%s5774_s3 + $0xa18] sm:$0xff] }
 0x1a2   :  { %2826 = vmatprep.subr.bf16.mxu1 %v2825_v15  ;;  %3006 = vmatprep.subr.bf16.mxu0 %v3005_v16  ;;  %v1214_v10 = vld [vmem:[%s5774_s3 + $0xa38] sm:$0xff]  ;;  %v1207_v15 = vld [vmem:[%s5774_s3 + $0xa00] sm:$0xff] }
 0x1a3   :  { %v1211_v16 = vld [vmem:[%s5774_s3 + $0xa20] sm:$0xff]  ;;  %v3025_v18 = vpack.c.bf16 %v1214_v10, %v1210_v13  ;;  %v420_v13 = vsub.s32 4, %v4751_v62  ;;  %v424_v10 = vsub.s32 5, %v4751_v62 }
 0x1a4   :  { %v2847_v25 = vpack.c.bf16 %v1211_v16, %v1207_v15  ;;  %v1248_v15 = vld [vmem:[%s5774_s3 + $0xb48] sm:$0x3f]  ;;  %v1250_v16 = vld [vmem:[%s5774_s3 + $0xb58] sm:$0x3f]  ;;  %v1934_v62 = vld [vmem:[%s5777_s6] sm:$0xff] }
 0x1a5   :  { %2828 = vmatpush1.bf16.msra.mxu1 %v2827_v23  ;;  %3008 = vmatpush1.bf16.msra.mxu0 %v3007_v24  ;;  %v1218_v23 = vld [vmem:[%s5774_s3 + $0xa58] sm:$0xff]  ;;  %v421_v19 = vrot.slane %v4757_v1, %v420_v13  ;;  %v425_v20 = vrot.slane %v4757_v1, %v424_v10  ;;  %v1721_v1 = vld [vmem:[%s5776_s4] sm:$0xff] }
 0x1a6   :  { %2830 = vmatprep.subr.bf16.mxu1 %v2829_v27  ;;  %3010 = vmatprep.subr.bf16.mxu0 %v3009_v28  ;;  %v1222_v24 = vld [vmem:[%s5774_s3 + $0xa78] sm:$0xff]  ;;  %v1215_v27 = vld [vmem:[%s5774_s3 + $0xa40] sm:$0xff] }
 0x1a7   :  { %v1219_v28 = vld [vmem:[%s5774_s3 + $0xa60] sm:$0xff]  ;;  %v3029_v30 = vpack.c.bf16 %v1222_v24, %v1218_v23  ;;  %v1752_v13 = vld [vmem:[%s5776_s4 + $0xf8] sm:$0xff] }
 0x1a8   :  { %v2851_v37 = vpack.c.bf16 %v1219_v28, %v1215_v27  ;;  %v1722_v27 = vld [vmem:[%s5776_s4 + $0x8] sm:$0xff] }
 0x1a9   :  { %2832 = vmatpush1.bf16.msra.mxu1 %v2831_v35  ;;  %3012 = vmatpush1.bf16.msra.mxu0 %v3011_v36  ;;  %v1226_v35 = vld [vmem:[%s5774_s3 + $0xa98] sm:$0xff]  ;;  %v3047_v32 = vpack.c.bf16 %v1722_v27, %v1721_v1 }
 0x1aa   :  { %2834 = vmatprep.subr.bf16.mxu1 %v2833_v39  ;;  %3014 = vmatprep.subr.bf16.mxu0 %v3013_v40  ;;  %v1230_v36 = vld [vmem:[%s5774_s3 + $0xab8] sm:$0xff]  ;;  %v1223_v39 = vld [vmem:[%s5774_s3 + $0xa80] sm:$0xff] }
 0x1ab   :  { %v1227_v40 = vld [vmem:[%s5774_s3 + $0xaa0] sm:$0xff]  ;;  %v3033_v41 = vpack.c.bf16 %v1230_v36, %v1226_v35  ;;  %v1723_v35 = vld [vmem:[%s5776_s4 + $0x10] sm:$0xff]  ;;  %v1724_v36 = vld [vmem:[%s5776_s4 + $0x18] sm:$0xff] }
 0x1ac   :  { %v2855_v47 = vpack.c.bf16 %v1227_v40, %v1223_v39  ;;  %v3051_v39 = vpack.c.bf16 %v1724_v36, %v1723_v35  ;;  %v1758_v35 = vld [vmem:[%s5776_s4 + $0x128] sm:$0xff] }
 0x1ad   :  { %2836 = vmatpush1.bf16.msra.mxu1 %v2835_v45  ;;  %3016 = vmatpush1.bf16.msra.mxu0 %v3015_v46  ;;  %v1234_v45 = vld [vmem:[%s5774_s3 + $0xad8] sm:$0xff] }
 0x1ae   :  { %2838 = vmatprep.subr.bf16.mxu1 %v2837_v49  ;;  %3018 = vmatprep.subr.bf16.mxu0 %v3017_v50  ;;  %v1238_v46 = vld [vmem:[%s5774_s3 + $0xaf8] sm:$0xff]  ;;  %v1231_v49 = vld [vmem:[%s5774_s3 + $0xac0] sm:$0xff] }
 0x1af   :  { %v1235_v50 = vld [vmem:[%s5774_s3 + $0xae0] sm:$0xff]  ;;  %v3037_v52 = vpack.c.bf16 %v1238_v46, %v1234_v45  ;;  %v1727_v45 = vld [vmem:[%s5776_s4 + $0x30] sm:$0xff]  ;;  %v1728_v46 = vld [vmem:[%s5776_s4 + $0x38] sm:$0xff] }
 0x1b0   :  { %v2859_v61 = vpack.c.bf16 %v1235_v50, %v1231_v49  ;;  %v3059_v49 = vpack.c.bf16 %v1728_v46, %v1727_v45  ;;  %v1766_v45 = vld [vmem:[%s5776_s4 + $0x168] sm:$0xff] }
 0x1b1   :  { %2840 = vmatpush1.bf16.msra.mxu1 %v2839_v57  ;;  %3020 = vmatpush1.bf16.msra.mxu0 %v3019_v60  ;;  %v1242_v57 = vld [vmem:[%s5774_s3 + $0xb18] sm:$0xff] }
 0x1b2   :  { %2842 = vmatprep.subr.bf16.mxu1 %v2841_v4  ;;  %3022 = vmatprep.subr.bf16.mxu0 %v3021_v6  ;;  %v1246_v60 = vld [vmem:[%s5774_s3 + $0xb38] sm:$0xff]  ;;  %v1239_v4 = vld [vmem:[%s5774_s3 + $0xb00] sm:$0xff]  ;;  %v2861_v6 = vpack.c.bf16 %v1244_v56, %v1240_v55  ;;  %v3065_v56 = vpack.c.bf16 %v1748_v54, %v1747_v53  ;;  %v1771_v53 = vld [vmem:[%s5776_s4 + $0x190] sm:$0xff] }
 0x1b3   :  { %v3041_v7 = vpack.c.bf16 %v1246_v60, %v1242_v57  ;;  %v1731_v57 = vld [vmem:[%s5776_s4 + $0x50] sm:$0xff]  ;;  %v1732_v60 = vld [vmem:[%s5776_s4 + $0x58] sm:$0xff] }
 0x1b4   :  { %v1772_v54 = vld [vmem:[%s5776_s4 + $0x198] sm:$0xff] }
 0x1b5   :  { %2844 = vmatpush1.bf16.msra.mxu1 %v2843_v59  ;;  %3024 = vmatpush1.bf16.msra.mxu0 %v3023_v14  ;;  %v2863_v59 = vpack.c.bf16 %v1243_v8, %v1239_v4  ;;  %v3043_v14 = vpack.c.bf16 %v1245_v12, %v1241_v9  ;;  %v3067_v4 = vpack.c.bf16 %v1732_v60, %v1731_v57  ;;  %v1734_v8 = vld [vmem:[%s5776_s4 + $0x68] sm:$0xff]  ;;  %v1751_v12 = vld [vmem:[%s5776_s4 + $0xf0] sm:$0xff] }
 0x1b6   :  { %2846 = vmatprep.subr.bf16.mxu1 %v2845_v17  ;;  %3026 = vmatprep.subr.bf16.mxu0 %v3025_v18  ;;  %v1737_v17 = vld [vmem:[%s5776_s4 + $0x80] sm:$0xff]  ;;  %v1738_v18 = vld [vmem:[%s5776_s4 + $0x88] sm:$0xff]  ;;  %v3073_v10 = vpack.c.bf16 %v1752_v13, %v1751_v12  ;;  %v1780_v12 = vld [vmem:[%s5776_s4 + $0x1d8] sm:$0xff] }
 0x1b7   :  { %v3045_v23 = vpack.c.bf16 %v1738_v18, %v1737_v17  ;;  %v5582_v17 = vld [vmem:[%s5775_s5 + $0x1] ss:$4 sm:$0xf] }
 0x1b8   :  { %v1257_v18 = vrot.slane %v5582_v17, %v404_v63  ;;  %v1754_v63 = vld [vmem:[%s5776_s4 + $0x108] sm:$0xff]  ;;  %v1265_v13 = vrot.slane %v5582_v17, %v412_v11 }
 0x1b9   :  { %2848 = vmatpush1.bf16.msra.mxu1 %v2847_v25  ;;  %3028 = vmatpush1.bf16.msra.mxu0 %v3027_v26  ;;  %v1774_v57 = vld [vmem:[%s5776_s4 + $0x1a8] sm:$0xff] }
 0x1ba   :  { %2850 = vmatprep.subr.bf16.mxu1 %v2849_v29  ;;  %3030 = vmatprep.subr.bf16.mxu0 %v3029_v30  ;;  %v1739_v29 = vld [vmem:[%s5776_s4 + $0x90] sm:$0xff]  ;;  %v1740_v30 = vld [vmem:[%s5776_s4 + $0x98] sm:$0xff]  ;;  %v1935_v11 = vld [vmem:[%s5777_s6 + $0x8] sm:$0xff] }
 0x1bb   :  { %v3049_v34 = vpack.c.bf16 %v1740_v30, %v1739_v29 }
 0x1bd   :  { %2852 = vmatpush1.bf16.msra.mxu1 %v2851_v37  ;;  %3032 = vmatpush1.bf16.msra.mxu0 %v3031_v38  ;;  %v1741_v37 = vld [vmem:[%s5776_s4 + $0xa0] sm:$0xff]  ;;  %v1742_v38 = vld [vmem:[%s5776_s4 + $0xa8] sm:$0xff] }
 0x1be   :  { %2854 = vmatprep.subr.bf16.mxu1 %v2853_v21  ;;  %3034 = vmatprep.subr.bf16.mxu0 %v3033_v41  ;;  %v3053_v40 = vpack.c.bf16 %v1742_v38, %v1741_v37  ;;  %v1725_v21 = vld [vmem:[%s5776_s4 + $0x20] sm:$0xff]  ;;  %v1726_v41 = vld [vmem:[%s5776_s4 + $0x28] sm:$0xff]  ;;  %v1759_v37 = vld [vmem:[%s5776_s4 + $0x130] sm:$0xff] }
 0x1bf   :  { %v3055_v43 = vpack.c.bf16 %v1726_v41, %v1725_v21  ;;  %v1760_v38 = vld [vmem:[%s5776_s4 + $0x138] sm:$0xff]  ;;  %v1762_v21 = vld [vmem:[%s5776_s4 + $0x148] sm:$0xff] }
 0x1c1   :  { %2856 = vmatpush1.bf16.msra.mxu1 %v2855_v47  ;;  %3036 = vmatpush1.bf16.msra.mxu0 %v3035_v48  ;;  %v1745_v47 = vld [vmem:[%s5776_s4 + $0xc0] sm:$0xff]  ;;  %v1746_v48 = vld [vmem:[%s5776_s4 + $0xc8] sm:$0xff] }
 0x1c2   :  { %2858 = vmatprep.subr.bf16.mxu1 %v2857_v51  ;;  %3038 = vmatprep.subr.bf16.mxu0 %v3037_v52  ;;  %v3061_v50 = vpack.c.bf16 %v1746_v48, %v1745_v47  ;;  %v1729_v51 = vld [vmem:[%s5776_s4 + $0x40] sm:$0xff]  ;;  %v1730_v52 = vld [vmem:[%s5776_s4 + $0x48] sm:$0xff]  ;;  %v1767_v47 = vld [vmem:[%s5776_s4 + $0x170] sm:$0xff] }
 0x1c3   :  { %v3063_v55 = vpack.c.bf16 %v1730_v52, %v1729_v51  ;;  %v1768_v48 = vld [vmem:[%s5776_s4 + $0x178] sm:$0xff]  ;;  %v1770_v51 = vld [vmem:[%s5776_s4 + $0x188] sm:$0xff] }
 0x1c5   :  { %2860 = vmatpush1.bf16.msra.mxu1 %v2859_v61  ;;  %3040 = vmatpush1.bf16.msra.mxu0 %v3039_v3  ;;  %v1749_v61 = vld [vmem:[%s5776_s4 + $0xe0] sm:$0xff]  ;;  %v1750_v3 = vld [vmem:[%s5776_s4 + $0xe8] sm:$0xff] }
 0x1c6   :  { %2862 = vmatprep.subr.bf16.mxu1 %v2861_v6  ;;  %3042 = vmatprep.subr.bf16.mxu0 %v3041_v7  ;;  %v3069_v6 = vpack.c.bf16 %v1750_v3, %v1749_v61  ;;  %v1733_v7 = vld [vmem:[%s5776_s4 + $0x60] sm:$0xff]  ;;  %v1775_v61 = vld [vmem:[%s5776_s4 + $0x1b0] sm:$0xff]  ;;  %v1776_v3 = vld [vmem:[%s5776_s4 + $0x1b8] sm:$0xff] }
 0x1c7   :  { %v3071_v9 = vpack.c.bf16 %v1734_v8, %v1733_v7  ;;  %v1778_v7 = vld [vmem:[%s5776_s4 + $0x1c8] sm:$0xff] }
 0x1c9   :  { %2864 = vmatpush1.bf16.msra.mxu1 %v2863_v59  ;;  %3044 = vmatpush1.bf16.msra.mxu0 %v3043_v14  ;;  %v1735_v59 = vld [vmem:[%s5776_s4 + $0x70] sm:$0xff]  ;;  %v1736_v14 = vld [vmem:[%s5776_s4 + $0x78] sm:$0xff] }
 0x1ca   :  { %2227 = vmatprep.subr.msk.mxu1 %vm1278_vm2, %v1248_v15  ;;  %2230 = vmatprep.subr.msk.mxu0 %vm1278_vm2, %v1250_v16  ;;  %v3075_v15 = vpack.c.bf16 %v1736_v14, %v1735_v59  ;;  %v3166_v16 = vmov 0.0|0.0   ;;  %v3167_v14 = vmov 0.0  }
 0x1cb   :  { %v876_v24 = vpop.f32.mrb[2].mxu0 }
 0x1cc   :  { %v3140_v25 = vadd.f32 %v876_v24, %v421_v19  ;;  %v878_v26 = vpop.f32.mrb[3].mxu0  ;;  %v1261_v19 = vrot.slane %v5582_v17, %v4760_v2 }
 0x1cd   :  { %v3141_v28 = vadd.f32 %v878_v26, %v425_v20  ;;  %2228 = vmatpush1.msk.msra.mxu1 %vm1278_vm2, %v1247_v22  ;;  %2231 = vmatpush1.msk.msra.mxu0 %vm1278_vm2, %v1249_v0  ;;  %v1269_v20 = vrot.slane %v5582_v17, %v416_v5  ;;  %v1753_v26 = vld [vmem:[%s5776_s4 + $0x100] sm:$0xff]  ;;  %v1755_v5 = vld [vmem:[%s5776_s4 + $0x110] sm:$0xff] }
 0x1ce   :  { %3046 = vmatprep.subr.bf16.mxu1 %v3045_v23  ;;  %v885_v33 = vmax.f32 %v3140_v25, 0.0  ;;  %v3078_v29 = vpack.c.bf16 %v1754_v63, %v1753_v26  ;;  %v1936_v17 = vld [vmem:[%s5777_s6 + $0x10] sm:$0xff]  ;;  %v3169_v26 = vmov 0   ;;  %v33_v63 = vld [vmem:[%s5778_s0] sm:$0xff] }
 0x1cf   :  { %v886_v31 = vmax.f32 %v3141_v28, 0.0  ;;  %3165 = vset.pattern.permute.xlu0 %v3169_v26 }
 0x1d0   :  { %1948 = vperm.xlu0 %3165, %v33_v63  }
 0x1d1   :  { %2229 = vmatprep.mubr.msk.f32.mxu1 %vm1274_vm3, %v886_v31  ;;  %2232 = vmatprep.mubr.msk.f32.mxu0 %vm1274_vm3, %v886_v31  ;;  %v1756_v31 = vld [vmem:[%s5776_s4 + $0x118] sm:$0xff] }
 0x1d2   :  { %1498 = vmatmul.mubr.f32.vlgmr.msra.gmra.mrb[2].mxu1 %v885_v33  ;;  %1711 = vmatmul.mubr.f32.vlgmr.msra.gmra.mrb[4].mxu0 %v885_v33  ;;  %v3081_v33 = vpack.c.bf16 %v1756_v31, %v1755_v5 }
 0x1d3   :  { %3048 = vmatpush3.bf16.msra.mxu1 %v3047_v32 }
 0x1d4   :  { %3050 = vmatprep.subr.bf16.mxu1 %v3049_v34  ;;  %v1757_v34 = vld [vmem:[%s5776_s4 + $0x120] sm:$0xff] }
 0x1d5   :  { %v3084_v36 = vpack.c.bf16 %v1758_v35, %v1757_v34  ;;  %v1941_v34 = vld [vmem:[%s5777_s6 + $0x38] sm:$0xff] }
 0x1d7   :  { %3052 = vmatpush3.bf16.msra.mxu1 %v3051_v39  ;;  %v3087_v39 = vpack.c.bf16 %v1760_v38, %v1759_v37 }
 0x1d8   :  { %3054 = vmatprep.subr.bf16.mxu1 %v3053_v40  ;;  %v1761_v40 = vld [vmem:[%s5776_s4 + $0x140] sm:$0xff] }
 0x1d9   :  { %v3090_v41 = vpack.c.bf16 %v1762_v21, %v1761_v40 }
 0x1db   :  { %3056 = vmatpush3.bf16.msra.mxu1 %v3055_v43  ;;  %v3093_v43 = vpack.c.bf16 %v1764_v58, %v1763_v42  ;;  %v2238_v42 = vld [vmem:[%s5779_s7] ss:$0 sm:$0xff] }
 0x1dc   :  { %3058 = vmatprep.subr.bf16.mxu1 %v3057_v44  ;;  %v1765_v44 = vld [vmem:[%s5776_s4 + $0x160] sm:$0xff] }
 0x1dd   :  { %v3096_v46 = vpack.c.bf16 %v1766_v45, %v1765_v44 }
 0x1df   :  { %3060 = vmatpush3.bf16.msra.mxu1 %v3059_v49  ;;  %v3099_v49 = vpack.c.bf16 %v1768_v48, %v1767_v47 }
 0x1e0   :  { %3062 = vmatprep.subr.bf16.mxu1 %v3061_v50  ;;  %v1769_v50 = vld [vmem:[%s5776_s4 + $0x180] sm:$0xff] }
 0x1e1   :  { %v3102_v52 = vpack.c.bf16 %v1770_v51, %v1769_v50  ;;  %v2239_v50 = vld [vmem:[%s5779_s7 + $0x1] ss:$0 sm:$0xff] }
 0x1e3   :  { %3064 = vmatpush3.bf16.msra.mxu1 %v3063_v55  ;;  %v3105_v55 = vpack.c.bf16 %v1772_v54, %v1771_v53 }
 0x1e4   :  { %3066 = vmatprep.subr.bf16.mxu1 %v3065_v56  ;;  %v1773_v56 = vld [vmem:[%s5776_s4 + $0x1a0] sm:$0xff] }
 0x1e5   :  { %v3108_v60 = vpack.c.bf16 %v1774_v57, %v1773_v56 }
 0x1e7   :  { %3068 = vmatpush3.bf16.msra.mxu1 %v3067_v4  ;;  %v3111_v4 = vpack.c.bf16 %v1776_v3, %v1775_v61 }
 0x1e8   :  { %3070 = vmatprep.subr.bf16.mxu1 %v3069_v6  ;;  %v1777_v6 = vld [vmem:[%s5776_s4 + $0x1c0] sm:$0xff] }
 0x1e9   :  { %v3114_v8 = vpack.c.bf16 %v1778_v7, %v1777_v6 }
 0x1eb   :  { %3072 = vmatpush3.bf16.msra.mxu1 %v3071_v9  ;;  %v1779_v9 = vld [vmem:[%s5776_s4 + $0x1d0] sm:$0xff] }
 0x1ec   :  { %3074 = vmatprep.subr.bf16.mxu1 %v3073_v10  ;;  %v3117_v10 = vpack.c.bf16 %v1780_v12, %v1779_v9 }
 0x1ef   :  { %3076 = vmatpush3.bf16.msra.mxu1 %v3075_v15  ;;  %v1781_v15 = vld [vmem:[%s5776_s4 + $0x1e0] sm:$0xf] }
 0x1f0   :  { %3077 = vmatprep.subr.bf16.mxu1 %v3166_v16 }
 0x24f   :  { %v1949_v21 = vpop.permute.xlu0 %1948 }
 0x2a5   :  { %v1499_v22 = vpop.f32.mrb[2].mxu1  ;;  %v5592_v0 = vpop.f32.mrb[4].mxu0 }
 0x2a6   :  { %v3142_v23 = vadd.f32 %v1499_v22, %v1257_v18  ;;  %v1501_v24 = vpop.f32.mrb[3].mxu1  ;;  %v1714_v25 = vpop.f32.mrb[5].mxu0  ;;  %v3144_v59 = vadd.f32 %v5592_v0, %v1265_v13  ;;  %v1938_v0 = vld [vmem:[%s5777_s6 + $0x20] sm:$0xff] }
 0x2a7   :  { %v3143_v1 = vadd.f32 %v1501_v24, %v1261_v19  ;;  %v3145_v27 = vadd.f32 %v1714_v25, %v1269_v20  ;;  %v3120_v19 = vpack.c.bf16 %v1935_v11, %v1934_v62  ;;  %v1937_v20 = vld [vmem:[%s5777_s6 + $0x18] sm:$0xff]  ;;  %v1940_v25 = vld [vmem:[%s5777_s6 + $0x30] sm:$0xff] }
 0x2a8   :  { %v1717_v30 = vmax.f32 %v3142_v23, 0.0  ;;  %v1719_v18 = vmax.f32 %v3144_v59, 0.0  ;;  %v3123_v22 = vpack.c.bf16 %v1937_v20, %v1936_v17  ;;  %v1939_v23 = vld [vmem:[%s5777_s6 + $0x28] sm:$0xff]  ;;  %v2045_v35 = vrot.slane %v1940_v25, 2 }
 0x2a9   :  { %v1718_v28 = vmax.f32 %v3143_v1, 0.0  ;;  %v1720_v32 = vmax.f32 %v3145_v27, 0.0  ;;  %v3126_v24 = vpack.c.bf16 %v1939_v23, %v1938_v0  ;;  %v1954_v40 = vrot.slane %v1940_v25, %v4760_v2  ;;  %v1942_v2 = vld [vmem:[%s5777_s6 + $0x40] sm:$0xf] }
 0x2aa   :  { %v2133_v47 = vrot.slane %v1942_v2, 3 }
 0x2ab   :  { %1857 = vmatprep.mubr.f32.mxu1 %v1718_v28 }
 0x2ac   :  { %1858 = vmatmul.mubr.f32.vlgmr.msra.gmra.mrb[4].mxu1 %v1717_v30 }
 0x2ad   :  { %3079 = vmatpush1.bf16.msra.mxu1 %v3078_v29  ;;  %2235 = vmatprep.mubr.msk.f32.mxu1 %vm432_vm0, %v1720_v32  ;;  %v2233_v29 = vld [vmem:[%s5775_s5 + $0x2] ss:$0 sm:$0xff] }
 0x2ae   :  { %3080 = vmatprep.subr.bf16.mxu1 %v3166_v16 }
 0x2b1   :  { %3082 = vmatpush1.bf16.msra.mxu1 %v3081_v33 }
 0x2b2   :  { %3083 = vmatprep.subr.bf16.mxu1 %v3166_v16 }
 0x2b5   :  { %3085 = vmatpush1.bf16.msra.mxu1 %v3084_v36  ;;  %v2046_v36 = vrot.slane %v1941_v34, 2 }
 0x2b6   :  { %3086 = vmatprep.subr.bf16.mxu1 %v3166_v16 }
 0x2b7   :  { %v2047_v37 = vsel %vm1278_vm2, %v2045_v35, %v2046_v36 }
 0x2b8   :  { %v3129_v38 = vpack.c.bf16 %v2046_v36, %v2047_v37 }
 0x2b9   :  { %3088 = vmatpush1.bf16.msra.mxu1 %v3087_v39 }
 0x2ba   :  { %3089 = vmatprep.subr.bf16.mxu1 %v3166_v16 }
 0x2bd   :  { %3091 = vmatpush1.bf16.msra.mxu1 %v3090_v41  ;;  %v1955_v41 = vmul.f32 %v1954_v40, %v1949_v21 }
 0x2be   :  { %3092 = vmatprep.subr.bf16.mxu1 %v3166_v16 }
 0x2c1   :  { %3094 = vmatpush1.bf16.msra.mxu1 %v3093_v43 }
 0x2c2   :  { %3095 = vmatprep.subr.bf16.mxu1 %v3166_v16 }
 0x2c5   :  { %3097 = vmatpush1.bf16.msra.mxu1 %v3096_v46 }
 0x2c6   :  { %3098 = vmatprep.subr.bf16.mxu1 %v3166_v16 }
 0x2c9   :  { %3100 = vmatpush1.bf16.msra.mxu1 %v3099_v49 }
 0x2ca   :  { %3101 = vmatprep.subr.bf16.mxu1 %v3166_v16 }
 0x2cd   :  { %3103 = vmatpush1.bf16.msra.mxu1 %v3102_v52 }
 0x2ce   :  { %3104 = vmatprep.subr.bf16.mxu1 %v3166_v16 }
 0x2d1   :  { %3106 = vmatpush1.bf16.msra.mxu1 %v3105_v55  ;;  %v2242_v55 = vld [vmem:[%s5779_s7 + $0x2] ss:$0 sm:$0xff] }
 0x2d2   :  { %3107 = vmatprep.subr.bf16.mxu1 %v3166_v16 }
 0x2d5   :  { %3109 = vmatpush1.bf16.msra.mxu1 %v3108_v60 }
 0x2d6   :  { %3110 = vmatprep.subr.bf16.mxu1 %v3166_v16 }
 0x2d9   :  { %3112 = vmatpush1.bf16.msra.mxu1 %v3111_v4 }
 0x2da   :  { %3113 = vmatprep.subr.bf16.mxu1 %v3166_v16 }
 0x2dd   :  { %3115 = vmatpush1.bf16.msra.mxu1 %v3114_v8 }
 0x2de   :  { %3116 = vmatprep.subr.bf16.mxu1 %v3166_v16 }
 0x2e1   :  { %3118 = vmatpush1.bf16.msra.mxu1 %v3117_v10 }
 0x2e2   :  { %1919 = vmatprep.subr.mxu1 %v3167_v14 }
 0x2e5   :  { %2234 = vmatpush1.msk.msra.mxu1 %vm436_vm1, %v1781_v15 }
 0x2e6   :  { %1928 = vmatmul.mubr.f32.vlgmr.msra.gmra.mrb[6].mxu1 %v1719_v18  ;;  %3119 = vmatprep.subr.bf16.mxu1 %v3166_v16 }
 0x2e7   :  { %3121 = vmatpush3.bf16.msra.mxu1 %v3120_v19  ;;  %2308 = vmatprep.mubr.msk.f32.mxu1 %vm3168_vm5, %v3167_v14 }
 0x2e8   :  { %3122 = vmatprep.subr.bf16.mxu1 %v3166_v16 }
 0x2eb   :  { %3124 = vmatpush3.bf16.msra.mxu1 %v3123_v22 }
 0x2ec   :  { %3125 = vmatprep.subr.bf16.mxu1 %v3166_v16 }
 0x2ef   :  { %3127 = vmatpush3.bf16.msra.mxu1 %v3126_v24 }
 0x2f0   :  { %2306 = vmatprep.subr.mxu1 %v3167_v14 }
 0x2f3   :  { %2307 = vmatpush3.msk.msra.mxu1 %vm1960_vm4, %v1940_v25 }
 0x2f4   :  { %3128 = vmatprep.subr.bf16.mxu1 %v3166_v16 }
 0x37f   :  { %v2277_v1 = vpop.f32.mrb[4].mxu1 }
 0x380   :  { %v2278_v27 = vpop.f32.mrb[5].mxu1 }
 0x381   :  { %v2279_v28 = vadd.f32 %v2278_v27, %v2277_v1 }
 0x383   :  { %v1860_v30 = vadd.f32 %v2279_v28, %v2233_v29 }
 0x3b9   :  { %v1929_v5 = vpop.f32.mrb[6].mxu1 }
 0x3ba   :  { %v1930_v31 = vadd.f32 %v1929_v5, %v1860_v30  ;;  %v1931_v32 = vpop.f32.mrb[7].mxu1 }
 0x3bc   :  { %v1933_v33 = vmax.f32 %v1930_v31, 0.0 }
 0x3be   :  { %2309 = vmatmul.mubr.msk.f32.vlgmr.msra.gmra.mrb[8].mxu1 %vm1956_vm6, %v1933_v33 }
 0x3bf   :  { %2315 = vmatprep.mubr.msk.f32.mxu1 %vm3168_vm5, %v3167_v14  ;;  %3131 = vmatpush3.bf16.msk.msra.mxu1 %vm5743_vm8, %v3129_v38 }
 0x3c0   :  { %3132 = vmatprep.subr.bf16.mxu1 %v3166_v16  ;;  %v2132_v16 = vrot.slane %v1941_v34, 3 }
 0x3c2   :  { %v2134_v48 = vsel %vm2131_vm10, %v2132_v16, %v2133_v47 }
 0x3c3   :  { %v3133_v49 = vpack.c.bf16 %v2133_v47, %v2134_v48 }
 0x491   :  { %v2030_v58 = vpop.f32.mrb[8].mxu1 }
 0x492   :  { %v2031_v43 = vadd.f32 %v2030_v58, %v1955_v41  ;;  %v2310_v44 = vpop.f32.mrb[9].mxu1 }
 0x494   :  { %v2038_v45 = vadd.f32 %v2238_v42, %v2031_v43 }
 0x496   :  { %v2039_v46 = vmax.f32 %v2038_v45, 0.0 }
 0x498   :  { %2316 = vmatmul.mubr.msk.f32.vlgmr.msra.gmra.mrb[10].mxu1 %vm2049_vm9, %v2039_v46 }
 0x499   :  { %2322 = vmatprep.mubr.msk.f32.mxu1 %vm3168_vm5, %v3167_v14  ;;  %3135 = vmatpush3.bf16.msk.msra.mxu1 %vm5743_vm8, %v3133_v49 }
 0x56b   :  { %v2121_v51 = vpop.f32.mrb[10].mxu1 }
 0x56c   :  { %v2122_v52 = vadd.f32 %v2239_v50, %v2121_v51  ;;  %v2317_v53 = vpop.f32.mrb[11].mxu1 }
 0x56e   :  { %v2125_v54 = vmax.f32 %v2122_v52, 0.0 }
 0x570   :  { %2323 = vmatmul.mubr.msk.f32.vlgmr.msra.gmra.mrb[12].mxu1 %vm2049_vm9, %v2125_v54 }
 0x643   :  { %v2207_v56 = vpop.f32.mrb[12].mxu1 }
 0x644   :  { %v2208_v57 = vadd.f32 %v2242_v55, %v2207_v56  ;;  %v2324_v60 = vpop.f32.mrb[13].mxu1 }
 0x646   :  { %2212 = vst.msk [vmem:[%s5780_s8] sm:$0xff] %vm2211_vm11, %v2208_v57 }

</bundles_post_ra>
